<compile_context>
chip_gen: v7x
topology: tpu7x:2x2x1
jax: 0.10.0
libtpu: 0.0.40
codegen_flags: <defaults>
</compile_context>

<pallas_src>
import functools

import jax
import jax.numpy as jnp
from jax.experimental import pallas as pl
from jax.experimental.pallas import tpu as pltpu

LANE = 128  # gate/hidden lane padding


# ----------------------------------------------------------------------------
# Fused Pallas kernel: 4 GRU layers + dense head, whole sequence in VMEM
# ----------------------------------------------------------------------------
def fused_gru_kernel(
    x_ref,         # (T*Bp, Fp)      bf16, time-major, batch padded to Bp (mult of 8)
    wih0_ref,      # (Fp, 3*Hp)      bf16, layer-0 input->hidden, gate cols at 0/Hp/2Hp
    wih_rest_ref,  # (L-1, Hp, 3*Hp) bf16, layers 1.. input->hidden
    whh_ref,       # (L, Hp, 3*Hp)   bf16, hidden->hidden
    bi_ref,        # (L, 1, 3*Hp)    f32, folded biases [b_ir+b_hr | b_iz+b_hz | b_in]
    bhn_ref,       # (L, 1, Hp)      f32, hidden n-gate bias (r-gated, kept separate)
    dw_ref,        # (Hp, O)         bf16, dense weight (transposed)
    db_ref,        # (1, O)          f32, dense bias
    out_ref,       # (Bp, O)         f32 output
    gi_seq,        # scratch (T*Bp, 3*Hp) f32 : precomputed input projections
    h_seq,         # scratch (T*Bp, Hp)   f32 : current layer's output sequence
    *,
    seq_len,
    batch,
    use_bias,
):
    T = seq_len
    Bp = batch
    Hp = whh_ref.shape[1]
    num_layers = whh_ref.shape[0]

    h_final = None
    for layer in range(num_layers):
        # ---- Hoisted input projection: one big matmul per layer (no time dep) ----
        if layer == 0:
            inp = x_ref[...]                                  # (T*Bp, Fp) bf16
            w_in = wih0_ref[...]                              # (Fp, 3Hp) bf16
        else:
            inp = h_seq[...].astype(jnp.bfloat16)             # (T*Bp, Hp)
            w_in = wih_rest_ref[layer - 1]                    # (Hp, 3Hp)
        gi = jnp.dot(inp, w_in, preferred_element_type=jnp.float32)
        if use_bias:
            gi = gi + bi_ref[layer]
        gi_seq[...] = gi

        whh_l = whh_ref[layer]                                # (Hp, 3Hp) bf16
        bhn_l = bhn_ref[layer] if use_bias else None          # (1, Hp)  f32
        write_seq = layer != num_layers - 1                   # last layer: final state only

        # ---- Serial recurrence: h lives in vregs (fori_loop carry), only
        #      h @ Whh + elementwise gate math per step -------------------------
        def step(t, h_prev, whh_l=whh_l, bhn_l=bhn_l, write_seq=write_seq):
            row = pl.multiple_of(t * Bp, Bp)                  # Bp multiple of 8 -> aligned
            gi_t = gi_seq[pl.ds(row, Bp), :]                  # (Bp, 3Hp) f32
            gh = jnp.dot(h_prev.astype(jnp.bfloat16), whh_l,
                         preferred_element_type=jnp.float32)  # (Bp, 3Hp) f32
            # Fused r/z sigmoid over the first 2*Hp lanes (one EUP dispatch).
            rz = jax.nn.sigmoid(gi_t[:, : 2 * Hp] + gh[:, : 2 * Hp])
            r = rz[:, :Hp]
            z = rz[:, Hp:]
            gh_n = gh[:, 2 * Hp:]
            if use_bias:
                gh_n = gh_n + bhn_l
            n = jnp.tanh(gi_t[:, 2 * Hp:] + r * gh_n)
            h_new = n + z * (h_prev - n)                      # == (1-z)*n + z*h_prev
            if write_seq:
                h_seq[pl.ds(row, Bp), :] = h_new
            return h_new

        h0 = jnp.zeros((Bp, Hp), jnp.float32)
        # Full unroll is fine while L*T stays small (32 steps here); switch to
        # partial unroll (2-4) if T grows.
        h_final = jax.lax.fori_loop(0, T, step, h0, unroll=True)

    # ---- Dense head on the final hidden state (only HBM write) ----
    out_ref[...] = (
        jnp.dot(h_final.astype(jnp.bfloat16), dw_ref[...],
                preferred_element_type=jnp.float32)
        + db_ref[...]
    ).astype(out_ref.dtype)


# ----------------------------------------------------------------------------
# Parameter packing: pad gates / hidden to 128 lanes, cast MXU operands to bf16
# ----------------------------------------------------------------------------
def _round_up(x, m):
    return ((x + m - 1) // m) * m


def _pad_gate_cols(w, H, Hp):
    """(..., 3H) -> (..., 3Hp); gate blocks r|z|n moved to lane offsets 0/Hp/2Hp."""
    pad = [(0, 0)] * (w.ndim - 1) + [(0, Hp - H)]
    parts = [jnp.pad(w[..., g * H:(g + 1) * H], pad) for g in range(3)]
    return jnp.concatenate(parts, axis=-1)


def _pad_axis(w, H, Hp, axis):
    pad = [(0, 0)] * w.ndim
    pad[axis] = (0, Hp - H)
    return jnp.pad(w, pad)


def pack_params(params, hidden_pad=LANE):
    """Pack natural-layout params into the padded / bf16 kernel layout (done once)."""
    H = params["whh"].shape[1]
    F = params["wih0"].shape[0]
    Hp = hidden_pad
    Fp = _round_up(F, 8)
    bf16 = jnp.bfloat16

    packed = dict(
        wih0=_pad_axis(_pad_gate_cols(params["wih0"], H, Hp), F, Fp, 0).astype(bf16),
        wih_rest=_pad_axis(_pad_gate_cols(params["wih_rest"], H, Hp), H, Hp, 1).astype(bf16),
        whh=_pad_axis(_pad_gate_cols(params["whh"], H, Hp), H, Hp, 1).astype(bf16),
        bi=_pad_gate_cols(params["bi"], H, Hp).astype(jnp.float32),
        bhn=_pad_axis(params["bhn"], H, Hp, 2).astype(jnp.float32),
        dense_w=_pad_axis(params["dense_w"], H, Hp, 0).astype(bf16),
        dense_b=params["dense_b"].astype(jnp.float32),
    )
    use_bias = bool(jnp.any(params["bi"] != 0)) or bool(jnp.any(params["bhn"] != 0))
    return packed, use_bias, Fp


# ----------------------------------------------------------------------------
# Wrapper
# ----------------------------------------------------------------------------
@functools.partial(jax.jit, static_argnames=("use_bias", "feat_pad"))
def _gru_forward(x, packed, use_bias, feat_pad):
    B, T, F = x.shape
    Hp = packed["whh"].shape[1]
    O = packed["dense_w"].shape[-1]

    # Pad batch to a multiple of 8 so every sublane access in the kernel is aligned.
    Bp = _round_up(B, 8)
    x_tm = jnp.transpose(x, (1, 0, 2))                           # (T, B, F)
    x_tm = jnp.pad(x_tm, ((0, 0), (0, Bp - B), (0, feat_pad - F)))
    x_flat = x_tm.reshape(T * Bp, feat_pad).astype(jnp.bfloat16)

    kernel = functools.partial(
        fused_gru_kernel, seq_len=T, batch=Bp, use_bias=use_bias
    )
    out_padded = pl.pallas_call(
        kernel,
        out_shape=jax.ShapeDtypeStruct((Bp, O), jnp.float32),
        scratch_shapes=[
            pltpu.VMEM((T * Bp, 3 * Hp), jnp.float32),  # gi_seq (hoisted projections)
            pltpu.VMEM((T * Bp, Hp), jnp.float32),      # h_seq  (layer intermediates)
        ],
        # Explicit VMEM budget: scratch + weights are well under 1 MiB at these
        # shapes; 16 MiB keeps generous headroom yet stays below v7x's 32 MiB
        # default scoped limit / 64 MiB physical.
        compiler_params=pltpu.CompilerParams(vmem_limit_bytes=16 * 1024 * 1024),
    )(
        x_flat,
        packed["wih0"],
        packed["wih_rest"],
        packed["whh"],
        packed["bi"],
        packed["bhn"],
        packed["dense_w"],
        packed["dense_b"],
    )
    return out_padded[:B]


def keras_gru_forward(x, params):
    """x: (batch, seq, features) -> (batch, output_size). Dropout = identity (eval)."""
    packed, use_bias, feat_pad = pack_params(params)
    return _gru_forward(x, packed, use_bias, feat_pad)


# ----------------------------------------------------------------------------
# Deterministic parameter construction (shapes mirror the PyTorch module)
# ----------------------------------------------------------------------------
def _xavier_uniform(key, fan_in, fan_out, shape):
    limit = jnp.sqrt(6.0 / (fan_in + fan_out))
    return jax.random.uniform(key, shape, jnp.float32, -limit, limit)


def _orthogonal(key, rows, cols):
    a = jax.random.normal(key, (rows, cols), jnp.float32)
    q, r = jnp.linalg.qr(a)
    q = q * jnp.sign(jnp.diagonal(r))  # fix sign for determinism
    return q


def make_params(num_features, hidden_size, output_size, num_layers=4, seed=0):
    key = jax.random.PRNGKey(seed)
    H = hidden_size
    wih_list, whh_list, bi_list, bhn_list = [], [], [], []
    in_size = num_features
    for _ in range(num_layers):
        key, k_ih, k_hh = jax.random.split(key, 3)
        # PyTorch layouts: weight_ih (3H, in) xavier; weight_hh (3H, H) orthogonal; biases 0.
        w_ih = _xavier_uniform(k_ih, in_size, 3 * H, (3 * H, in_size))
        w_hh = _orthogonal(k_hh, 3 * H, H)
        wih_list.append(jnp.transpose(w_ih))    # (in, 3H), column blocks [r|z|n]
        whh_list.append(jnp.transpose(w_hh))    # (H, 3H)
        b_ih = jnp.zeros((3 * H,), jnp.float32)
        b_hh = jnp.zeros((3 * H,), jnp.float32)
        # Pre-fold biases: r,z gates take b_ih+b_hh; n keeps b_hn separate (r-gated).
        bi = jnp.concatenate([b_ih[: 2 * H] + b_hh[: 2 * H], b_ih[2 * H:]])
        bi_list.append(bi.reshape(1, 3 * H))
        bhn_list.append(b_hh[2 * H:].reshape(1, H))
        in_size = H

    key, k_d = jax.random.split(key)
    dense_w = _xavier_uniform(k_d, H, output_size, (H, output_size))  # (H, O) == W^T
    dense_b = jnp.zeros((1, output_size), jnp.float32)

    return dict(
        wih0=wih_list[0],                      # (F, 3H)
        wih_rest=jnp.stack(wih_list[1:]),      # (L-1, H, 3H)
        whh=jnp.stack(whh_list),               # (L, H, 3H)
        bi=jnp.stack(bi_list),                 # (L, 1, 3H)
        bhn=jnp.stack(bhn_list),               # (L, 1, H)
        dense_w=dense_w,
        dense_b=dense_b,
    )


# ----------------------------------------------------------------------------
# Pure-JAX reference (lax.scan) with the SAME bf16-operand / f32-accumulate casts
# ----------------------------------------------------------------------------
def reference_forward(x, params):
    B, T, F = x.shape
    H = params["whh"].shape[1]
    num_layers = params["whh"].shape[0]
    bf16 = jnp.bfloat16
    seq = jnp.transpose(x, (1, 0, 2))  # (T, B, F)
    h_last = jnp.zeros((B, H), jnp.float32)
    for layer in range(num_layers):
        w_in = params["wih0"] if layer == 0 else params["wih_rest"][layer - 1]
        whh = params["whh"][layer].astype(bf16)
        bi = params["bi"][layer]
        bhn = params["bhn"][layer]
        gi_seq = jnp.einsum(
            "tbf,fh->tbh", seq.astype(bf16), w_in.astype(bf16),
            preferred_element_type=jnp.float32,
        ) + bi  # (T, B, 3H)

        def step(h, gi_t, whh=whh, bhn=bhn):
            gh = jnp.dot(h.astype(bf16), whh, preferred_element_type=jnp.float32)
            r = jax.nn.sigmoid(gi_t[:, 0:H] + gh[:, 0:H])
            z = jax.nn.sigmoid(gi_t[:, H:2 * H] + gh[:, H:2 * H])
            n = jnp.tanh(gi_t[:, 2 * H:3 * H] + r * (gh[:, 2 * H:3 * H] + bhn))
            h_new = n + z * (h - n)
            return h_new, h_new

        h0 = jnp.zeros((B, H), jnp.float32)
        h_last, seq = jax.lax.scan(step, h0, gi_seq)
    return (
        jnp.dot(h_last.astype(bf16), params["dense_w"].astype(bf16),
                preferred_element_type=jnp.float32)
        + params["dense_b"]
    )


if __name__ == "__main__":
    BATCH, SEQ, FEATURES = 2, 8, 4
    HIDDEN, OUTPUT = 32, 1

    key = jax.random.PRNGKey(0)
    x = jax.random.normal(key, (BATCH, SEQ, FEATURES), jnp.float32)

    params = make_params(FEATURES, HIDDEN, OUTPUT, num_layers=4, seed=0)

    y = keras_gru_forward(x, params)
    y = jax.block_until_ready(y)

    y_ref = reference_forward(x, params)
    assert y.shape == (BATCH, OUTPUT)
    assert jnp.allclose(y, y_ref, atol=5e-3, rtol=5e-3), (y, y_ref)

    print("KERNEL_OK")
</pallas_src>

<mosaic_0001>
module attributes {stable_mosaic.version = 11 : i64} {
  func.func @fused_gru_kernel(%arg0: memref<64x8xbf16, #tpu.memory_space<vmem>>, %arg1: memref<8x384xbf16, #tpu.memory_space<vmem>>, %arg2: memref<3x128x384xbf16, #tpu.memory_space<vmem>>, %arg3: memref<4x128x384xbf16, #tpu.memory_space<vmem>>, %arg4: memref<4x1x384xf32, #tpu.memory_space<vmem>>, %arg5: memref<4x1x128xf32, #tpu.memory_space<vmem>>, %arg6: memref<128x1xbf16, #tpu.memory_space<vmem>>, %arg7: memref<1x1xf32, #tpu.memory_space<vmem>>, %arg8: memref<8x1xf32, #tpu.memory_space<vmem>>, %arg9: memref<64x384xf32, #tpu.memory_space<vmem>>, %arg10: memref<64x128xf32, #tpu.memory_space<vmem>>) attributes {dimension_semantics = [], scalar_prefetch = 0 : i64, scratch_operands = 2 : i64, tpu.core_type = #tpu.core_type<tc>} {
    %c0 = arith.constant 0 : index
    %c0_0 = arith.constant 0 : index
    %0 = vector.load %arg0[%c0, %c0_0] : memref<64x8xbf16, #tpu.memory_space<vmem>>, vector<64x8xbf16>
    %c0_1 = arith.constant 0 : index
    %c0_2 = arith.constant 0 : index
    %1 = vector.load %arg1[%c0_1, %c0_2] : memref<8x384xbf16, #tpu.memory_space<vmem>>, vector<8x384xbf16>
    %cst = arith.constant dense<0.000000e+00> : vector<64x384xf32>
    %2 = tpu.matmul %0, %1, %cst {dimension_numbers = #tpu.dot_dimension_numbers<[1], [0], [0], [1], [0, 0, 1, 1], [], []>} : vector<64x8xbf16>, vector<8x384xbf16>, vector<64x384xf32> -> vector<64x384xf32>
    %c0_3 = arith.constant 0 : index
    %c0_4 = arith.constant 0 : index
    %3 = vector.load %arg9[%c0_3, %c0_4] : memref<64x384xf32, #tpu.memory_space<vmem>>, vector<64x384xf32>
    tpu.vector_store %arg9[%c0_3, %c0_4], %2 {strides = array<i32>} : memref<64x384xf32, #tpu.memory_space<vmem>>, vector<64x384xf32>,
    %c0_5 = arith.constant 0 : index
    %c0_6 = arith.constant 0 : index
    %c0_7 = arith.constant 0 : index
    %4 = vector.load %arg3[%c0_5, %c0_6, %c0_7] : memref<4x128x384xbf16, #tpu.memory_space<vmem>>, vector<1x128x384xbf16>
    %5 = vector.shape_cast %4 : vector<1x128x384xbf16> to vector<128x384xbf16>
    %cst_8 = arith.constant 0.000000e+00 : f32
    %6 = vector.broadcast %cst_8 : f32 to vector<8x128xf32>
    %c0_i32 = arith.constant 0 : i32
    %c8_i32 = arith.constant 8 : i32
    %7 = arith.muli %c0_i32, %c8_i32 : i32
    %8 = tpu.assume_multiple %7, 8 : i32
    %9 = arith.index_cast %8 : i32 to index
    %c0_9 = arith.constant 0 : index
    %10 = vector.load %arg9[%9, %c0_9] : memref<64x384xf32, #tpu.memory_space<vmem>>, vector<8x384xf32>
    %11 = arith.truncf %6 : vector<8x128xf32> to vector<8x128xbf16>
    %cst_10 = arith.constant dense<0.000000e+00> : vector<8x384xf32>
    %12 = tpu.matmul %11, %5, %cst_10 {dimension_numbers = #tpu.dot_dimension_numbers<[1], [0], [0], [1], [0, 0, 1, 1], [], []>} : vector<8x128xbf16>, vector<128x384xbf16>, vector<8x384xf32> -> vector<8x384xf32>
    %13 = vector.extract_strided_slice %10 {offsets = [0, 0], sizes = [8, 256], strides = [1, 1]} : vector<8x384xf32> to vector<8x256xf32>
    %14 = vector.extract_strided_slice %12 {offsets = [0, 0], sizes = [8, 256], strides = [1, 1]} : vector<8x384xf32> to vector<8x256xf32>
    %15 = arith.addf %13, %14 : vector<8x256xf32>
    %16 = arith.negf %15 : vector<8x256xf32>
    %17 = math.exp %16 : vector<8x256xf32>
    %cst_11 = arith.constant 1.000000e+00 : f32
    %18 = vector.broadcast %cst_11 : f32 to vector<8x256xf32>
    %19 = arith.addf %18, %17 : vector<8x256xf32>
    %20 = arith.divf %18, %19 : vector<8x256xf32>
    %21 = vector.extract_strided_slice %20 {offsets = [0, 0], sizes = [8, 128], strides = [1, 1]} : vector<8x256xf32> to vector<8x128xf32>
    %22 = vector.extract_strided_slice %20 {offsets = [0, 128], sizes = [8, 128], strides = [1, 1]} : vector<8x256xf32> to vector<8x128xf32>
    %23 = vector.extract_strided_slice %12 {offsets = [0, 256], sizes = [8, 128], strides = [1, 1]} : vector<8x384xf32> to vector<8x128xf32>
    %24 = vector.extract_strided_slice %10 {offsets = [0, 256], sizes = [8, 128], strides = [1, 1]} : vector<8x384xf32> to vector<8x128xf32>
    %25 = arith.mulf %21, %23 : vector<8x128xf32>
    %26 = arith.addf %24, %25 : vector<8x128xf32>
    %27 = math.tanh %26 : vector<8x128xf32>
    %28 = arith.subf %6, %27 : vector<8x128xf32>
    %29 = arith.mulf %22, %28 : vector<8x128xf32>
    %30 = arith.addf %27, %29 : vector<8x128xf32>
    %31 = arith.index_cast %8 : i32 to index
    %c0_12 = arith.constant 0 : index
    %32 = vector.load %arg10[%31, %c0_12] : memref<64x128xf32, #tpu.memory_space<vmem>>, vector<8x128xf32>
    tpu.vector_store %arg10[%31, %c0_12], %30 {strides = array<i32>} : memref<64x128xf32, #tpu.memory_space<vmem>>, vector<8x128xf32>,
    %c1_i32 = arith.constant 1 : i32
    %c8_i32_13 = arith.constant 8 : i32
    %33 = arith.muli %c1_i32, %c8_i32_13 : i32
    %34 = tpu.assume_multiple %33, 8 : i32
    %35 = arith.index_cast %34 : i32 to index
    %c0_14 = arith.constant 0 : index
    %36 = vector.load %arg9[%35, %c0_14] : memref<64x384xf32, #tpu.memory_space<vmem>>, vector<8x384xf32>
    %37 = arith.truncf %30 : vector<8x128xf32> to vector<8x128xbf16>
    %cst_15 = arith.constant dense<0.000000e+00> : vector<8x384xf32>
    %38 = tpu.matmul %37, %5, %cst_15 {dimension_numbers = #tpu.dot_dimension_numbers<[1], [0], [0], [1], [0, 0, 1, 1], [], []>} : vector<8x128xbf16>, vector<128x384xbf16>, vector<8x384xf32> -> vector<8x384xf32>
    %39 = vector.extract_strided_slice %36 {offsets = [0, 0], sizes = [8, 256], strides = [1, 1]} : vector<8x384xf32> to vector<8x256xf32>
    %40 = vector.extract_strided_slice %38 {offsets = [0, 0], sizes = [8, 256], strides = [1, 1]} : vector<8x384xf32> to vector<8x256xf32>
    %41 = arith.addf %39, %40 : vector<8x256xf32>
    %42 = arith.negf %41 : vector<8x256xf32>
    %43 = math.exp %42 : vector<8x256xf32>
    %cst_16 = arith.constant 1.000000e+00 : f32
    %44 = vector.broadcast %cst_16 : f32 to vector<8x256xf32>
    %45 = arith.addf %44, %43 : vector<8x256xf32>
    %46 = arith.divf %44, %45 : vector<8x256xf32>
    %47 = vector.extract_strided_slice %46 {offsets = [0, 0], sizes = [8, 128], strides = [1, 1]} : vector<8x256xf32> to vector<8x128xf32>
    %48 = vector.extract_strided_slice %46 {offsets = [0, 128], sizes = [8, 128], strides = [1, 1]} : vector<8x256xf32> to vector<8x128xf32>
    %49 = vector.extract_strided_slice %38 {offsets = [0, 256], sizes = [8, 128], strides = [1, 1]} : vector<8x384xf32> to vector<8x128xf32>
    %50 = vector.extract_strided_slice %36 {offsets = [0, 256], sizes = [8, 128], strides = [1, 1]} : vector<8x384xf32> to vector<8x128xf32>
    %51 = arith.mulf %47, %49 : vector<8x128xf32>
    %52 = arith.addf %50, %51 : vector<8x128xf32>
    %53 = math.tanh %52 : vector<8x128xf32>
    %54 = arith.subf %30, %53 : vector<8x128xf32>
    %55 = arith.mulf %48, %54 : vector<8x128xf32>
    %56 = arith.addf %53, %55 : vector<8x128xf32>
    %57 = arith.index_cast %34 : i32 to index
    %c0_17 = arith.constant 0 : index
    %58 = vector.load %arg10[%57, %c0_17] : memref<64x128xf32, #tpu.memory_space<vmem>>, vector<8x128xf32>
    tpu.vector_store %arg10[%57, %c0_17], %56 {strides = array<i32>} : memref<64x128xf32, #tpu.memory_space<vmem>>, vector<8x128xf32>,
    %c2_i32 = arith.constant 2 : i32
    %c8_i32_18 = arith.constant 8 : i32
    %59 = arith.muli %c2_i32, %c8_i32_18 : i32
    %60 = tpu.assume_multiple %59, 8 : i32
    %61 = arith.index_cast %60 : i32 to index
    %c0_19 = arith.constant 0 : index
    %62 = vector.load %arg9[%61, %c0_19] : memref<64x384xf32, #tpu.memory_space<vmem>>, vector<8x384xf32>
    %63 = arith.truncf %56 : vector<8x128xf32> to vector<8x128xbf16>
    %cst_20 = arith.constant dense<0.000000e+00> : vector<8x384xf32>
    %64 = tpu.matmul %63, %5, %cst_20 {dimension_numbers = #tpu.dot_dimension_numbers<[1], [0], [0], [1], [0, 0, 1, 1], [], []>} : vector<8x128xbf16>, vector<128x384xbf16>, vector<8x384xf32> -> vector<8x384xf32>
    %65 = vector.extract_strided_slice %62 {offsets = [0, 0], sizes = [8, 256], strides = [1, 1]} : vector<8x384xf32> to vector<8x256xf32>
    %66 = vector.extract_strided_slice %64 {offsets = [0, 0], sizes = [8, 256], strides = [1, 1]} : vector<8x384xf32> to vector<8x256xf32>
    %67 = arith.addf %65, %66 : vector<8x256xf32>
    %68 = arith.negf %67 : vector<8x256xf32>
    %69 = math.exp %68 : vector<8x256xf32>
    %cst_21 = arith.constant 1.000000e+00 : f32
    %70 = vector.broadcast %cst_21 : f32 to vector<8x256xf32>
    %71 = arith.addf %70, %69 : vector<8x256xf32>
    %72 = arith.divf %70, %71 : vector<8x256xf32>
    %73 = vector.extract_strided_slice %72 {offsets = [0, 0], sizes = [8, 128], strides = [1, 1]} : vector<8x256xf32> to vector<8x128xf32>
    %74 = vector.extract_strided_slice %72 {offsets = [0, 128], sizes = [8, 128], strides = [1, 1]} : vector<8x256xf32> to vector<8x128xf32>
    %75 = vector.extract_strided_slice %64 {offsets = [0, 256], sizes = [8, 128], strides = [1, 1]} : vector<8x384xf32> to vector<8x128xf32>
    %76 = vector.extract_strided_slice %62 {offsets = [0, 256], sizes = [8, 128], strides = [1, 1]} : vector<8x384xf32> to vector<8x128xf32>
    %77 = arith.mulf %73, %75 : vector<8x128xf32>
    %78 = arith.addf %76, %77 : vector<8x128xf32>
    %79 = math.tanh %78 : vector<8x128xf32>
    %80 = arith.subf %56, %79 : vector<8x128xf32>
    %81 = arith.mulf %74, %80 : vector<8x128xf32>
    %82 = arith.addf %79, %81 : vector<8x128xf32>
    %83 = arith.index_cast %60 : i32 to index
    %c0_22 = arith.constant 0 : index
    %84 = vector.load %arg10[%83, %c0_22] : memref<64x128xf32, #tpu.memory_space<vmem>>, vector<8x128xf32>
    tpu.vector_store %arg10[%83, %c0_22], %82 {strides = array<i32>} : memref<64x128xf32, #tpu.memory_space<vmem>>, vector<8x128xf32>,
    %c3_i32 = arith.constant 3 : i32
    %c8_i32_23 = arith.constant 8 : i32
    %85 = arith.muli %c3_i32, %c8_i32_23 : i32
    %86 = tpu.assume_multiple %85, 8 : i32
    %87 = arith.index_cast %86 : i32 to index
    %c0_24 = arith.constant 0 : index
    %88 = vector.load %arg9[%87, %c0_24] : memref<64x384xf32, #tpu.memory_space<vmem>>, vector<8x384xf32>
    %89 = arith.truncf %82 : vector<8x128xf32> to vector<8x128xbf16>
    %cst_25 = arith.constant dense<0.000000e+00> : vector<8x384xf32>
    %90 = tpu.matmul %89, %5, %cst_25 {dimension_numbers = #tpu.dot_dimension_numbers<[1], [0], [0], [1], [0, 0, 1, 1], [], []>} : vector<8x128xbf16>, vector<128x384xbf16>, vector<8x384xf32> -> vector<8x384xf32>
    %91 = vector.extract_strided_slice %88 {offsets = [0, 0], sizes = [8, 256], strides = [1, 1]} : vector<8x384xf32> to vector<8x256xf32>
    %92 = vector.extract_strided_slice %90 {offsets = [0, 0], sizes = [8, 256], strides = [1, 1]} : vector<8x384xf32> to vector<8x256xf32>
    %93 = arith.addf %91, %92 : vector<8x256xf32>
    %94 = arith.negf %93 : vector<8x256xf32>
    %95 = math.exp %94 : vector<8x256xf32>
    %cst_26 = arith.constant 1.000000e+00 : f32
    %96 = vector.broadcast %cst_26 : f32 to vector<8x256xf32>
    %97 = arith.addf %96, %95 : vector<8x256xf32>
    %98 = arith.divf %96, %97 : vector<8x256xf32>
    %99 = vector.extract_strided_slice %98 {offsets = [0, 0], sizes = [8, 128], strides = [1, 1]} : vector<8x256xf32> to vector<8x128xf32>
    %100 = vector.extract_strided_slice %98 {offsets = [0, 128], sizes = [8, 128], strides = [1, 1]} : vector<8x256xf32> to vector<8x128xf32>
    %101 = vector.extract_strided_slice %90 {offsets = [0, 256], sizes = [8, 128], strides = [1, 1]} : vector<8x384xf32> to vector<8x128xf32>
    %102 = vector.extract_strided_slice %88 {offsets = [0, 256], sizes = [8, 128], strides = [1, 1]} : vector<8x384xf32> to vector<8x128xf32>
    %103 = arith.mulf %99, %101 : vector<8x128xf32>
    %104 = arith.addf %102, %103 : vector<8x128xf32>
    %105 = math.tanh %104 : vector<8x128xf32>
    %106 = arith.subf %82, %105 : vector<8x128xf32>
    %107 = arith.mulf %100, %106 : vector<8x128xf32>
    %108 = arith.addf %105, %107 : vector<8x128xf32>
    %109 = arith.index_cast %86 : i32 to index
    %c0_27 = arith.constant 0 : index
    %110 = vector.load %arg10[%109, %c0_27] : memref<64x128xf32, #tpu.memory_space<vmem>>, vector<8x128xf32>
    tpu.vector_store %arg10[%109, %c0_27], %108 {strides = array<i32>} : memref<64x128xf32, #tpu.memory_space<vmem>>, vector<8x128xf32>,
    %c4_i32 = arith.constant 4 : i32
    %c8_i32_28 = arith.constant 8 : i32
    %111 = arith.muli %c4_i32, %c8_i32_28 : i32
    %112 = tpu.assume_multiple %111, 8 : i32
    %113 = arith.index_cast %112 : i32 to index
    %c0_29 = arith.constant 0 : index
    %114 = vector.load %arg9[%113, %c0_29] : memref<64x384xf32, #tpu.memory_space<vmem>>, vector<8x384xf32>
    %115 = arith.truncf %108 : vector<8x128xf32> to vector<8x128xbf16>
    %cst_30 = arith.constant dense<0.000000e+00> : vector<8x384xf32>
    %116 = tpu.matmul %115, %5, %cst_30 {dimension_numbers = #tpu.dot_dimension_numbers<[1], [0], [0], [1], [0, 0, 1, 1], [], []>} : vector<8x128xbf16>, vector<128x384xbf16>, vector<8x384xf32> -> vector<8x384xf32>
    %117 = vector.extract_strided_slice %114 {offsets = [0, 0], sizes = [8, 256], strides = [1, 1]} : vector<8x384xf32> to vector<8x256xf32>
    %118 = vector.extract_strided_slice %116 {offsets = [0, 0], sizes = [8, 256], strides = [1, 1]} : vector<8x384xf32> to vector<8x256xf32>
    %119 = arith.addf %117, %118 : vector<8x256xf32>
    %120 = arith.negf %119 : vector<8x256xf32>
    %121 = math.exp %120 : vector<8x256xf32>
    %cst_31 = arith.constant 1.000000e+00 : f32
    %122 = vector.broadcast %cst_31 : f32 to vector<8x256xf32>
    %123 = arith.addf %122, %121 : vector<8x256xf32>
    %124 = arith.divf %122, %123 : vector<8x256xf32>
    %125 = vector.extract_strided_slice %124 {offsets = [0, 0], sizes = [8, 128], strides = [1, 1]} : vector<8x256xf32> to vector<8x128xf32>
    %126 = vector.extract_strided_slice %124 {offsets = [0, 128], sizes = [8, 128], strides = [1, 1]} : vector<8x256xf32> to vector<8x128xf32>
    %127 = vector.extract_strided_slice %116 {offsets = [0, 256], sizes = [8, 128], strides = [1, 1]} : vector<8x384xf32> to vector<8x128xf32>
    %128 = vector.extract_strided_slice %114 {offsets = [0, 256], sizes = [8, 128], strides = [1, 1]} : vector<8x384xf32> to vector<8x128xf32>
    %129 = arith.mulf %125, %127 : vector<8x128xf32>
    %130 = arith.addf %128, %129 : vector<8x128xf32>
    %131 = math.tanh %130 : vector<8x128xf32>
    %132 = arith.subf %108, %131 : vector<8x128xf32>
    %133 = arith.mulf %126, %132 : vector<8x128xf32>
    %134 = arith.addf %131, %133 : vector<8x128xf32>
    %135 = arith.index_cast %112 : i32 to index
    %c0_32 = arith.constant 0 : index
    %136 = vector.load %arg10[%135, %c0_32] : memref<64x128xf32, #tpu.memory_space<vmem>>, vector<8x128xf32>
    tpu.vector_store %arg10[%135, %c0_32], %134 {strides = array<i32>} : memref<64x128xf32, #tpu.memory_space<vmem>>, vector<8x128xf32>,
    %c5_i32 = arith.constant 5 : i32
    %c8_i32_33 = arith.constant 8 : i32
    %137 = arith.muli %c5_i32, %c8_i32_33 : i32
    %138 = tpu.assume_multiple %137, 8 : i32
    %139 = arith.index_cast %138 : i32 to index
    %c0_34 = arith.constant 0 : index
    %140 = vector.load %arg9[%139, %c0_34] : memref<64x384xf32, #tpu.memory_space<vmem>>, vector<8x384xf32>
    %141 = arith.truncf %134 : vector<8x128xf32> to vector<8x128xbf16>
    %cst_35 = arith.constant dense<0.000000e+00> : vector<8x384xf32>
    %142 = tpu.matmul %141, %5, %cst_35 {dimension_numbers = #tpu.dot_dimension_numbers<[1], [0], [0], [1], [0, 0, 1, 1], [], []>} : vector<8x128xbf16>, vector<128x384xbf16>, vector<8x384xf32> -> vector<8x384xf32>
    %143 = vector.extract_strided_slice %140 {offsets = [0, 0], sizes = [8, 256], strides = [1, 1]} : vector<8x384xf32> to vector<8x256xf32>
    %144 = vector.extract_strided_slice %142 {offsets = [0, 0], sizes = [8, 256], strides = [1, 1]} : vector<8x384xf32> to vector<8x256xf32>
    %145 = arith.addf %143, %144 : vector<8x256xf32>
    %146 = arith.negf %145 : vector<8x256xf32>
    %147 = math.exp %146 : vector<8x256xf32>
    %cst_36 = arith.constant 1.000000e+00 : f32
    %148 = vector.broadcast %cst_36 : f32 to vector<8x256xf32>
    %149 = arith.addf %148, %147 : vector<8x256xf32>
    %150 = arith.divf %148, %149 : vector<8x256xf32>
    %151 = vector.extract_strided_slice %150 {offsets = [0, 0], sizes = [8, 128], strides = [1, 1]} : vector<8x256xf32> to vector<8x128xf32>
    %152 = vector.extract_strided_slice %150 {offsets = [0, 128], sizes = [8, 128], strides = [1, 1]} : vector<8x256xf32> to vector<8x128xf32>
    %153 = vector.extract_strided_slice %142 {offsets = [0, 256], sizes = [8, 128], strides = [1, 1]} : vector<8x384xf32> to vector<8x128xf32>
    %154 = vector.extract_strided_slice %140 {offsets = [0, 256], sizes = [8, 128], strides = [1, 1]} : vector<8x384xf32> to vector<8x128xf32>
    %155 = arith.mulf %151, %153 : vector<8x128xf32>
    %156 = arith.addf %154, %155 : vector<8x128xf32>
    %157 = math.tanh %156 : vector<8x128xf32>
    %158 = arith.subf %134, %157 : vector<8x128xf32>
    %159 = arith.mulf %152, %158 : vector<8x128xf32>
    %160 = arith.addf %157, %159 : vector<8x128xf32>
    %161 = arith.index_cast %138 : i32 to index
    %c0_37 = arith.constant 0 : index
    %162 = vector.load %arg10[%161, %c0_37] : memref<64x128xf32, #tpu.memory_space<vmem>>, vector<8x128xf32>
    tpu.vector_store %arg10[%161, %c0_37], %160 {strides = array<i32>} : memref<64x128xf32, #tpu.memory_space<vmem>>, vector<8x128xf32>,
    %c6_i32 = arith.constant 6 : i32
    %c8_i32_38 = arith.constant 8 : i32
    %163 = arith.muli %c6_i32, %c8_i32_38 : i32
    %164 = tpu.assume_multiple %163, 8 : i32
    %165 = arith.index_cast %164 : i32 to index
    %c0_39 = arith.constant 0 : index
    %166 = vector.load %arg9[%165, %c0_39] : memref<64x384xf32, #tpu.memory_space<vmem>>, vector<8x384xf32>
    %167 = arith.truncf %160 : vector<8x128xf32> to vector<8x128xbf16>
    %cst_40 = arith.constant dense<0.000000e+00> : vector<8x384xf32>
    %168 = tpu.matmul %167, %5, %cst_40 {dimension_numbers = #tpu.dot_dimension_numbers<[1], [0], [0], [1], [0, 0, 1, 1], [], []>} : vector<8x128xbf16>, vector<128x384xbf16>, vector<8x384xf32> -> vector<8x384xf32>
    %169 = vector.extract_strided_slice %166 {offsets = [0, 0], sizes = [8, 256], strides = [1, 1]} : vector<8x384xf32> to vector<8x256xf32>
    %170 = vector.extract_strided_slice %168 {offsets = [0, 0], sizes = [8, 256], strides = [1, 1]} : vector<8x384xf32> to vector<8x256xf32>
    %171 = arith.addf %169, %170 : vector<8x256xf32>
    %172 = arith.negf %171 : vector<8x256xf32>
    %173 = math.exp %172 : vector<8x256xf32>
    %cst_41 = arith.constant 1.000000e+00 : f32
    %174 = vector.broadcast %cst_41 : f32 to vector<8x256xf32>
    %175 = arith.addf %174, %173 : vector<8x256xf32>
    %176 = arith.divf %174, %175 : vector<8x256xf32>
    %177 = vector.extract_strided_slice %176 {offsets = [0, 0], sizes = [8, 128], strides = [1, 1]} : vector<8x256xf32> to vector<8x128xf32>
    %178 = vector.extract_strided_slice %176 {offsets = [0, 128], sizes = [8, 128], strides = [1, 1]} : vector<8x256xf32> to vector<8x128xf32>
    %179 = vector.extract_strided_slice %168 {offsets = [0, 256], sizes = [8, 128], strides = [1, 1]} : vector<8x384xf32> to vector<8x128xf32>
    %180 = vector.extract_strided_slice %166 {offsets = [0, 256], sizes = [8, 128], strides = [1, 1]} : vector<8x384xf32> to vector<8x128xf32>
    %181 = arith.mulf %177, %179 : vector<8x128xf32>
    %182 = arith.addf %180, %181 : vector<8x128xf32>
    %183 = math.tanh %182 : vector<8x128xf32>
    %184 = arith.subf %160, %183 : vector<8x128xf32>
    %185 = arith.mulf %178, %184 : vector<8x128xf32>
    %186 = arith.addf %183, %185 : vector<8x128xf32>
    %187 = arith.index_cast %164 : i32 to index
    %c0_42 = arith.constant 0 : index
    %188 = vector.load %arg10[%187, %c0_42] : memref<64x128xf32, #tpu.memory_space<vmem>>, vector<8x128xf32>
    tpu.vector_store %arg10[%187, %c0_42], %186 {strides = array<i32>} : memref<64x128xf32, #tpu.memory_space<vmem>>, vector<8x128xf32>,
    %c7_i32 = arith.constant 7 : i32
    %c8_i32_43 = arith.constant 8 : i32
    %189 = arith.muli %c7_i32, %c8_i32_43 : i32
    %190 = tpu.assume_multiple %189, 8 : i32
    %191 = arith.index_cast %190 : i32 to index
    %c0_44 = arith.constant 0 : index
    %192 = vector.load %arg9[%191, %c0_44] : memref<64x384xf32, #tpu.memory_space<vmem>>, vector<8x384xf32>
    %193 = arith.truncf %186 : vector<8x128xf32> to vector<8x128xbf16>
    %cst_45 = arith.constant dense<0.000000e+00> : vector<8x384xf32>
    %194 = tpu.matmul %193, %5, %cst_45 {dimension_numbers = #tpu.dot_dimension_numbers<[1], [0], [0], [1], [0, 0, 1, 1], [], []>} : vector<8x128xbf16>, vector<128x384xbf16>, vector<8x384xf32> -> vector<8x384xf32>
    %195 = vector.extract_strided_slice %192 {offsets = [0, 0], sizes = [8, 256], strides = [1, 1]} : vector<8x384xf32> to vector<8x256xf32>
    %196 = vector.extract_strided_slice %194 {offsets = [0, 0], sizes = [8, 256], strides = [1, 1]} : vector<8x384xf32> to vector<8x256xf32>
    %197 = arith.addf %195, %196 : vector<8x256xf32>
    %198 = arith.negf %197 : vector<8x256xf32>
    %199 = math.exp %198 : vector<8x256xf32>
    %cst_46 = arith.constant 1.000000e+00 : f32
    %200 = vector.broadcast %cst_46 : f32 to vector<8x256xf32>
    %201 = arith.addf %200, %199 : vector<8x256xf32>
    %202 = arith.divf %200, %201 : vector<8x256xf32>
    %203 = vector.extract_strided_slice %202 {offsets = [0, 0], sizes = [8, 128], strides = [1, 1]} : vector<8x256xf32> to vector<8x128xf32>
    %204 = vector.extract_strided_slice %202 {offsets = [0, 128], sizes = [8, 128], strides = [1, 1]} : vector<8x256xf32> to vector<8x128xf32>
    %205 = vector.extract_strided_slice %194 {offsets = [0, 256], sizes = [8, 128], strides = [1, 1]} : vector<8x384xf32> to vector<8x128xf32>
    %206 = vector.extract_strided_slice %192 {offsets = [0, 256], sizes = [8, 128], strides = [1, 1]} : vector<8x384xf32> to vector<8x128xf32>
    %207 = arith.mulf %203, %205 : vector<8x128xf32>
    %208 = arith.addf %206, %207 : vector<8x128xf32>
    %209 = math.tanh %208 : vector<8x128xf32>
    %210 = arith.subf %186, %209 : vector<8x128xf32>
    %211 = arith.mulf %204, %210 : vector<8x128xf32>
    %212 = arith.addf %209, %211 : vector<8x128xf32>
    %213 = arith.index_cast %190 : i32 to index
    %c0_47 = arith.constant 0 : index
    %214 = vector.load %arg10[%213, %c0_47] : memref<64x128xf32, #tpu.memory_space<vmem>>, vector<8x128xf32>
    tpu.vector_store %arg10[%213, %c0_47], %212 {strides = array<i32>} : memref<64x128xf32, #tpu.memory_space<vmem>>, vector<8x128xf32>,
    %c8_i32_48 = arith.constant 8 : i32
    %c0_49 = arith.constant 0 : index
    %c0_50 = arith.constant 0 : index
    %215 = vector.load %arg10[%c0_49, %c0_50] : memref<64x128xf32, #tpu.memory_space<vmem>>, vector<64x128xf32>
    %216 = arith.truncf %215 : vector<64x128xf32> to vector<64x128xbf16>
    %c0_51 = arith.constant 0 : index
    %c0_52 = arith.constant 0 : index
    %c0_53 = arith.constant 0 : index
    %217 = vector.load %arg2[%c0_51, %c0_52, %c0_53] : memref<3x128x384xbf16, #tpu.memory_space<vmem>>, vector<1x128x384xbf16>
    %218 = vector.shape_cast %217 : vector<1x128x384xbf16> to vector<128x384xbf16>
    %cst_54 = arith.constant dense<0.000000e+00> : vector<64x384xf32>
    %219 = tpu.matmul %216, %218, %cst_54 {dimension_numbers = #tpu.dot_dimension_numbers<[1], [0], [0], [1], [0, 0, 1, 1], [], []>} : vector<64x128xbf16>, vector<128x384xbf16>, vector<64x384xf32> -> vector<64x384xf32>
    %c0_55 = arith.constant 0 : index
    %c0_56 = arith.constant 0 : index
    %220 = vector.load %arg9[%c0_55, %c0_56] : memref<64x384xf32, #tpu.memory_space<vmem>>, vector<64x384xf32>
    tpu.vector_store %arg9[%c0_55, %c0_56], %219 {strides = array<i32>} : memref<64x384xf32, #tpu.memory_space<vmem>>, vector<64x384xf32>,
    %c1 = arith.constant 1 : index
    %c0_57 = arith.constant 0 : index
    %c0_58 = arith.constant 0 : index
    %221 = vector.load %arg3[%c1, %c0_57, %c0_58] : memref<4x128x384xbf16, #tpu.memory_space<vmem>>, vector<1x128x384xbf16>
    %222 = vector.shape_cast %221 : vector<1x128x384xbf16> to vector<128x384xbf16>
    %cst_59 = arith.constant 0.000000e+00 : f32
    %223 = vector.broadcast %cst_59 : f32 to vector<8x128xf32>
    %c0_i32_60 = arith.constant 0 : i32
    %c8_i32_61 = arith.constant 8 : i32
    %224 = arith.muli %c0_i32_60, %c8_i32_61 : i32
    %225 = tpu.assume_multiple %224, 8 : i32
    %226 = arith.index_cast %225 : i32 to index
    %c0_62 = arith.constant 0 : index
    %227 = vector.load %arg9[%226, %c0_62] : memref<64x384xf32, #tpu.memory_space<vmem>>, vector<8x384xf32>
    %228 = arith.truncf %223 : vector<8x128xf32> to vector<8x128xbf16>
    %cst_63 = arith.constant dense<0.000000e+00> : vector<8x384xf32>
    %229 = tpu.matmul %228, %222, %cst_63 {dimension_numbers = #tpu.dot_dimension_numbers<[1], [0], [0], [1], [0, 0, 1, 1], [], []>} : vector<8x128xbf16>, vector<128x384xbf16>, vector<8x384xf32> -> vector<8x384xf32>
    %230 = vector.extract_strided_slice %227 {offsets = [0, 0], sizes = [8, 256], strides = [1, 1]} : vector<8x384xf32> to vector<8x256xf32>
    %231 = vector.extract_strided_slice %229 {offsets = [0, 0], sizes = [8, 256], strides = [1, 1]} : vector<8x384xf32> to vector<8x256xf32>
    %232 = arith.addf %230, %231 : vector<8x256xf32>
    %233 = arith.negf %232 : vector<8x256xf32>
    %234 = math.exp %233 : vector<8x256xf32>
    %cst_64 = arith.constant 1.000000e+00 : f32
    %235 = vector.broadcast %cst_64 : f32 to vector<8x256xf32>
    %236 = arith.addf %235, %234 : vector<8x256xf32>
    %237 = arith.divf %235, %236 : vector<8x256xf32>
    %238 = vector.extract_strided_slice %237 {offsets = [0, 0], sizes = [8, 128], strides = [1, 1]} : vector<8x256xf32> to vector<8x128xf32>
    %239 = vector.extract_strided_slice %237 {offsets = [0, 128], sizes = [8, 128], strides = [1, 1]} : vector<8x256xf32> to vector<8x128xf32>
    %240 = vector.extract_strided_slice %229 {offsets = [0, 256], sizes = [8, 128], strides = [1, 1]} : vector<8x384xf32> to vector<8x128xf32>
    %241 = vector.extract_strided_slice %227 {offsets = [0, 256], sizes = [8, 128], strides = [1, 1]} : vector<8x384xf32> to vector<8x128xf32>
    %242 = arith.mulf %238, %240 : vector<8x128xf32>
    %243 = arith.addf %241, %242 : vector<8x128xf32>
    %244 = math.tanh %243 : vector<8x128xf32>
    %245 = arith.subf %223, %244 : vector<8x128xf32>
    %246 = arith.mulf %239, %245 : vector<8x128xf32>
    %247 = arith.addf %244, %246 : vector<8x128xf32>
    %248 = arith.index_cast %225 : i32 to index
    %c0_65 = arith.constant 0 : index
    %249 = vector.load %arg10[%248, %c0_65] : memref<64x128xf32, #tpu.memory_space<vmem>>, vector<8x128xf32>
    tpu.vector_store %arg10[%248, %c0_65], %247 {strides = array<i32>} : memref<64x128xf32, #tpu.memory_space<vmem>>, vector<8x128xf32>,
    %c1_i32_66 = arith.constant 1 : i32
    %c8_i32_67 = arith.constant 8 : i32
    %250 = arith.muli %c1_i32_66, %c8_i32_67 : i32
    %251 = tpu.assume_multiple %250, 8 : i32
    %252 = arith.index_cast %251 : i32 to index
    %c0_68 = arith.constant 0 : index
    %253 = vector.load %arg9[%252, %c0_68] : memref<64x384xf32, #tpu.memory_space<vmem>>, vector<8x384xf32>
    %254 = arith.truncf %247 : vector<8x128xf32> to vector<8x128xbf16>
    %cst_69 = arith.constant dense<0.000000e+00> : vector<8x384xf32>
    %255 = tpu.matmul %254, %222, %cst_69 {dimension_numbers = #tpu.dot_dimension_numbers<[1], [0], [0], [1], [0, 0, 1, 1], [], []>} : vector<8x128xbf16>, vector<128x384xbf16>, vector<8x384xf32> -> vector<8x384xf32>
    %256 = vector.extract_strided_slice %253 {offsets = [0, 0], sizes = [8, 256], strides = [1, 1]} : vector<8x384xf32> to vector<8x256xf32>
    %257 = vector.extract_strided_slice %255 {offsets = [0, 0], sizes = [8, 256], strides = [1, 1]} : vector<8x384xf32> to vector<8x256xf32>
    %258 = arith.addf %256, %257 : vector<8x256xf32>
    %259 = arith.negf %258 : vector<8x256xf32>
    %260 = math.exp %259 : vector<8x256xf32>
    %cst_70 = arith.constant 1.000000e+00 : f32
    %261 = vector.broadcast %cst_70 : f32 to vector<8x256xf32>
    %262 = arith.addf %261, %260 : vector<8x256xf32>
    %263 = arith.divf %261, %262 : vector<8x256xf32>
    %264 = vector.extract_strided_slice %263 {offsets = [0, 0], sizes = [8, 128], strides = [1, 1]} : vector<8x256xf32> to vector<8x128xf32>
    %265 = vector.extract_strided_slice %263 {offsets = [0, 128], sizes = [8, 128], strides = [1, 1]} : vector<8x256xf32> to vector<8x128xf32>
    %266 = vector.extract_strided_slice %255 {offsets = [0, 256], sizes = [8, 128], strides = [1, 1]} : vector<8x384xf32> to vector<8x128xf32>
    %267 = vector.extract_strided_slice %253 {offsets = [0, 256], sizes = [8, 128], strides = [1, 1]} : vector<8x384xf32> to vector<8x128xf32>
    %268 = arith.mulf %264, %266 : vector<8x128xf32>
    %269 = arith.addf %267, %268 : vector<8x128xf32>
    %270 = math.tanh %269 : vector<8x128xf32>
    %271 = arith.subf %247, %270 : vector<8x128xf32>
    %272 = arith.mulf %265, %271 : vector<8x128xf32>
    %273 = arith.addf %270, %272 : vector<8x128xf32>
    %274 = arith.index_cast %251 : i32 to index
    %c0_71 = arith.constant 0 : index
    %275 = vector.load %arg10[%274, %c0_71] : memref<64x128xf32, #tpu.memory_space<vmem>>, vector<8x128xf32>
    tpu.vector_store %arg10[%274, %c0_71], %273 {strides = array<i32>} : memref<64x128xf32, #tpu.memory_space<vmem>>, vector<8x128xf32>,
    %c2_i32_72 = arith.constant 2 : i32
    %c8_i32_73 = arith.constant 8 : i32
    %276 = arith.muli %c2_i32_72, %c8_i32_73 : i32
    %277 = tpu.assume_multiple %276, 8 : i32
    %278 = arith.index_cast %277 : i32 to index
    %c0_74 = arith.constant 0 : index
    %279 = vector.load %arg9[%278, %c0_74] : memref<64x384xf32, #tpu.memory_space<vmem>>, vector<8x384xf32>
    %280 = arith.truncf %273 : vector<8x128xf32> to vector<8x128xbf16>
    %cst_75 = arith.constant dense<0.000000e+00> : vector<8x384xf32>
    %281 = tpu.matmul %280, %222, %cst_75 {dimension_numbers = #tpu.dot_dimension_numbers<[1], [0], [0], [1], [0, 0, 1, 1], [], []>} : vector<8x128xbf16>, vector<128x384xbf16>, vector<8x384xf32> -> vector<8x384xf32>
    %282 = vector.extract_strided_slice %279 {offsets = [0, 0], sizes = [8, 256], strides = [1, 1]} : vector<8x384xf32> to vector<8x256xf32>
    %283 = vector.extract_strided_slice %281 {offsets = [0, 0], sizes = [8, 256], strides = [1, 1]} : vector<8x384xf32> to vector<8x256xf32>
    %284 = arith.addf %282, %283 : vector<8x256xf32>
    %285 = arith.negf %284 : vector<8x256xf32>
    %286 = math.exp %285 : vector<8x256xf32>
    %cst_76 = arith.constant 1.000000e+00 : f32
    %287 = vector.broadcast %cst_76 : f32 to vector<8x256xf32>
    %288 = arith.addf %287, %286 : vector<8x256xf32>
    %289 = arith.divf %287, %288 : vector<8x256xf32>
    %290 = vector.extract_strided_slice %289 {offsets = [0, 0], sizes = [8, 128], strides = [1, 1]} : vector<8x256xf32> to vector<8x128xf32>
    %291 = vector.extract_strided_slice %289 {offsets = [0, 128], sizes = [8, 128], strides = [1, 1]} : vector<8x256xf32> to vector<8x128xf32>
    %292 = vector.extract_strided_slice %281 {offsets = [0, 256], sizes = [8, 128], strides = [1, 1]} : vector<8x384xf32> to vector<8x128xf32>
    %293 = vector.extract_strided_slice %279 {offsets = [0, 256], sizes = [8, 128], strides = [1, 1]} : vector<8x384xf32> to vector<8x128xf32>
    %294 = arith.mulf %290, %292 : vector<8x128xf32>
    %295 = arith.addf %293, %294 : vector<8x128xf32>
    %296 = math.tanh %295 : vector<8x128xf32>
    %297 = arith.subf %273, %296 : vector<8x128xf32>
    %298 = arith.mulf %291, %297 : vector<8x128xf32>
    %299 = arith.addf %296, %298 : vector<8x128xf32>
    %300 = arith.index_cast %277 : i32 to index
    %c0_77 = arith.constant 0 : index
    %301 = vector.load %arg10[%300, %c0_77] : memref<64x128xf32, #tpu.memory_space<vmem>>, vector<8x128xf32>
    tpu.vector_store %arg10[%300, %c0_77], %299 {strides = array<i32>} : memref<64x128xf32, #tpu.memory_space<vmem>>, vector<8x128xf32>,
    %c3_i32_78 = arith.constant 3 : i32
    %c8_i32_79 = arith.constant 8 : i32
    %302 = arith.muli %c3_i32_78, %c8_i32_79 : i32
    %303 = tpu.assume_multiple %302, 8 : i32
    %304 = arith.index_cast %303 : i32 to index
    %c0_80 = arith.constant 0 : index
    %305 = vector.load %arg9[%304, %c0_80] : memref<64x384xf32, #tpu.memory_space<vmem>>, vector<8x384xf32>
    %306 = arith.truncf %299 : vector<8x128xf32> to vector<8x128xbf16>
    %cst_81 = arith.constant dense<0.000000e+00> : vector<8x384xf32>
    %307 = tpu.matmul %306, %222, %cst_81 {dimension_numbers = #tpu.dot_dimension_numbers<[1], [0], [0], [1], [0, 0, 1, 1], [], []>} : vector<8x128xbf16>, vector<128x384xbf16>, vector<8x384xf32> -> vector<8x384xf32>
    %308 = vector.extract_strided_slice %305 {offsets = [0, 0], sizes = [8, 256], strides = [1, 1]} : vector<8x384xf32> to vector<8x256xf32>
    %309 = vector.extract_strided_slice %307 {offsets = [0, 0], sizes = [8, 256], strides = [1, 1]} : vector<8x384xf32> to vector<8x256xf32>
    %310 = arith.addf %308, %309 : vector<8x256xf32>
    %311 = arith.negf %310 : vector<8x256xf32>
    %312 = math.exp %311 : vector<8x256xf32>
    %cst_82 = arith.constant 1.000000e+00 : f32
    %313 = vector.broadcast %cst_82 : f32 to vector<8x256xf32>
    %314 = arith.addf %313, %312 : vector<8x256xf32>
    %315 = arith.divf %313, %314 : vector<8x256xf32>
    %316 = vector.extract_strided_slice %315 {offsets = [0, 0], sizes = [8, 128], strides = [1, 1]} : vector<8x256xf32> to vector<8x128xf32>
    %317 = vector.extract_strided_slice %315 {offsets = [0, 128], sizes = [8, 128], strides = [1, 1]} : vector<8x256xf32> to vector<8x128xf32>
    %318 = vector.extract_strided_slice %307 {offsets = [0, 256], sizes = [8, 128], strides = [1, 1]} : vector<8x384xf32> to vector<8x128xf32>
    %319 = vector.extract_strided_slice %305 {offsets = [0, 256], sizes = [8, 128], strides = [1, 1]} : vector<8x384xf32> to vector<8x128xf32>
    %320 = arith.mulf %316, %318 : vector<8x128xf32>
    %321 = arith.addf %319, %320 : vector<8x128xf32>
    %322 = math.tanh %321 : vector<8x128xf32>
    %323 = arith.subf %299, %322 : vector<8x128xf32>
    %324 = arith.mulf %317, %323 : vector<8x128xf32>
    %325 = arith.addf %322, %324 : vector<8x128xf32>
    %326 = arith.index_cast %303 : i32 to index
    %c0_83 = arith.constant 0 : index
    %327 = vector.load %arg10[%326, %c0_83] : memref<64x128xf32, #tpu.memory_space<vmem>>, vector<8x128xf32>
    tpu.vector_store %arg10[%326, %c0_83], %325 {strides = array<i32>} : memref<64x128xf32, #tpu.memory_space<vmem>>, vector<8x128xf32>,
    %c4_i32_84 = arith.constant 4 : i32
    %c8_i32_85 = arith.constant 8 : i32
    %328 = arith.muli %c4_i32_84, %c8_i32_85 : i32
    %329 = tpu.assume_multiple %328, 8 : i32
    %330 = arith.index_cast %329 : i32 to index
    %c0_86 = arith.constant 0 : index
    %331 = vector.load %arg9[%330, %c0_86] : memref<64x384xf32, #tpu.memory_space<vmem>>, vector<8x384xf32>
    %332 = arith.truncf %325 : vector<8x128xf32> to vector<8x128xbf16>
    %cst_87 = arith.constant dense<0.000000e+00> : vector<8x384xf32>
    %333 = tpu.matmul %332, %222, %cst_87 {dimension_numbers = #tpu.dot_dimension_numbers<[1], [0], [0], [1], [0, 0, 1, 1], [], []>} : vector<8x128xbf16>, vector<128x384xbf16>, vector<8x384xf32> -> vector<8x384xf32>
    %334 = vector.extract_strided_slice %331 {offsets = [0, 0], sizes = [8, 256], strides = [1, 1]} : vector<8x384xf32> to vector<8x256xf32>
    %335 = vector.extract_strided_slice %333 {offsets = [0, 0], sizes = [8, 256], strides = [1, 1]} : vector<8x384xf32> to vector<8x256xf32>
    %336 = arith.addf %334, %335 : vector<8x256xf32>
    %337 = arith.negf %336 : vector<8x256xf32>
    %338 = math.exp %337 : vector<8x256xf32>
    %cst_88 = arith.constant 1.000000e+00 : f32
    %339 = vector.broadcast %cst_88 : f32 to vector<8x256xf32>
    %340 = arith.addf %339, %338 : vector<8x256xf32>
    %341 = arith.divf %339, %340 : vector<8x256xf32>
    %342 = vector.extract_strided_slice %341 {offsets = [0, 0], sizes = [8, 128], strides = [1, 1]} : vector<8x256xf32> to vector<8x128xf32>
    %343 = vector.extract_strided_slice %341 {offsets = [0, 128], sizes = [8, 128], strides = [1, 1]} : vector<8x256xf32> to vector<8x128xf32>
    %344 = vector.extract_strided_slice %333 {offsets = [0, 256], sizes = [8, 128], strides = [1, 1]} : vector<8x384xf32> to vector<8x128xf32>
    %345 = vector.extract_strided_slice %331 {offsets = [0, 256], sizes = [8, 128], strides = [1, 1]} : vector<8x384xf32> to vector<8x128xf32>
    %346 = arith.mulf %342, %344 : vector<8x128xf32>
    %347 = arith.addf %345, %346 : vector<8x128xf32>
    %348 = math.tanh %347 : vector<8x128xf32>
    %349 = arith.subf %325, %348 : vector<8x128xf32>
    %350 = arith.mulf %343, %349 : vector<8x128xf32>
    %351 = arith.addf %348, %350 : vector<8x128xf32>
    %352 = arith.index_cast %329 : i32 to index
    %c0_89 = arith.constant 0 : index
    %353 = vector.load %arg10[%352, %c0_89] : memref<64x128xf32, #tpu.memory_space<vmem>>, vector<8x128xf32>
    tpu.vector_store %arg10[%352, %c0_89], %351 {strides = array<i32>} : memref<64x128xf32, #tpu.memory_space<vmem>>, vector<8x128xf32>,
    %c5_i32_90 = arith.constant 5 : i32
    %c8_i32_91 = arith.constant 8 : i32
    %354 = arith.muli %c5_i32_90, %c8_i32_91 : i32
    %355 = tpu.assume_multiple %354, 8 : i32
    %356 = arith.index_cast %355 : i32 to index
    %c0_92 = arith.constant 0 : index
    %357 = vector.load %arg9[%356, %c0_92] : memref<64x384xf32, #tpu.memory_space<vmem>>, vector<8x384xf32>
    %358 = arith.truncf %351 : vector<8x128xf32> to vector<8x128xbf16>
    %cst_93 = arith.constant dense<0.000000e+00> : vector<8x384xf32>
    %359 = tpu.matmul %358, %222, %cst_93 {dimension_numbers = #tpu.dot_dimension_numbers<[1], [0], [0], [1], [0, 0, 1, 1], [], []>} : vector<8x128xbf16>, vector<128x384xbf16>, vector<8x384xf32> -> vector<8x384xf32>
    %360 = vector.extract_strided_slice %357 {offsets = [0, 0], sizes = [8, 256], strides = [1, 1]} : vector<8x384xf32> to vector<8x256xf32>
    %361 = vector.extract_strided_slice %359 {offsets = [0, 0], sizes = [8, 256], strides = [1, 1]} : vector<8x384xf32> to vector<8x256xf32>
    %362 = arith.addf %360, %361 : vector<8x256xf32>
    %363 = arith.negf %362 : vector<8x256xf32>
    %364 = math.exp %363 : vector<8x256xf32>
    %cst_94 = arith.constant 1.000000e+00 : f32
    %365 = vector.broadcast %cst_94 : f32 to vector<8x256xf32>
    %366 = arith.addf %365, %364 : vector<8x256xf32>
    %367 = arith.divf %365, %366 : vector<8x256xf32>
    %368 = vector.extract_strided_slice %367 {offsets = [0, 0], sizes = [8, 128], strides = [1, 1]} : vector<8x256xf32> to vector<8x128xf32>
    %369 = vector.extract_strided_slice %367 {offsets = [0, 128], sizes = [8, 128], strides = [1, 1]} : vector<8x256xf32> to vector<8x128xf32>
    %370 = vector.extract_strided_slice %359 {offsets = [0, 256], sizes = [8, 128], strides = [1, 1]} : vector<8x384xf32> to vector<8x128xf32>
    %371 = vector.extract_strided_slice %357 {offsets = [0, 256], sizes = [8, 128], strides = [1, 1]} : vector<8x384xf32> to vector<8x128xf32>
    %372 = arith.mulf %368, %370 : vector<8x128xf32>
    %373 = arith.addf %371, %372 : vector<8x128xf32>
    %374 = math.tanh %373 : vector<8x128xf32>
    %375 = arith.subf %351, %374 : vector<8x128xf32>
    %376 = arith.mulf %369, %375 : vector<8x128xf32>
    %377 = arith.addf %374, %376 : vector<8x128xf32>
    %378 = arith.index_cast %355 : i32 to index
    %c0_95 = arith.constant 0 : index
    %379 = vector.load %arg10[%378, %c0_95] : memref<64x128xf32, #tpu.memory_space<vmem>>, vector<8x128xf32>
    tpu.vector_store %arg10[%378, %c0_95], %377 {strides = array<i32>} : memref<64x128xf32, #tpu.memory_space<vmem>>, vector<8x128xf32>,
    %c6_i32_96 = arith.constant 6 : i32
    %c8_i32_97 = arith.constant 8 : i32
    %380 = arith.muli %c6_i32_96, %c8_i32_97 : i32
    %381 = tpu.assume_multiple %380, 8 : i32
    %382 = arith.index_cast %381 : i32 to index
    %c0_98 = arith.constant 0 : index
    %383 = vector.load %arg9[%382, %c0_98] : memref<64x384xf32, #tpu.memory_space<vmem>>, vector<8x384xf32>
    %384 = arith.truncf %377 : vector<8x128xf32> to vector<8x128xbf16>
    %cst_99 = arith.constant dense<0.000000e+00> : vector<8x384xf32>
    %385 = tpu.matmul %384, %222, %cst_99 {dimension_numbers = #tpu.dot_dimension_numbers<[1], [0], [0], [1], [0, 0, 1, 1], [], []>} : vector<8x128xbf16>, vector<128x384xbf16>, vector<8x384xf32> -> vector<8x384xf32>
    %386 = vector.extract_strided_slice %383 {offsets = [0, 0], sizes = [8, 256], strides = [1, 1]} : vector<8x384xf32> to vector<8x256xf32>
    %387 = vector.extract_strided_slice %385 {offsets = [0, 0], sizes = [8, 256], strides = [1, 1]} : vector<8x384xf32> to vector<8x256xf32>
    %388 = arith.addf %386, %387 : vector<8x256xf32>
    %389 = arith.negf %388 : vector<8x256xf32>
    %390 = math.exp %389 : vector<8x256xf32>
    %cst_100 = arith.constant 1.000000e+00 : f32
    %391 = vector.broadcast %cst_100 : f32 to vector<8x256xf32>
    %392 = arith.addf %391, %390 : vector<8x256xf32>
    %393 = arith.divf %391, %392 : vector<8x256xf32>
    %394 = vector.extract_strided_slice %393 {offsets = [0, 0], sizes = [8, 128], strides = [1, 1]} : vector<8x256xf32> to vector<8x128xf32>
    %395 = vector.extract_strided_slice %393 {offsets = [0, 128], sizes = [8, 128], strides = [1, 1]} : vector<8x256xf32> to vector<8x128xf32>
    %396 = vector.extract_strided_slice %385 {offsets = [0, 256], sizes = [8, 128], strides = [1, 1]} : vector<8x384xf32> to vector<8x128xf32>
    %397 = vector.extract_strided_slice %383 {offsets = [0, 256], sizes = [8, 128], strides = [1, 1]} : vector<8x384xf32> to vector<8x128xf32>
    %398 = arith.mulf %394, %396 : vector<8x128xf32>
    %399 = arith.addf %397, %398 : vector<8x128xf32>
    %400 = math.tanh %399 : vector<8x128xf32>
    %401 = arith.subf %377, %400 : vector<8x128xf32>
    %402 = arith.mulf %395, %401 : vector<8x128xf32>
    %403 = arith.addf %400, %402 : vector<8x128xf32>
    %404 = arith.index_cast %381 : i32 to index
    %c0_101 = arith.constant 0 : index
    %405 = vector.load %arg10[%404, %c0_101] : memref<64x128xf32, #tpu.memory_space<vmem>>, vector<8x128xf32>
    tpu.vector_store %arg10[%404, %c0_101], %403 {strides = array<i32>} : memref<64x128xf32, #tpu.memory_space<vmem>>, vector<8x128xf32>,
    %c7_i32_102 = arith.constant 7 : i32
    %c8_i32_103 = arith.constant 8 : i32
    %406 = arith.muli %c7_i32_102, %c8_i32_103 : i32
    %407 = tpu.assume_multiple %406, 8 : i32
    %408 = arith.index_cast %407 : i32 to index
    %c0_104 = arith.constant 0 : index
    %409 = vector.load %arg9[%408, %c0_104] : memref<64x384xf32, #tpu.memory_space<vmem>>, vector<8x384xf32>
    %410 = arith.truncf %403 : vector<8x128xf32> to vector<8x128xbf16>
    %cst_105 = arith.constant dense<0.000000e+00> : vector<8x384xf32>
    %411 = tpu.matmul %410, %222, %cst_105 {dimension_numbers = #tpu.dot_dimension_numbers<[1], [0], [0], [1], [0, 0, 1, 1], [], []>} : vector<8x128xbf16>, vector<128x384xbf16>, vector<8x384xf32> -> vector<8x384xf32>
    %412 = vector.extract_strided_slice %409 {offsets = [0, 0], sizes = [8, 256], strides = [1, 1]} : vector<8x384xf32> to vector<8x256xf32>
    %413 = vector.extract_strided_slice %411 {offsets = [0, 0], sizes = [8, 256], strides = [1, 1]} : vector<8x384xf32> to vector<8x256xf32>
    %414 = arith.addf %412, %413 : vector<8x256xf32>
    %415 = arith.negf %414 : vector<8x256xf32>
    %416 = math.exp %415 : vector<8x256xf32>
    %cst_106 = arith.constant 1.000000e+00 : f32
    %417 = vector.broadcast %cst_106 : f32 to vector<8x256xf32>
    %418 = arith.addf %417, %416 : vector<8x256xf32>
    %419 = arith.divf %417, %418 : vector<8x256xf32>
    %420 = vector.extract_strided_slice %419 {offsets = [0, 0], sizes = [8, 128], strides = [1, 1]} : vector<8x256xf32> to vector<8x128xf32>
    %421 = vector.extract_strided_slice %419 {offsets = [0, 128], sizes = [8, 128], strides = [1, 1]} : vector<8x256xf32> to vector<8x128xf32>
    %422 = vector.extract_strided_slice %411 {offsets = [0, 256], sizes = [8, 128], strides = [1, 1]} : vector<8x384xf32> to vector<8x128xf32>
    %423 = vector.extract_strided_slice %409 {offsets = [0, 256], sizes = [8, 128], strides = [1, 1]} : vector<8x384xf32> to vector<8x128xf32>
    %424 = arith.mulf %420, %422 : vector<8x128xf32>
    %425 = arith.addf %423, %424 : vector<8x128xf32>
    %426 = math.tanh %425 : vector<8x128xf32>
    %427 = arith.subf %403, %426 : vector<8x128xf32>
    %428 = arith.mulf %421, %427 : vector<8x128xf32>
    %429 = arith.addf %426, %428 : vector<8x128xf32>
    %430 = arith.index_cast %407 : i32 to index
    %c0_107 = arith.constant 0 : index
    %431 = vector.load %arg10[%430, %c0_107] : memref<64x128xf32, #tpu.memory_space<vmem>>, vector<8x128xf32>
    tpu.vector_store %arg10[%430, %c0_107], %429 {strides = array<i32>} : memref<64x128xf32, #tpu.memory_space<vmem>>, vector<8x128xf32>,
    %c8_i32_108 = arith.constant 8 : i32
    %c0_109 = arith.constant 0 : index
    %c0_110 = arith.constant 0 : index
    %432 = vector.load %arg10[%c0_109, %c0_110] : memref<64x128xf32, #tpu.memory_space<vmem>>, vector<64x128xf32>
    %433 = arith.truncf %432 : vector<64x128xf32> to vector<64x128xbf16>
    %c1_111 = arith.constant 1 : index
    %c0_112 = arith.constant 0 : index
    %c0_113 = arith.constant 0 : index
    %434 = vector.load %arg2[%c1_111, %c0_112, %c0_113] : memref<3x128x384xbf16, #tpu.memory_space<vmem>>, vector<1x128x384xbf16>
    %435 = vector.shape_cast %434 : vector<1x128x384xbf16> to vector<128x384xbf16>
    %cst_114 = arith.constant dense<0.000000e+00> : vector<64x384xf32>
    %436 = tpu.matmul %433, %435, %cst_114 {dimension_numbers = #tpu.dot_dimension_numbers<[1], [0], [0], [1], [0, 0, 1, 1], [], []>} : vector<64x128xbf16>, vector<128x384xbf16>, vector<64x384xf32> -> vector<64x384xf32>
    %c0_115 = arith.constant 0 : index
    %c0_116 = arith.constant 0 : index
    %437 = vector.load %arg9[%c0_115, %c0_116] : memref<64x384xf32, #tpu.memory_space<vmem>>, vector<64x384xf32>
    tpu.vector_store %arg9[%c0_115, %c0_116], %436 {strides = array<i32>} : memref<64x384xf32, #tpu.memory_space<vmem>>, vector<64x384xf32>,
    %c2 = arith.constant 2 : index
    %c0_117 = arith.constant 0 : index
    %c0_118 = arith.constant 0 : index
    %438 = vector.load %arg3[%c2, %c0_117, %c0_118] : memref<4x128x384xbf16, #tpu.memory_space<vmem>>, vector<1x128x384xbf16>
    %439 = vector.shape_cast %438 : vector<1x128x384xbf16> to vector<128x384xbf16>
    %cst_119 = arith.constant 0.000000e+00 : f32
    %440 = vector.broadcast %cst_119 : f32 to vector<8x128xf32>
    %c0_i32_120 = arith.constant 0 : i32
    %c8_i32_121 = arith.constant 8 : i32
    %441 = arith.muli %c0_i32_120, %c8_i32_121 : i32
    %442 = tpu.assume_multiple %441, 8 : i32
    %443 = arith.index_cast %442 : i32 to index
    %c0_122 = arith.constant 0 : index
    %444 = vector.load %arg9[%443, %c0_122] : memref<64x384xf32, #tpu.memory_space<vmem>>, vector<8x384xf32>
    %445 = arith.truncf %440 : vector<8x128xf32> to vector<8x128xbf16>
    %cst_123 = arith.constant dense<0.000000e+00> : vector<8x384xf32>
    %446 = tpu.matmul %445, %439, %cst_123 {dimension_numbers = #tpu.dot_dimension_numbers<[1], [0], [0], [1], [0, 0, 1, 1], [], []>} : vector<8x128xbf16>, vector<128x384xbf16>, vector<8x384xf32> -> vector<8x384xf32>
    %447 = vector.extract_strided_slice %444 {offsets = [0, 0], sizes = [8, 256], strides = [1, 1]} : vector<8x384xf32> to vector<8x256xf32>
    %448 = vector.extract_strided_slice %446 {offsets = [0, 0], sizes = [8, 256], strides = [1, 1]} : vector<8x384xf32> to vector<8x256xf32>
    %449 = arith.addf %447, %448 : vector<8x256xf32>
    %450 = arith.negf %449 : vector<8x256xf32>
    %451 = math.exp %450 : vector<8x256xf32>
    %cst_124 = arith.constant 1.000000e+00 : f32
    %452 = vector.broadcast %cst_124 : f32 to vector<8x256xf32>
    %453 = arith.addf %452, %451 : vector<8x256xf32>
    %454 = arith.divf %452, %453 : vector<8x256xf32>
    %455 = vector.extract_strided_slice %454 {offsets = [0, 0], sizes = [8, 128], strides = [1, 1]} : vector<8x256xf32> to vector<8x128xf32>
    %456 = vector.extract_strided_slice %454 {offsets = [0, 128], sizes = [8, 128], strides = [1, 1]} : vector<8x256xf32> to vector<8x128xf32>
    %457 = vector.extract_strided_slice %446 {offsets = [0, 256], sizes = [8, 128], strides = [1, 1]} : vector<8x384xf32> to vector<8x128xf32>
    %458 = vector.extract_strided_slice %444 {offsets = [0, 256], sizes = [8, 128], strides = [1, 1]} : vector<8x384xf32> to vector<8x128xf32>
    %459 = arith.mulf %455, %457 : vector<8x128xf32>
    %460 = arith.addf %458, %459 : vector<8x128xf32>
    %461 = math.tanh %460 : vector<8x128xf32>
    %462 = arith.subf %440, %461 : vector<8x128xf32>
    %463 = arith.mulf %456, %462 : vector<8x128xf32>
    %464 = arith.addf %461, %463 : vector<8x128xf32>
    %465 = arith.index_cast %442 : i32 to index
    %c0_125 = arith.constant 0 : index
    %466 = vector.load %arg10[%465, %c0_125] : memref<64x128xf32, #tpu.memory_space<vmem>>, vector<8x128xf32>
    tpu.vector_store %arg10[%465, %c0_125], %464 {strides = array<i32>} : memref<64x128xf32, #tpu.memory_space<vmem>>, vector<8x128xf32>,
    %c1_i32_126 = arith.constant 1 : i32
    %c8_i32_127 = arith.constant 8 : i32
    %467 = arith.muli %c1_i32_126, %c8_i32_127 : i32
    %468 = tpu.assume_multiple %467, 8 : i32
    %469 = arith.index_cast %468 : i32 to index
    %c0_128 = arith.constant 0 : index
    %470 = vector.load %arg9[%469, %c0_128] : memref<64x384xf32, #tpu.memory_space<vmem>>, vector<8x384xf32>
    %471 = arith.truncf %464 : vector<8x128xf32> to vector<8x128xbf16>
    %cst_129 = arith.constant dense<0.000000e+00> : vector<8x384xf32>
    %472 = tpu.matmul %471, %439, %cst_129 {dimension_numbers = #tpu.dot_dimension_numbers<[1], [0], [0], [1], [0, 0, 1, 1], [], []>} : vector<8x128xbf16>, vector<128x384xbf16>, vector<8x384xf32> -> vector<8x384xf32>
    %473 = vector.extract_strided_slice %470 {offsets = [0, 0], sizes = [8, 256], strides = [1, 1]} : vector<8x384xf32> to vector<8x256xf32>
    %474 = vector.extract_strided_slice %472 {offsets = [0, 0], sizes = [8, 256], strides = [1, 1]} : vector<8x384xf32> to vector<8x256xf32>
    %475 = arith.addf %473, %474 : vector<8x256xf32>
    %476 = arith.negf %475 : vector<8x256xf32>
    %477 = math.exp %476 : vector<8x256xf32>
    %cst_130 = arith.constant 1.000000e+00 : f32
    %478 = vector.broadcast %cst_130 : f32 to vector<8x256xf32>
    %479 = arith.addf %478, %477 : vector<8x256xf32>
    %480 = arith.divf %478, %479 : vector<8x256xf32>
    %481 = vector.extract_strided_slice %480 {offsets = [0, 0], sizes = [8, 128], strides = [1, 1]} : vector<8x256xf32> to vector<8x128xf32>
    %482 = vector.extract_strided_slice %480 {offsets = [0, 128], sizes = [8, 128], strides = [1, 1]} : vector<8x256xf32> to vector<8x128xf32>
    %483 = vector.extract_strided_slice %472 {offsets = [0, 256], sizes = [8, 128], strides = [1, 1]} : vector<8x384xf32> to vector<8x128xf32>
    %484 = vector.extract_strided_slice %470 {offsets = [0, 256], sizes = [8, 128], strides = [1, 1]} : vector<8x384xf32> to vector<8x128xf32>
    %485 = arith.mulf %481, %483 : vector<8x128xf32>
    %486 = arith.addf %484, %485 : vector<8x128xf32>
    %487 = math.tanh %486 : vector<8x128xf32>
    %488 = arith.subf %464, %487 : vector<8x128xf32>
    %489 = arith.mulf %482, %488 : vector<8x128xf32>
    %490 = arith.addf %487, %489 : vector<8x128xf32>
    %491 = arith.index_cast %468 : i32 to index
    %c0_131 = arith.constant 0 : index
    %492 = vector.load %arg10[%491, %c0_131] : memref<64x128xf32, #tpu.memory_space<vmem>>, vector<8x128xf32>
    tpu.vector_store %arg10[%491, %c0_131], %490 {strides = array<i32>} : memref<64x128xf32, #tpu.memory_space<vmem>>, vector<8x128xf32>,
    %c2_i32_132 = arith.constant 2 : i32
    %c8_i32_133 = arith.constant 8 : i32
    %493 = arith.muli %c2_i32_132, %c8_i32_133 : i32
    %494 = tpu.assume_multiple %493, 8 : i32
    %495 = arith.index_cast %494 : i32 to index
    %c0_134 = arith.constant 0 : index
    %496 = vector.load %arg9[%495, %c0_134] : memref<64x384xf32, #tpu.memory_space<vmem>>, vector<8x384xf32>
    %497 = arith.truncf %490 : vector<8x128xf32> to vector<8x128xbf16>
    %cst_135 = arith.constant dense<0.000000e+00> : vector<8x384xf32>
    %498 = tpu.matmul %497, %439, %cst_135 {dimension_numbers = #tpu.dot_dimension_numbers<[1], [0], [0], [1], [0, 0, 1, 1], [], []>} : vector<8x128xbf16>, vector<128x384xbf16>, vector<8x384xf32> -> vector<8x384xf32>
    %499 = vector.extract_strided_slice %496 {offsets = [0, 0], sizes = [8, 256], strides = [1, 1]} : vector<8x384xf32> to vector<8x256xf32>
    %500 = vector.extract_strided_slice %498 {offsets = [0, 0], sizes = [8, 256], strides = [1, 1]} : vector<8x384xf32> to vector<8x256xf32>
    %501 = arith.addf %499, %500 : vector<8x256xf32>
    %502 = arith.negf %501 : vector<8x256xf32>
    %503 = math.exp %502 : vector<8x256xf32>
    %cst_136 = arith.constant 1.000000e+00 : f32
    %504 = vector.broadcast %cst_136 : f32 to vector<8x256xf32>
    %505 = arith.addf %504, %503 : vector<8x256xf32>
    %506 = arith.divf %504, %505 : vector<8x256xf32>
    %507 = vector.extract_strided_slice %506 {offsets = [0, 0], sizes = [8, 128], strides = [1, 1]} : vector<8x256xf32> to vector<8x128xf32>
    %508 = vector.extract_strided_slice %506 {offsets = [0, 128], sizes = [8, 128], strides = [1, 1]} : vector<8x256xf32> to vector<8x128xf32>
    %509 = vector.extract_strided_slice %498 {offsets = [0, 256], sizes = [8, 128], strides = [1, 1]} : vector<8x384xf32> to vector<8x128xf32>
    %510 = vector.extract_strided_slice %496 {offsets = [0, 256], sizes = [8, 128], strides = [1, 1]} : vector<8x384xf32> to vector<8x128xf32>
    %511 = arith.mulf %507, %509 : vector<8x128xf32>
    %512 = arith.addf %510, %511 : vector<8x128xf32>
    %513 = math.tanh %512 : vector<8x128xf32>
    %514 = arith.subf %490, %513 : vector<8x128xf32>
    %515 = arith.mulf %508, %514 : vector<8x128xf32>
    %516 = arith.addf %513, %515 : vector<8x128xf32>
    %517 = arith.index_cast %494 : i32 to index
    %c0_137 = arith.constant 0 : index
    %518 = vector.load %arg10[%517, %c0_137] : memref<64x128xf32, #tpu.memory_space<vmem>>, vector<8x128xf32>
    tpu.vector_store %arg10[%517, %c0_137], %516 {strides = array<i32>} : memref<64x128xf32, #tpu.memory_space<vmem>>, vector<8x128xf32>,
    %c3_i32_138 = arith.constant 3 : i32
    %c8_i32_139 = arith.constant 8 : i32
    %519 = arith.muli %c3_i32_138, %c8_i32_139 : i32
    %520 = tpu.assume_multiple %519, 8 : i32
    %521 = arith.index_cast %520 : i32 to index
    %c0_140 = arith.constant 0 : index
    %522 = vector.load %arg9[%521, %c0_140] : memref<64x384xf32, #tpu.memory_space<vmem>>, vector<8x384xf32>
    %523 = arith.truncf %516 : vector<8x128xf32> to vector<8x128xbf16>
    %cst_141 = arith.constant dense<0.000000e+00> : vector<8x384xf32>
    %524 = tpu.matmul %523, %439, %cst_141 {dimension_numbers = #tpu.dot_dimension_numbers<[1], [0], [0], [1], [0, 0, 1, 1], [], []>} : vector<8x128xbf16>, vector<128x384xbf16>, vector<8x384xf32> -> vector<8x384xf32>
    %525 = vector.extract_strided_slice %522 {offsets = [0, 0], sizes = [8, 256], strides = [1, 1]} : vector<8x384xf32> to vector<8x256xf32>
    %526 = vector.extract_strided_slice %524 {offsets = [0, 0], sizes = [8, 256], strides = [1, 1]} : vector<8x384xf32> to vector<8x256xf32>
    %527 = arith.addf %525, %526 : vector<8x256xf32>
    %528 = arith.negf %527 : vector<8x256xf32>
    %529 = math.exp %528 : vector<8x256xf32>
    %cst_142 = arith.constant 1.000000e+00 : f32
    %530 = vector.broadcast %cst_142 : f32 to vector<8x256xf32>
    %531 = arith.addf %530, %529 : vector<8x256xf32>
    %532 = arith.divf %530, %531 : vector<8x256xf32>
    %533 = vector.extract_strided_slice %532 {offsets = [0, 0], sizes = [8, 128], strides = [1, 1]} : vector<8x256xf32> to vector<8x128xf32>
    %534 = vector.extract_strided_slice %532 {offsets = [0, 128], sizes = [8, 128], strides = [1, 1]} : vector<8x256xf32> to vector<8x128xf32>
    %535 = vector.extract_strided_slice %524 {offsets = [0, 256], sizes = [8, 128], strides = [1, 1]} : vector<8x384xf32> to vector<8x128xf32>
    %536 = vector.extract_strided_slice %522 {offsets = [0, 256], sizes = [8, 128], strides = [1, 1]} : vector<8x384xf32> to vector<8x128xf32>
    %537 = arith.mulf %533, %535 : vector<8x128xf32>
    %538 = arith.addf %536, %537 : vector<8x128xf32>
    %539 = math.tanh %538 : vector<8x128xf32>
    %540 = arith.subf %516, %539 : vector<8x128xf32>
    %541 = arith.mulf %534, %540 : vector<8x128xf32>
    %542 = arith.addf %539, %541 : vector<8x128xf32>
    %543 = arith.index_cast %520 : i32 to index
    %c0_143 = arith.constant 0 : index
    %544 = vector.load %arg10[%543, %c0_143] : memref<64x128xf32, #tpu.memory_space<vmem>>, vector<8x128xf32>
    tpu.vector_store %arg10[%543, %c0_143], %542 {strides = array<i32>} : memref<64x128xf32, #tpu.memory_space<vmem>>, vector<8x128xf32>,
    %c4_i32_144 = arith.constant 4 : i32
    %c8_i32_145 = arith.constant 8 : i32
    %545 = arith.muli %c4_i32_144, %c8_i32_145 : i32
    %546 = tpu.assume_multiple %545, 8 : i32
    %547 = arith.index_cast %546 : i32 to index
    %c0_146 = arith.constant 0 : index
    %548 = vector.load %arg9[%547, %c0_146] : memref<64x384xf32, #tpu.memory_space<vmem>>, vector<8x384xf32>
    %549 = arith.truncf %542 : vector<8x128xf32> to vector<8x128xbf16>
    %cst_147 = arith.constant dense<0.000000e+00> : vector<8x384xf32>
    %550 = tpu.matmul %549, %439, %cst_147 {dimension_numbers = #tpu.dot_dimension_numbers<[1], [0], [0], [1], [0, 0, 1, 1], [], []>} : vector<8x128xbf16>, vector<128x384xbf16>, vector<8x384xf32> -> vector<8x384xf32>
    %551 = vector.extract_strided_slice %548 {offsets = [0, 0], sizes = [8, 256], strides = [1, 1]} : vector<8x384xf32> to vector<8x256xf32>
    %552 = vector.extract_strided_slice %550 {offsets = [0, 0], sizes = [8, 256], strides = [1, 1]} : vector<8x384xf32> to vector<8x256xf32>
    %553 = arith.addf %551, %552 : vector<8x256xf32>
    %554 = arith.negf %553 : vector<8x256xf32>
    %555 = math.exp %554 : vector<8x256xf32>
    %cst_148 = arith.constant 1.000000e+00 : f32
    %556 = vector.broadcast %cst_148 : f32 to vector<8x256xf32>
    %557 = arith.addf %556, %555 : vector<8x256xf32>
    %558 = arith.divf %556, %557 : vector<8x256xf32>
    %559 = vector.extract_strided_slice %558 {offsets = [0, 0], sizes = [8, 128], strides = [1, 1]} : vector<8x256xf32> to vector<8x128xf32>
    %560 = vector.extract_strided_slice %558 {offsets = [0, 128], sizes = [8, 128], strides = [1, 1]} : vector<8x256xf32> to vector<8x128xf32>
    %561 = vector.extract_strided_slice %550 {offsets = [0, 256], sizes = [8, 128], strides = [1, 1]} : vector<8x384xf32> to vector<8x128xf32>
    %562 = vector.extract_strided_slice %548 {offsets = [0, 256], sizes = [8, 128], strides = [1, 1]} : vector<8x384xf32> to vector<8x128xf32>
    %563 = arith.mulf %559, %561 : vector<8x128xf32>
    %564 = arith.addf %562, %563 : vector<8x128xf32>
    %565 = math.tanh %564 : vector<8x128xf32>
    %566 = arith.subf %542, %565 : vector<8x128xf32>
    %567 = arith.mulf %560, %566 : vector<8x128xf32>
    %568 = arith.addf %565, %567 : vector<8x128xf32>
    %569 = arith.index_cast %546 : i32 to index
    %c0_149 = arith.constant 0 : index
    %570 = vector.load %arg10[%569, %c0_149] : memref<64x128xf32, #tpu.memory_space<vmem>>, vector<8x128xf32>
    tpu.vector_store %arg10[%569, %c0_149], %568 {strides = array<i32>} : memref<64x128xf32, #tpu.memory_space<vmem>>, vector<8x128xf32>,
    %c5_i32_150 = arith.constant 5 : i32
    %c8_i32_151 = arith.constant 8 : i32
    %571 = arith.muli %c5_i32_150, %c8_i32_151 : i32
    %572 = tpu.assume_multiple %571, 8 : i32
    %573 = arith.index_cast %572 : i32 to index
    %c0_152 = arith.constant 0 : index
    %574 = vector.load %arg9[%573, %c0_152] : memref<64x384xf32, #tpu.memory_space<vmem>>, vector<8x384xf32>
    %575 = arith.truncf %568 : vector<8x128xf32> to vector<8x128xbf16>
    %cst_153 = arith.constant dense<0.000000e+00> : vector<8x384xf32>
    %576 = tpu.matmul %575, %439, %cst_153 {dimension_numbers = #tpu.dot_dimension_numbers<[1], [0], [0], [1], [0, 0, 1, 1], [], []>} : vector<8x128xbf16>, vector<128x384xbf16>, vector<8x384xf32> -> vector<8x384xf32>
    %577 = vector.extract_strided_slice %574 {offsets = [0, 0], sizes = [8, 256], strides = [1, 1]} : vector<8x384xf32> to vector<8x256xf32>
    %578 = vector.extract_strided_slice %576 {offsets = [0, 0], sizes = [8, 256], strides = [1, 1]} : vector<8x384xf32> to vector<8x256xf32>
    %579 = arith.addf %577, %578 : vector<8x256xf32>
    %580 = arith.negf %579 : vector<8x256xf32>
    %581 = math.exp %580 : vector<8x256xf32>
    %cst_154 = arith.constant 1.000000e+00 : f32
    %582 = vector.broadcast %cst_154 : f32 to vector<8x256xf32>
    %583 = arith.addf %582, %581 : vector<8x256xf32>
    %584 = arith.divf %582, %583 : vector<8x256xf32>
    %585 = vector.extract_strided_slice %584 {offsets = [0, 0], sizes = [8, 128], strides = [1, 1]} : vector<8x256xf32> to vector<8x128xf32>
    %586 = vector.extract_strided_slice %584 {offsets = [0, 128], sizes = [8, 128], strides = [1, 1]} : vector<8x256xf32> to vector<8x128xf32>
    %587 = vector.extract_strided_slice %576 {offsets = [0, 256], sizes = [8, 128], strides = [1, 1]} : vector<8x384xf32> to vector<8x128xf32>
    %588 = vector.extract_strided_slice %574 {offsets = [0, 256], sizes = [8, 128], strides = [1, 1]} : vector<8x384xf32> to vector<8x128xf32>
    %589 = arith.mulf %585, %587 : vector<8x128xf32>
    %590 = arith.addf %588, %589 : vector<8x128xf32>
    %591 = math.tanh %590 : vector<8x128xf32>
    %592 = arith.subf %568, %591 : vector<8x128xf32>
    %593 = arith.mulf %586, %592 : vector<8x128xf32>
    %594 = arith.addf %591, %593 : vector<8x128xf32>
    %595 = arith.index_cast %572 : i32 to index
    %c0_155 = arith.constant 0 : index
    %596 = vector.load %arg10[%595, %c0_155] : memref<64x128xf32, #tpu.memory_space<vmem>>, vector<8x128xf32>
    tpu.vector_store %arg10[%595, %c0_155], %594 {strides = array<i32>} : memref<64x128xf32, #tpu.memory_space<vmem>>, vector<8x128xf32>,
    %c6_i32_156 = arith.constant 6 : i32
    %c8_i32_157 = arith.constant 8 : i32
    %597 = arith.muli %c6_i32_156, %c8_i32_157 : i32
    %598 = tpu.assume_multiple %597, 8 : i32
    %599 = arith.index_cast %598 : i32 to index
    %c0_158 = arith.constant 0 : index
    %600 = vector.load %arg9[%599, %c0_158] : memref<64x384xf32, #tpu.memory_space<vmem>>, vector<8x384xf32>
    %601 = arith.truncf %594 : vector<8x128xf32> to vector<8x128xbf16>
    %cst_159 = arith.constant dense<0.000000e+00> : vector<8x384xf32>
    %602 = tpu.matmul %601, %439, %cst_159 {dimension_numbers = #tpu.dot_dimension_numbers<[1], [0], [0], [1], [0, 0, 1, 1], [], []>} : vector<8x128xbf16>, vector<128x384xbf16>, vector<8x384xf32> -> vector<8x384xf32>
    %603 = vector.extract_strided_slice %600 {offsets = [0, 0], sizes = [8, 256], strides = [1, 1]} : vector<8x384xf32> to vector<8x256xf32>
    %604 = vector.extract_strided_slice %602 {offsets = [0, 0], sizes = [8, 256], strides = [1, 1]} : vector<8x384xf32> to vector<8x256xf32>
    %605 = arith.addf %603, %604 : vector<8x256xf32>
    %606 = arith.negf %605 : vector<8x256xf32>
    %607 = math.exp %606 : vector<8x256xf32>
    %cst_160 = arith.constant 1.000000e+00 : f32
    %608 = vector.broadcast %cst_160 : f32 to vector<8x256xf32>
    %609 = arith.addf %608, %607 : vector<8x256xf32>
    %610 = arith.divf %608, %609 : vector<8x256xf32>
    %611 = vector.extract_strided_slice %610 {offsets = [0, 0], sizes = [8, 128], strides = [1, 1]} : vector<8x256xf32> to vector<8x128xf32>
    %612 = vector.extract_strided_slice %610 {offsets = [0, 128], sizes = [8, 128], strides = [1, 1]} : vector<8x256xf32> to vector<8x128xf32>
    %613 = vector.extract_strided_slice %602 {offsets = [0, 256], sizes = [8, 128], strides = [1, 1]} : vector<8x384xf32> to vector<8x128xf32>
    %614 = vector.extract_strided_slice %600 {offsets = [0, 256], sizes = [8, 128], strides = [1, 1]} : vector<8x384xf32> to vector<8x128xf32>
    %615 = arith.mulf %611, %613 : vector<8x128xf32>
    %616 = arith.addf %614, %615 : vector<8x128xf32>
    %617 = math.tanh %616 : vector<8x128xf32>
    %618 = arith.subf %594, %617 : vector<8x128xf32>
    %619 = arith.mulf %612, %618 : vector<8x128xf32>
    %620 = arith.addf %617, %619 : vector<8x128xf32>
    %621 = arith.index_cast %598 : i32 to index
    %c0_161 = arith.constant 0 : index
    %622 = vector.load %arg10[%621, %c0_161] : memref<64x128xf32, #tpu.memory_space<vmem>>, vector<8x128xf32>
    tpu.vector_store %arg10[%621, %c0_161], %620 {strides = array<i32>} : memref<64x128xf32, #tpu.memory_space<vmem>>, vector<8x128xf32>,
    %c7_i32_162 = arith.constant 7 : i32
    %c8_i32_163 = arith.constant 8 : i32
    %623 = arith.muli %c7_i32_162, %c8_i32_163 : i32
    %624 = tpu.assume_multiple %623, 8 : i32
    %625 = arith.index_cast %624 : i32 to index
    %c0_164 = arith.constant 0 : index
    %626 = vector.load %arg9[%625, %c0_164] : memref<64x384xf32, #tpu.memory_space<vmem>>, vector<8x384xf32>
    %627 = arith.truncf %620 : vector<8x128xf32> to vector<8x128xbf16>
    %cst_165 = arith.constant dense<0.000000e+00> : vector<8x384xf32>
    %628 = tpu.matmul %627, %439, %cst_165 {dimension_numbers = #tpu.dot_dimension_numbers<[1], [0], [0], [1], [0, 0, 1, 1], [], []>} : vector<8x128xbf16>, vector<128x384xbf16>, vector<8x384xf32> -> vector<8x384xf32>
    %629 = vector.extract_strided_slice %626 {offsets = [0, 0], sizes = [8, 256], strides = [1, 1]} : vector<8x384xf32> to vector<8x256xf32>
    %630 = vector.extract_strided_slice %628 {offsets = [0, 0], sizes = [8, 256], strides = [1, 1]} : vector<8x384xf32> to vector<8x256xf32>
    %631 = arith.addf %629, %630 : vector<8x256xf32>
    %632 = arith.negf %631 : vector<8x256xf32>
    %633 = math.exp %632 : vector<8x256xf32>
    %cst_166 = arith.constant 1.000000e+00 : f32
    %634 = vector.broadcast %cst_166 : f32 to vector<8x256xf32>
    %635 = arith.addf %634, %633 : vector<8x256xf32>
    %636 = arith.divf %634, %635 : vector<8x256xf32>
    %637 = vector.extract_strided_slice %636 {offsets = [0, 0], sizes = [8, 128], strides = [1, 1]} : vector<8x256xf32> to vector<8x128xf32>
    %638 = vector.extract_strided_slice %636 {offsets = [0, 128], sizes = [8, 128], strides = [1, 1]} : vector<8x256xf32> to vector<8x128xf32>
    %639 = vector.extract_strided_slice %628 {offsets = [0, 256], sizes = [8, 128], strides = [1, 1]} : vector<8x384xf32> to vector<8x128xf32>
    %640 = vector.extract_strided_slice %626 {offsets = [0, 256], sizes = [8, 128], strides = [1, 1]} : vector<8x384xf32> to vector<8x128xf32>
    %641 = arith.mulf %637, %639 : vector<8x128xf32>
    %642 = arith.addf %640, %641 : vector<8x128xf32>
    %643 = math.tanh %642 : vector<8x128xf32>
    %644 = arith.subf %620, %643 : vector<8x128xf32>
    %645 = arith.mulf %638, %644 : vector<8x128xf32>
    %646 = arith.addf %643, %645 : vector<8x128xf32>
    %647 = arith.index_cast %624 : i32 to index
    %c0_167 = arith.constant 0 : index
    %648 = vector.load %arg10[%647, %c0_167] : memref<64x128xf32, #tpu.memory_space<vmem>>, vector<8x128xf32>
    tpu.vector_store %arg10[%647, %c0_167], %646 {strides = array<i32>} : memref<64x128xf32, #tpu.memory_space<vmem>>, vector<8x128xf32>,
    %c8_i32_168 = arith.constant 8 : i32
    %c0_169 = arith.constant 0 : index
    %c0_170 = arith.constant 0 : index
    %649 = vector.load %arg10[%c0_169, %c0_170] : memref<64x128xf32, #tpu.memory_space<vmem>>, vector<64x128xf32>
    %650 = arith.truncf %649 : vector<64x128xf32> to vector<64x128xbf16>
    %c2_171 = arith.constant 2 : index
    %c0_172 = arith.constant 0 : index
    %c0_173 = arith.constant 0 : index
    %651 = vector.load %arg2[%c2_171, %c0_172, %c0_173] : memref<3x128x384xbf16, #tpu.memory_space<vmem>>, vector<1x128x384xbf16>
    %652 = vector.shape_cast %651 : vector<1x128x384xbf16> to vector<128x384xbf16>
    %cst_174 = arith.constant dense<0.000000e+00> : vector<64x384xf32>
    %653 = tpu.matmul %650, %652, %cst_174 {dimension_numbers = #tpu.dot_dimension_numbers<[1], [0], [0], [1], [0, 0, 1, 1], [], []>} : vector<64x128xbf16>, vector<128x384xbf16>, vector<64x384xf32> -> vector<64x384xf32>
    %c0_175 = arith.constant 0 : index
    %c0_176 = arith.constant 0 : index
    %654 = vector.load %arg9[%c0_175, %c0_176] : memref<64x384xf32, #tpu.memory_space<vmem>>, vector<64x384xf32>
    tpu.vector_store %arg9[%c0_175, %c0_176], %653 {strides = array<i32>} : memref<64x384xf32, #tpu.memory_space<vmem>>, vector<64x384xf32>,
    %c3 = arith.constant 3 : index
    %c0_177 = arith.constant 0 : index
    %c0_178 = arith.constant 0 : index
    %655 = vector.load %arg3[%c3, %c0_177, %c0_178] : memref<4x128x384xbf16, #tpu.memory_space<vmem>>, vector<1x128x384xbf16>
    %656 = vector.shape_cast %655 : vector<1x128x384xbf16> to vector<128x384xbf16>
    %cst_179 = arith.constant 0.000000e+00 : f32
    %657 = vector.broadcast %cst_179 : f32 to vector<8x128xf32>
    %c0_i32_180 = arith.constant 0 : i32
    %c8_i32_181 = arith.constant 8 : i32
    %658 = arith.muli %c0_i32_180, %c8_i32_181 : i32
    %659 = tpu.assume_multiple %658, 8 : i32
    %660 = arith.index_cast %659 : i32 to index
    %c0_182 = arith.constant 0 : index
    %661 = vector.load %arg9[%660, %c0_182] : memref<64x384xf32, #tpu.memory_space<vmem>>, vector<8x384xf32>
    %662 = arith.truncf %657 : vector<8x128xf32> to vector<8x128xbf16>
    %cst_183 = arith.constant dense<0.000000e+00> : vector<8x384xf32>
    %663 = tpu.matmul %662, %656, %cst_183 {dimension_numbers = #tpu.dot_dimension_numbers<[1], [0], [0], [1], [0, 0, 1, 1], [], []>} : vector<8x128xbf16>, vector<128x384xbf16>, vector<8x384xf32> -> vector<8x384xf32>
    %664 = vector.extract_strided_slice %661 {offsets = [0, 0], sizes = [8, 256], strides = [1, 1]} : vector<8x384xf32> to vector<8x256xf32>
    %665 = vector.extract_strided_slice %663 {offsets = [0, 0], sizes = [8, 256], strides = [1, 1]} : vector<8x384xf32> to vector<8x256xf32>
    %666 = arith.addf %664, %665 : vector<8x256xf32>
    %667 = arith.negf %666 : vector<8x256xf32>
    %668 = math.exp %667 : vector<8x256xf32>
    %cst_184 = arith.constant 1.000000e+00 : f32
    %669 = vector.broadcast %cst_184 : f32 to vector<8x256xf32>
    %670 = arith.addf %669, %668 : vector<8x256xf32>
    %671 = arith.divf %669, %670 : vector<8x256xf32>
    %672 = vector.extract_strided_slice %671 {offsets = [0, 0], sizes = [8, 128], strides = [1, 1]} : vector<8x256xf32> to vector<8x128xf32>
    %673 = vector.extract_strided_slice %671 {offsets = [0, 128], sizes = [8, 128], strides = [1, 1]} : vector<8x256xf32> to vector<8x128xf32>
    %674 = vector.extract_strided_slice %663 {offsets = [0, 256], sizes = [8, 128], strides = [1, 1]} : vector<8x384xf32> to vector<8x128xf32>
    %675 = vector.extract_strided_slice %661 {offsets = [0, 256], sizes = [8, 128], strides = [1, 1]} : vector<8x384xf32> to vector<8x128xf32>
    %676 = arith.mulf %672, %674 : vector<8x128xf32>
    %677 = arith.addf %675, %676 : vector<8x128xf32>
    %678 = math.tanh %677 : vector<8x128xf32>
    %679 = arith.subf %657, %678 : vector<8x128xf32>
    %680 = arith.mulf %673, %679 : vector<8x128xf32>
    %681 = arith.addf %678, %680 : vector<8x128xf32>
    %c1_i32_185 = arith.constant 1 : i32
    %c8_i32_186 = arith.constant 8 : i32
    %682 = arith.muli %c1_i32_185, %c8_i32_186 : i32
    %683 = tpu.assume_multiple %682, 8 : i32
    %684 = arith.index_cast %683 : i32 to index
    %c0_187 = arith.constant 0 : index
    %685 = vector.load %arg9[%684, %c0_187] : memref<64x384xf32, #tpu.memory_space<vmem>>, vector<8x384xf32>
    %686 = arith.truncf %681 : vector<8x128xf32> to vector<8x128xbf16>
    %cst_188 = arith.constant dense<0.000000e+00> : vector<8x384xf32>
    %687 = tpu.matmul %686, %656, %cst_188 {dimension_numbers = #tpu.dot_dimension_numbers<[1], [0], [0], [1], [0, 0, 1, 1], [], []>} : vector<8x128xbf16>, vector<128x384xbf16>, vector<8x384xf32> -> vector<8x384xf32>
    %688 = vector.extract_strided_slice %685 {offsets = [0, 0], sizes = [8, 256], strides = [1, 1]} : vector<8x384xf32> to vector<8x256xf32>
    %689 = vector.extract_strided_slice %687 {offsets = [0, 0], sizes = [8, 256], strides = [1, 1]} : vector<8x384xf32> to vector<8x256xf32>
    %690 = arith.addf %688, %689 : vector<8x256xf32>
    %691 = arith.negf %690 : vector<8x256xf32>
    %692 = math.exp %691 : vector<8x256xf32>
    %cst_189 = arith.constant 1.000000e+00 : f32
    %693 = vector.broadcast %cst_189 : f32 to vector<8x256xf32>
    %694 = arith.addf %693, %692 : vector<8x256xf32>
    %695 = arith.divf %693, %694 : vector<8x256xf32>
    %696 = vector.extract_strided_slice %695 {offsets = [0, 0], sizes = [8, 128], strides = [1, 1]} : vector<8x256xf32> to vector<8x128xf32>
    %697 = vector.extract_strided_slice %695 {offsets = [0, 128], sizes = [8, 128], strides = [1, 1]} : vector<8x256xf32> to vector<8x128xf32>
    %698 = vector.extract_strided_slice %687 {offsets = [0, 256], sizes = [8, 128], strides = [1, 1]} : vector<8x384xf32> to vector<8x128xf32>
    %699 = vector.extract_strided_slice %685 {offsets = [0, 256], sizes = [8, 128], strides = [1, 1]} : vector<8x384xf32> to vector<8x128xf32>
    %700 = arith.mulf %696, %698 : vector<8x128xf32>
    %701 = arith.addf %699, %700 : vector<8x128xf32>
    %702 = math.tanh %701 : vector<8x128xf32>
    %703 = arith.subf %681, %702 : vector<8x128xf32>
    %704 = arith.mulf %697, %703 : vector<8x128xf32>
    %705 = arith.addf %702, %704 : vector<8x128xf32>
    %c2_i32_190 = arith.constant 2 : i32
    %c8_i32_191 = arith.constant 8 : i32
    %706 = arith.muli %c2_i32_190, %c8_i32_191 : i32
    %707 = tpu.assume_multiple %706, 8 : i32
    %708 = arith.index_cast %707 : i32 to index
    %c0_192 = arith.constant 0 : index
    %709 = vector.load %arg9[%708, %c0_192] : memref<64x384xf32, #tpu.memory_space<vmem>>, vector<8x384xf32>
    %710 = arith.truncf %705 : vector<8x128xf32> to vector<8x128xbf16>
    %cst_193 = arith.constant dense<0.000000e+00> : vector<8x384xf32>
    %711 = tpu.matmul %710, %656, %cst_193 {dimension_numbers = #tpu.dot_dimension_numbers<[1], [0], [0], [1], [0, 0, 1, 1], [], []>} : vector<8x128xbf16>, vector<128x384xbf16>, vector<8x384xf32> -> vector<8x384xf32>
    %712 = vector.extract_strided_slice %709 {offsets = [0, 0], sizes = [8, 256], strides = [1, 1]} : vector<8x384xf32> to vector<8x256xf32>
    %713 = vector.extract_strided_slice %711 {offsets = [0, 0], sizes = [8, 256], strides = [1, 1]} : vector<8x384xf32> to vector<8x256xf32>
    %714 = arith.addf %712, %713 : vector<8x256xf32>
    %715 = arith.negf %714 : vector<8x256xf32>
    %716 = math.exp %715 : vector<8x256xf32>
    %cst_194 = arith.constant 1.000000e+00 : f32
    %717 = vector.broadcast %cst_194 : f32 to vector<8x256xf32>
    %718 = arith.addf %717, %716 : vector<8x256xf32>
    %719 = arith.divf %717, %718 : vector<8x256xf32>
    %720 = vector.extract_strided_slice %719 {offsets = [0, 0], sizes = [8, 128], strides = [1, 1]} : vector<8x256xf32> to vector<8x128xf32>
    %721 = vector.extract_strided_slice %719 {offsets = [0, 128], sizes = [8, 128], strides = [1, 1]} : vector<8x256xf32> to vector<8x128xf32>
    %722 = vector.extract_strided_slice %711 {offsets = [0, 256], sizes = [8, 128], strides = [1, 1]} : vector<8x384xf32> to vector<8x128xf32>
    %723 = vector.extract_strided_slice %709 {offsets = [0, 256], sizes = [8, 128], strides = [1, 1]} : vector<8x384xf32> to vector<8x128xf32>
    %724 = arith.mulf %720, %722 : vector<8x128xf32>
    %725 = arith.addf %723, %724 : vector<8x128xf32>
    %726 = math.tanh %725 : vector<8x128xf32>
    %727 = arith.subf %705, %726 : vector<8x128xf32>
    %728 = arith.mulf %721, %727 : vector<8x128xf32>
    %729 = arith.addf %726, %728 : vector<8x128xf32>
    %c3_i32_195 = arith.constant 3 : i32
    %c8_i32_196 = arith.constant 8 : i32
    %730 = arith.muli %c3_i32_195, %c8_i32_196 : i32
    %731 = tpu.assume_multiple %730, 8 : i32
    %732 = arith.index_cast %731 : i32 to index
    %c0_197 = arith.constant 0 : index
    %733 = vector.load %arg9[%732, %c0_197] : memref<64x384xf32, #tpu.memory_space<vmem>>, vector<8x384xf32>
    %734 = arith.truncf %729 : vector<8x128xf32> to vector<8x128xbf16>
    %cst_198 = arith.constant dense<0.000000e+00> : vector<8x384xf32>
    %735 = tpu.matmul %734, %656, %cst_198 {dimension_numbers = #tpu.dot_dimension_numbers<[1], [0], [0], [1], [0, 0, 1, 1], [], []>} : vector<8x128xbf16>, vector<128x384xbf16>, vector<8x384xf32> -> vector<8x384xf32>
    %736 = vector.extract_strided_slice %733 {offsets = [0, 0], sizes = [8, 256], strides = [1, 1]} : vector<8x384xf32> to vector<8x256xf32>
    %737 = vector.extract_strided_slice %735 {offsets = [0, 0], sizes = [8, 256], strides = [1, 1]} : vector<8x384xf32> to vector<8x256xf32>
    %738 = arith.addf %736, %737 : vector<8x256xf32>
    %739 = arith.negf %738 : vector<8x256xf32>
    %740 = math.exp %739 : vector<8x256xf32>
    %cst_199 = arith.constant 1.000000e+00 : f32
    %741 = vector.broadcast %cst_199 : f32 to vector<8x256xf32>
    %742 = arith.addf %741, %740 : vector<8x256xf32>
    %743 = arith.divf %741, %742 : vector<8x256xf32>
    %744 = vector.extract_strided_slice %743 {offsets = [0, 0], sizes = [8, 128], strides = [1, 1]} : vector<8x256xf32> to vector<8x128xf32>
    %745 = vector.extract_strided_slice %743 {offsets = [0, 128], sizes = [8, 128], strides = [1, 1]} : vector<8x256xf32> to vector<8x128xf32>
    %746 = vector.extract_strided_slice %735 {offsets = [0, 256], sizes = [8, 128], strides = [1, 1]} : vector<8x384xf32> to vector<8x128xf32>
    %747 = vector.extract_strided_slice %733 {offsets = [0, 256], sizes = [8, 128], strides = [1, 1]} : vector<8x384xf32> to vector<8x128xf32>
    %748 = arith.mulf %744, %746 : vector<8x128xf32>
    %749 = arith.addf %747, %748 : vector<8x128xf32>
    %750 = math.tanh %749 : vector<8x128xf32>
    %751 = arith.subf %729, %750 : vector<8x128xf32>
    %752 = arith.mulf %745, %751 : vector<8x128xf32>
    %753 = arith.addf %750, %752 : vector<8x128xf32>
    %c4_i32_200 = arith.constant 4 : i32
    %c8_i32_201 = arith.constant 8 : i32
    %754 = arith.muli %c4_i32_200, %c8_i32_201 : i32
    %755 = tpu.assume_multiple %754, 8 : i32
    %756 = arith.index_cast %755 : i32 to index
    %c0_202 = arith.constant 0 : index
    %757 = vector.load %arg9[%756, %c0_202] : memref<64x384xf32, #tpu.memory_space<vmem>>, vector<8x384xf32>
    %758 = arith.truncf %753 : vector<8x128xf32> to vector<8x128xbf16>
    %cst_203 = arith.constant dense<0.000000e+00> : vector<8x384xf32>
    %759 = tpu.matmul %758, %656, %cst_203 {dimension_numbers = #tpu.dot_dimension_numbers<[1], [0], [0], [1], [0, 0, 1, 1], [], []>} : vector<8x128xbf16>, vector<128x384xbf16>, vector<8x384xf32> -> vector<8x384xf32>
    %760 = vector.extract_strided_slice %757 {offsets = [0, 0], sizes = [8, 256], strides = [1, 1]} : vector<8x384xf32> to vector<8x256xf32>
    %761 = vector.extract_strided_slice %759 {offsets = [0, 0], sizes = [8, 256], strides = [1, 1]} : vector<8x384xf32> to vector<8x256xf32>
    %762 = arith.addf %760, %761 : vector<8x256xf32>
    %763 = arith.negf %762 : vector<8x256xf32>
    %764 = math.exp %763 : vector<8x256xf32>
    %cst_204 = arith.constant 1.000000e+00 : f32
    %765 = vector.broadcast %cst_204 : f32 to vector<8x256xf32>
    %766 = arith.addf %765, %764 : vector<8x256xf32>
    %767 = arith.divf %765, %766 : vector<8x256xf32>
    %768 = vector.extract_strided_slice %767 {offsets = [0, 0], sizes = [8, 128], strides = [1, 1]} : vector<8x256xf32> to vector<8x128xf32>
    %769 = vector.extract_strided_slice %767 {offsets = [0, 128], sizes = [8, 128], strides = [1, 1]} : vector<8x256xf32> to vector<8x128xf32>
    %770 = vector.extract_strided_slice %759 {offsets = [0, 256], sizes = [8, 128], strides = [1, 1]} : vector<8x384xf32> to vector<8x128xf32>
    %771 = vector.extract_strided_slice %757 {offsets = [0, 256], sizes = [8, 128], strides = [1, 1]} : vector<8x384xf32> to vector<8x128xf32>
    %772 = arith.mulf %768, %770 : vector<8x128xf32>
    %773 = arith.addf %771, %772 : vector<8x128xf32>
    %774 = math.tanh %773 : vector<8x128xf32>
    %775 = arith.subf %753, %774 : vector<8x128xf32>
    %776 = arith.mulf %769, %775 : vector<8x128xf32>
    %777 = arith.addf %774, %776 : vector<8x128xf32>
    %c5_i32_205 = arith.constant 5 : i32
    %c8_i32_206 = arith.constant 8 : i32
    %778 = arith.muli %c5_i32_205, %c8_i32_206 : i32
    %779 = tpu.assume_multiple %778, 8 : i32
    %780 = arith.index_cast %779 : i32 to index
    %c0_207 = arith.constant 0 : index
    %781 = vector.load %arg9[%780, %c0_207] : memref<64x384xf32, #tpu.memory_space<vmem>>, vector<8x384xf32>
    %782 = arith.truncf %777 : vector<8x128xf32> to vector<8x128xbf16>
    %cst_208 = arith.constant dense<0.000000e+00> : vector<8x384xf32>
    %783 = tpu.matmul %782, %656, %cst_208 {dimension_numbers = #tpu.dot_dimension_numbers<[1], [0], [0], [1], [0, 0, 1, 1], [], []>} : vector<8x128xbf16>, vector<128x384xbf16>, vector<8x384xf32> -> vector<8x384xf32>
    %784 = vector.extract_strided_slice %781 {offsets = [0, 0], sizes = [8, 256], strides = [1, 1]} : vector<8x384xf32> to vector<8x256xf32>
    %785 = vector.extract_strided_slice %783 {offsets = [0, 0], sizes = [8, 256], strides = [1, 1]} : vector<8x384xf32> to vector<8x256xf32>
    %786 = arith.addf %784, %785 : vector<8x256xf32>
    %787 = arith.negf %786 : vector<8x256xf32>
    %788 = math.exp %787 : vector<8x256xf32>
    %cst_209 = arith.constant 1.000000e+00 : f32
    %789 = vector.broadcast %cst_209 : f32 to vector<8x256xf32>
    %790 = arith.addf %789, %788 : vector<8x256xf32>
    %791 = arith.divf %789, %790 : vector<8x256xf32>
    %792 = vector.extract_strided_slice %791 {offsets = [0, 0], sizes = [8, 128], strides = [1, 1]} : vector<8x256xf32> to vector<8x128xf32>
    %793 = vector.extract_strided_slice %791 {offsets = [0, 128], sizes = [8, 128], strides = [1, 1]} : vector<8x256xf32> to vector<8x128xf32>
    %794 = vector.extract_strided_slice %783 {offsets = [0, 256], sizes = [8, 128], strides = [1, 1]} : vector<8x384xf32> to vector<8x128xf32>
    %795 = vector.extract_strided_slice %781 {offsets = [0, 256], sizes = [8, 128], strides = [1, 1]} : vector<8x384xf32> to vector<8x128xf32>
    %796 = arith.mulf %792, %794 : vector<8x128xf32>
    %797 = arith.addf %795, %796 : vector<8x128xf32>
    %798 = math.tanh %797 : vector<8x128xf32>
    %799 = arith.subf %777, %798 : vector<8x128xf32>
    %800 = arith.mulf %793, %799 : vector<8x128xf32>
    %801 = arith.addf %798, %800 : vector<8x128xf32>
    %c6_i32_210 = arith.constant 6 : i32
    %c8_i32_211 = arith.constant 8 : i32
    %802 = arith.muli %c6_i32_210, %c8_i32_211 : i32
    %803 = tpu.assume_multiple %802, 8 : i32
    %804 = arith.index_cast %803 : i32 to index
    %c0_212 = arith.constant 0 : index
    %805 = vector.load %arg9[%804, %c0_212] : memref<64x384xf32, #tpu.memory_space<vmem>>, vector<8x384xf32>
    %806 = arith.truncf %801 : vector<8x128xf32> to vector<8x128xbf16>
    %cst_213 = arith.constant dense<0.000000e+00> : vector<8x384xf32>
    %807 = tpu.matmul %806, %656, %cst_213 {dimension_numbers = #tpu.dot_dimension_numbers<[1], [0], [0], [1], [0, 0, 1, 1], [], []>} : vector<8x128xbf16>, vector<128x384xbf16>, vector<8x384xf32> -> vector<8x384xf32>
    %808 = vector.extract_strided_slice %805 {offsets = [0, 0], sizes = [8, 256], strides = [1, 1]} : vector<8x384xf32> to vector<8x256xf32>
    %809 = vector.extract_strided_slice %807 {offsets = [0, 0], sizes = [8, 256], strides = [1, 1]} : vector<8x384xf32> to vector<8x256xf32>
    %810 = arith.addf %808, %809 : vector<8x256xf32>
    %811 = arith.negf %810 : vector<8x256xf32>
    %812 = math.exp %811 : vector<8x256xf32>
    %cst_214 = arith.constant 1.000000e+00 : f32
    %813 = vector.broadcast %cst_214 : f32 to vector<8x256xf32>
    %814 = arith.addf %813, %812 : vector<8x256xf32>
    %815 = arith.divf %813, %814 : vector<8x256xf32>
    %816 = vector.extract_strided_slice %815 {offsets = [0, 0], sizes = [8, 128], strides = [1, 1]} : vector<8x256xf32> to vector<8x128xf32>
    %817 = vector.extract_strided_slice %815 {offsets = [0, 128], sizes = [8, 128], strides = [1, 1]} : vector<8x256xf32> to vector<8x128xf32>
    %818 = vector.extract_strided_slice %807 {offsets = [0, 256], sizes = [8, 128], strides = [1, 1]} : vector<8x384xf32> to vector<8x128xf32>
    %819 = vector.extract_strided_slice %805 {offsets = [0, 256], sizes = [8, 128], strides = [1, 1]} : vector<8x384xf32> to vector<8x128xf32>
    %820 = arith.mulf %816, %818 : vector<8x128xf32>
    %821 = arith.addf %819, %820 : vector<8x128xf32>
    %822 = math.tanh %821 : vector<8x128xf32>
    %823 = arith.subf %801, %822 : vector<8x128xf32>
    %824 = arith.mulf %817, %823 : vector<8x128xf32>
    %825 = arith.addf %822, %824 : vector<8x128xf32>
    %c7_i32_215 = arith.constant 7 : i32
    %c8_i32_216 = arith.constant 8 : i32
    %826 = arith.muli %c7_i32_215, %c8_i32_216 : i32
    %827 = tpu.assume_multiple %826, 8 : i32
    %828 = arith.index_cast %827 : i32 to index
    %c0_217 = arith.constant 0 : index
    %829 = vector.load %arg9[%828, %c0_217] : memref<64x384xf32, #tpu.memory_space<vmem>>, vector<8x384xf32>
    %830 = arith.truncf %825 : vector<8x128xf32> to vector<8x128xbf16>
    %cst_218 = arith.constant dense<0.000000e+00> : vector<8x384xf32>
    %831 = tpu.matmul %830, %656, %cst_218 {dimension_numbers = #tpu.dot_dimension_numbers<[1], [0], [0], [1], [0, 0, 1, 1], [], []>} : vector<8x128xbf16>, vector<128x384xbf16>, vector<8x384xf32> -> vector<8x384xf32>
    %832 = vector.extract_strided_slice %829 {offsets = [0, 0], sizes = [8, 256], strides = [1, 1]} : vector<8x384xf32> to vector<8x256xf32>
    %833 = vector.extract_strided_slice %831 {offsets = [0, 0], sizes = [8, 256], strides = [1, 1]} : vector<8x384xf32> to vector<8x256xf32>
    %834 = arith.addf %832, %833 : vector<8x256xf32>
    %835 = arith.negf %834 : vector<8x256xf32>
    %836 = math.exp %835 : vector<8x256xf32>
    %cst_219 = arith.constant 1.000000e+00 : f32
    %837 = vector.broadcast %cst_219 : f32 to vector<8x256xf32>
    %838 = arith.addf %837, %836 : vector<8x256xf32>
    %839 = arith.divf %837, %838 : vector<8x256xf32>
    %840 = vector.extract_strided_slice %839 {offsets = [0, 0], sizes = [8, 128], strides = [1, 1]} : vector<8x256xf32> to vector<8x128xf32>
    %841 = vector.extract_strided_slice %839 {offsets = [0, 128], sizes = [8, 128], strides = [1, 1]} : vector<8x256xf32> to vector<8x128xf32>
    %842 = vector.extract_strided_slice %831 {offsets = [0, 256], sizes = [8, 128], strides = [1, 1]} : vector<8x384xf32> to vector<8x128xf32>
    %843 = vector.extract_strided_slice %829 {offsets = [0, 256], sizes = [8, 128], strides = [1, 1]} : vector<8x384xf32> to vector<8x128xf32>
    %844 = arith.mulf %840, %842 : vector<8x128xf32>
    %845 = arith.addf %843, %844 : vector<8x128xf32>
    %846 = math.tanh %845 : vector<8x128xf32>
    %847 = arith.subf %825, %846 : vector<8x128xf32>
    %848 = arith.mulf %841, %847 : vector<8x128xf32>
    %849 = arith.addf %846, %848 : vector<8x128xf32>
    %c8_i32_220 = arith.constant 8 : i32
    %850 = arith.truncf %849 : vector<8x128xf32> to vector<8x128xbf16>
    %c0_221 = arith.constant 0 : index
    %c0_222 = arith.constant 0 : index
    %851 = vector.load %arg6[%c0_221, %c0_222] : memref<128x1xbf16, #tpu.memory_space<vmem>>, vector<128x1xbf16>
    %cst_223 = arith.constant dense<0.000000e+00> : vector<8x1xf32>
    %852 = tpu.matmul %850, %851, %cst_223 {dimension_numbers = #tpu.dot_dimension_numbers<[1], [0], [0], [1], [0, 0, 1, 1], [], []>} : vector<8x128xbf16>, vector<128x1xbf16>, vector<8x1xf32> -> vector<8x1xf32>
    %c0_224 = arith.constant 0 : index
    %c0_225 = arith.constant 0 : index
    %853 = vector.load %arg7[%c0_224, %c0_225] : memref<1x1xf32, #tpu.memory_space<vmem>>, vector<1x1xf32>
    %854 = vector.broadcast %853 : vector<1x1xf32> to vector<8x1xf32>
    %855 = arith.addf %852, %854 : vector<8x1xf32>
    %c0_226 = arith.constant 0 : index
    %c0_227 = arith.constant 0 : index
    %856 = vector.load %arg8[%c0_226, %c0_227] : memref<8x1xf32, #tpu.memory_space<vmem>>, vector<8x1xf32>
    tpu.vector_store %arg8[%c0_226, %c0_227], %855 {strides = array<i32>} : memref<8x1xf32, #tpu.memory_space<vmem>>, vector<8x1xf32>,
    return
  }
}

</mosaic_0001>

<bundles_post_ra>
// kernel: _gru_forward.1
= control target key start
LH: loop header
LB: loop body
LE: loop exit
PB: predicated region body
PF: predicated region fallthrough
CT: control target
= control target key end

     0   :  { %s9409_s0 = inlined_call_operand.vmem [shape: bf16[64,8], index: 0, kind: input, shape index: {}]   ;;  %s9410_s1 = inlined_call_operand.vmem [shape: bf16[8,384], index: 1, kind: input, shape index: {}]   ;;  %s9411_s2 = inlined_call_operand.hbm [shape: bf16[3,128,384], index: 2, kind: input, shape index: {}]   ;;  %s9412_s3 = inlined_call_operand.hbm [shape: bf16[4,128,384], index: 3, kind: input, shape index: {}]   ;;  %s9413_s4 = inlined_call_operand.vmem [shape: f32[4,1,384], index: 4, kind: input, shape index: {}]   ;;  %s9414_s5 = inlined_call_operand.vmem [shape: f32[4,1,128], index: 5, kind: input, shape index: {}]   ;;  %s9415_s6 = inlined_call_operand.vmem [shape: bf16[128,1], index: 6, kind: input, shape index: {}]   ;;  %s9416_s7 = inlined_call_operand.<no memory space> [shape: f32[1,1], index: 7, kind: input, shape index: {}]   ;;  %s9417_s8 = inlined_call_operand.vmem [shape: f32[8,1], index: 8, kind: output, shape index: {}]  }
   0x1   :  { %v13_v0 = vstv %s9416_s7 }
   0x2   :  { %14 = vst [vmem:[#allocation4] sm:$0x1] %v13_v0 }
   0x3   :  { %15 = vsyncpa [#allocation6], 0 }
   0x4   :  { %16 = vsyncpa [#allocation8], 0  ;;  %s7486_s4 = smov [#allocation5]   ;;  %s7438_s9 = scalar_lea.hbm %s9411_s2, 9216 }
   0x5   :  { %s26_s29 = sshll.u32 %s7486_s4, 4  ;;  %p7439_p0 = scmp.ne.s32.totalorder %s9411_s2, %s7438_s9  ;;  %s27_s29 = int_to_ptr.vmem [resolvable:$true] %s26_s29 }
   0x6   :  { %p7442_p1 = scmp.lt.u32.totalorder %s7438_s9, %s9411_s2 }
   0x8   :  { %p7444_p2 = pnand %p7442_p1, %p7439_p0 }
   0xa   :  { %7447 = shalt.err (!%p7444_p2)
}
   0xb   :  { %s7448_s7 = scalar_lea.vmem %s27_s29, 9216  ;;  %p7453_p4 = scmp.lt.s32.totalorder %s27_s29, %s27_s29 }
   0xc   :  { %p7449_p3 = scmp.ne.s32.totalorder %s27_s29, %s7448_s7  ;;  %p7454_p5 = scmp.lt.s32.totalorder %s7448_s7, %s7448_s7 }
   0xe   :  { %p7455_p6 = por %p7454_p5, %p7453_p4 }
  0x10   :  { %p7456_p7 = pnand %p7455_p6, %p7449_p3 }
  0x12   :  { %7459 = shalt.err (!%p7456_p7)
}
  0x13   :  { %s7487_s14 = smov 192   ;;  %s7488_s15 = smov 12  }
  0x14   :  { %32 = dma.hbm_to_vmem [thread:$0]  %s9411_s2, 9216, %s27_s29, [#allocation6], %s7487_s14, %s7487_s14, %s7488_s15  }
  0x15   :  { %s7489_s18 = smov [#allocation7]   ;;  %s7460_s22 = scalar_lea.hbm %s9412_s3, 12288 }
  0x16   :  { %s38_s19 = sshll.u32 %s7489_s18, 4  ;;  %p7461_p8 = scmp.ne.s32.totalorder %s9412_s3, %s7460_s22  ;;  %s39_s19 = int_to_ptr.vmem [resolvable:$true] %s38_s19 }
  0x17   :  { %p7464_p9 = scmp.lt.u32.totalorder %s7460_s22, %s9412_s3 }
  0x19   :  { %p7466_p10 = pnand %p7464_p9, %p7461_p8 }
  0x1b   :  { %7469 = shalt.err (!%p7466_p10)
}
  0x1c   :  { %s7470_s27 = scalar_lea.vmem %s39_s19, 12288  ;;  %p7475_p12 = scmp.lt.s32.totalorder %s39_s19, %s39_s19 }
  0x1d   :  { %p7471_p11 = scmp.ne.s32.totalorder %s39_s19, %s7470_s27  ;;  %p7476_p13 = scmp.lt.s32.totalorder %s7470_s27, %s7470_s27 }
  0x1f   :  { %p7477_p0 = por %p7476_p13, %p7475_p12 }
  0x21   :  { %p7478_p1 = pnand %p7477_p0, %p7471_p11 }
  0x23   :  { %7481 = shalt.err (!%p7478_p1)
}
  0x24   :  { %44 = dma.hbm_to_vmem [thread:$0]  %s9412_s3, 12288, %s39_s19, [#allocation8], %s7487_s14, %s7487_s14, %s7488_s15  }
  0x25   :  { %7482 = dma.done.wait [#allocation6], 9216  }
  0x26   :  { %7483 = vsyncadd [#allocation6], 4294958080 }
  0x27   :  { %7484 = dma.done.wait [#allocation8], 12288  }
  0x28   :  { %7485 = vsyncadd [#allocation8], 4294955008  ;;  %v9418_v1 = vmov 0   ;;  %v68_v2 = vld [vmem:[%s9410_s1] sm:$0xff]  ;;  %vm111_vm0 = vcmask 1043456   ;;  %vm98_vm1 = vcmask 64512  }
  0x29   :  { %153 = vmatprep.mubr.bf16.mxu0 %v9418_v1  ;;  %v5473_v3 = vcombine.high %v68_v2, %v68_v2  ;;  %v5472_v4 = vcombine.low %v68_v2, %v68_v2  ;;  %v6815_v5 = vld [vmem:[%s9409_s0] sm:$0xff]   ;;  %v6822_v12 = vld [vmem:[%s9409_s0 + $0x8] sm:$0xff]   ;;  %v9420_v17 = vmov 0.0   ;;  %v6829_v20 = vld [vmem:[%s9409_s0 + $0x10] sm:$0xff]   ;;  %vm7492_vm2 = vmmov 0  }
  0x2a   :  { %v7572_v6 = vld [vmem:[#allocation7 + $0x4] ss:$12 sps:$4 sm:$0xff]   ;;  %6065 = vmatprep.mubr.msk.bf16.mxu1 %vm98_vm1, %v6815_v5  ;;  %v7577_v8 = vld [vmem:[#allocation7] ss:$12 sps:$4 sm:$0xff]   ;;  %v7580_v9 = vld [vmem:[#allocation7 + $0x1c] ss:$12 sps:$4 sm:$0xff]  }
  0x2b   :  { %5475 = vmatprep.subr.msk.bf16.mxu0 %vm111_vm0, %v5473_v3  ;;  %v113_v7 = vsel %vm111_vm0, %v5472_v4, 0  ;;  %v7584_v10 = vld [vmem:[#allocation7 + $0x18] ss:$12 sps:$4 sm:$0xff]   ;;  %v7588_v11 = vld [vmem:[#allocation7 + $0x34] ss:$12 sps:$4 sm:$0xff]   ;;  %vm5453_vm3 = vcmask 7168  }
  0x2c   :  { %122 = vmatpush1.bf16.msra.mxu0 %v113_v7  ;;  %v6836_v13 = vld [vmem:[%s9410_s1 + $0x8] ss:$0 sps:$4 sm:$0xff]   ;;  %v7597_v14 = vld [vmem:[#allocation7 + $0x30] ss:$12 sps:$4 sm:$0xff]   ;;  %v7600_v15 = vld [vmem:[#allocation7 + $0x4c] ss:$12 sps:$4 sm:$0xff]  }
  0x2d   :  { %449 = vmatprep.subr.bf16.mxu0 %v7572_v6  ;;  %6805 = vmatprep.subr.msk.bf16.mxu1 %vm111_vm0, %v6836_v13  ;;  %v119_v16 = vsel %vm111_vm0, %v6836_v13, 0  ;;  %v7606_v18 = vld [vmem:[#allocation7 + $0x8] ss:$12 sps:$4 sm:$0xff]   ;;  %v7616_v21 = vld [vmem:[#allocation7 + $0x64] ss:$12 sps:$4 sm:$0xff]  }
  0x2e   :  { %6064 = vmatpush3.bf16.msra.mxu1 %v119_v16  ;;  %v7609_v19 = vld [vmem:[#allocation7 + $0x48] ss:$12 sps:$4 sm:$0xff]   ;;  %v7620_v22 = vld [vmem:[#allocation7 + $0x20] ss:$12 sps:$4 sm:$0xff]   ;;  %v7633_v26 = vld [vmem:[#allocation7 + $0x78] ss:$12 sps:$4 sm:$0xff]  }
  0x2f   :  { %5476 = vmatmul.mubr.msk.bf16.vlgmr.msra.gmra.mrb[0].mxu0 %vm98_vm1, %v6815_v5  ;;  %6073 = vmatprep.subr.bf16.mxu1 %v9420_v17  ;;  %v7623_v23 = vld [vmem:[#allocation7 + $0x60] ss:$12 sps:$4 sm:$0xff]   ;;  %v7627_v24 = vld [vmem:[#allocation7 + $0x7c] ss:$12 sps:$4 sm:$0xff]   ;;  %v7636_v27 = vld [vmem:[#allocation7 + $0x38] ss:$12 sps:$4 sm:$0xff]  }
  0x30   :  { %450 = vmatpush1.bf16.msra.mxu0 %v7577_v8  ;;  %163 = vmatprep.mubr.bf16.mxu0 %v9418_v1  ;;  %v6837_v25 = vld [vmem:[%s9409_s0 + $0x18] sm:$0xff]   ;;  %v7667_v34 = vld [vmem:[#allocation7 + $0x80] ss:$12 sps:$4 sm:$0xff]  }
  0x31   :  { %451 = vmatprep.subr.bf16.mxu0 %v7580_v9  ;;  %6066 = vmatmul.mubr.msk.bf16.vlgmr.msra.gmra.mrb[0].mxu1 %vm98_vm1, %v6822_v12  ;;  %v7639_v28 = vld [vmem:[#allocation7 + $0x94] ss:$12 sps:$4 sm:$0xff]   ;;  %v7644_v29 = vld [vmem:[#allocation7 + $0x50] ss:$12 sps:$4 sm:$0xff]   ;;  %v7653_v31 = vld [vmem:[#allocation7 + $0xac] ss:$12 sps:$4 sm:$0xff]  }
  0x32   :  { %6074 = vmatpush3.bf16.msra.mxu1 %v7606_v18  ;;  %6069 = vmatprep.mubr.msk.bf16.mxu1 %vm98_vm1, %v6829_v20  ;;  %v7648_v30 = vld [vmem:[#allocation7 + $0x90] ss:$12 sps:$4 sm:$0xff]   ;;  %v7657_v32 = vld [vmem:[#allocation7 + $0x68] ss:$12 sps:$4 sm:$0xff]   ;;  %v7673_v35 = vld [vmem:[#allocation7 + $0x98] ss:$12 sps:$4 sm:$0xff]  }
  0x33   :  { %6075 = vmatprep.subr.bf16.mxu1 %v9420_v17  ;;  %v7660_v33 = vld [vmem:[#allocation7 + $0xa8] ss:$12 sps:$4 sm:$0xff]   ;;  %v7679_v36 = vld [vmem:[#allocation7 + $0xb0] ss:$12 sps:$4 sm:$0xff]  }
  0x34   :  { %452 = vmatpush1.bf16.msra.mxu0 %v7584_v10 }
  0x35   :  { %453 = vmatprep.subr.bf16.mxu0 %v7588_v11 }
  0x36   :  { %6076 = vmatpush3.bf16.msra.mxu1 %v7620_v22 }
  0x37   :  { %5477 = vmatmul.mubr.msk.bf16.gmra.mrb[4].mxu0 %vm98_vm1, %v6822_v12  ;;  %6077 = vmatprep.subr.bf16.mxu1 %v9420_v17 }
  0x38   :  { %454 = vmatpush1.bf16.msra.mxu0 %v7597_v14  ;;  %173 = vmatprep.mubr.bf16.mxu0 %v9418_v1 }
  0x39   :  { %455 = vmatprep.subr.bf16.mxu0 %v7600_v15  ;;  %6070 = vmatmul.mubr.msk.bf16.gmra.mrb[4].mxu1 %vm98_vm1, %v6837_v25 }
  0x3a   :  { %6078 = vmatpush3.bf16.msra.mxu1 %v7636_v27  ;;  %6089 = vmatprep.mubr.msk.bf16.mxu1 %vm7492_vm2, %v9420_v17 }
  0x3b   :  { %6079 = vmatprep.subr.bf16.mxu1 %v9420_v17 }
  0x3c   :  { %456 = vmatpush1.bf16.msra.mxu0 %v7609_v19 }
  0x3d   :  { %457 = vmatprep.subr.bf16.mxu0 %v7616_v21 }
  0x3e   :  { %6080 = vmatpush3.bf16.msra.mxu1 %v7644_v29 }
  0x3f   :  { %5478 = vmatmul.mubr.msk.bf16.gmra.mrb[8].mxu0 %vm98_vm1, %v6829_v20  ;;  %6081 = vmatprep.subr.bf16.mxu1 %v9420_v17 }
  0x40   :  { %458 = vmatpush1.bf16.msra.mxu0 %v7623_v23  ;;  %183 = vmatprep.mubr.bf16.mxu0 %v9418_v1 }
  0x41   :  { %459 = vmatprep.subr.bf16.mxu0 %v7627_v24 }
  0x42   :  { %6082 = vmatpush3.bf16.msra.mxu1 %v7657_v32 }
  0x43   :  { %6083 = vmatprep.subr.bf16.mxu1 %v9420_v17 }
  0x44   :  { %460 = vmatpush1.bf16.msra.mxu0 %v7633_v26 }
  0x45   :  { %461 = vmatprep.subr.bf16.mxu0 %v7639_v28 }
  0x46   :  { %6084 = vmatpush3.bf16.msra.mxu1 %v7667_v34 }
  0x47   :  { %5479 = vmatmul.mubr.msk.bf16.gmra.mrb[12].mxu0 %vm98_vm1, %v6837_v25  ;;  %6085 = vmatprep.subr.bf16.mxu1 %v9420_v17 }
  0x48   :  { %462 = vmatpush1.bf16.msra.mxu0 %v7648_v30  ;;  %481 = vmatprep.mubr.bf16.mxu0 %v9418_v1 }
  0x49   :  { %463 = vmatprep.subr.bf16.mxu0 %v7653_v31 }
  0x4a   :  { %6086 = vmatpush3.bf16.msra.mxu1 %v7673_v35 }
  0x4b   :  { %6087 = vmatprep.subr.bf16.mxu1 %v9420_v17 }
  0x4c   :  { %464 = vmatpush1.bf16.msra.mxu0 %v7660_v33 }
  0x4d   :  { %558 = vmatprep.subr.bf16.mxu0 %v7572_v6 }
  0x4e   :  { %6088 = vmatpush3.bf16.msra.mxu1 %v7679_v36 }
  0x4f   :  { %482 = vmatmul.mubr.bf16.vlgmr.msra.gmra.mrb[16].mxu0 %v9418_v1  ;;  %6093 = vmatprep.subr.bf16.mxu1 %v9420_v17 }
  0x50   :  { %559 = vmatpush1.bf16.msra.mxu0 %v7577_v8  ;;  %590 = vmatprep.mubr.bf16.mxu0 %v9418_v1 }
  0x51   :  { %560 = vmatprep.subr.bf16.mxu0 %v7580_v9  ;;  %6090 = vmatmul.mubr.bf16.vlgmr.msra.gmra.mrb[8].mxu1 %v9418_v1 }
  0x52   :  { %6094 = vmatpush3.bf16.msra.mxu1 %v7606_v18  ;;  %6109 = vmatprep.mubr.msk.bf16.mxu1 %vm7492_vm2, %v9420_v17 }
  0x53   :  { %6095 = vmatprep.subr.bf16.mxu1 %v9420_v17 }
  0x54   :  { %561 = vmatpush1.bf16.msra.mxu0 %v7584_v10 }
  0x55   :  { %562 = vmatprep.subr.bf16.mxu0 %v7588_v11 }
  0x56   :  { %6096 = vmatpush3.bf16.msra.mxu1 %v7620_v22 }
  0x57   :  { %6097 = vmatprep.subr.bf16.mxu1 %v9420_v17 }
  0x58   :  { %563 = vmatpush1.bf16.msra.mxu0 %v7597_v14 }
  0x59   :  { %564 = vmatprep.subr.bf16.mxu0 %v7600_v15 }
  0x5a   :  { %6098 = vmatpush3.bf16.msra.mxu1 %v7636_v27 }
  0x5b   :  { %6099 = vmatprep.subr.bf16.mxu1 %v9420_v17 }
  0x5c   :  { %565 = vmatpush1.bf16.msra.mxu0 %v7609_v19 }
  0x5d   :  { %566 = vmatprep.subr.bf16.mxu0 %v7616_v21 }
  0x5e   :  { %6100 = vmatpush3.bf16.msra.mxu1 %v7644_v29 }
  0x5f   :  { %6101 = vmatprep.subr.bf16.mxu1 %v9420_v17 }
  0x60   :  { %567 = vmatpush1.bf16.msra.mxu0 %v7623_v23 }
  0x61   :  { %568 = vmatprep.subr.bf16.mxu0 %v7627_v24 }
  0x62   :  { %6102 = vmatpush3.bf16.msra.mxu1 %v7657_v32 }
  0x63   :  { %6103 = vmatprep.subr.bf16.mxu1 %v9420_v17 }
  0x64   :  { %569 = vmatpush1.bf16.msra.mxu0 %v7633_v26 }
  0x65   :  { %570 = vmatprep.subr.bf16.mxu0 %v7639_v28 }
  0x66   :  { %6104 = vmatpush3.bf16.msra.mxu1 %v7667_v34 }
  0x67   :  { %6105 = vmatprep.subr.bf16.mxu1 %v9420_v17 }
  0x68   :  { %571 = vmatpush1.bf16.msra.mxu0 %v7648_v30 }
  0x69   :  { %572 = vmatprep.subr.bf16.mxu0 %v7653_v31 }
  0x6a   :  { %6106 = vmatpush3.bf16.msra.mxu1 %v7673_v35 }
  0x6b   :  { %6107 = vmatprep.subr.bf16.mxu1 %v9420_v17 }
  0x6c   :  { %573 = vmatpush1.bf16.msra.mxu0 %v7660_v33 }
  0x6d   :  { %668 = vmatprep.subr.bf16.mxu0 %v7572_v6 }
  0x6e   :  { %6108 = vmatpush3.bf16.msra.mxu1 %v7679_v36 }
  0x6f   :  { %6113 = vmatprep.subr.bf16.mxu1 %v9420_v17 }
 0x102   :  { %v155_v37 = vpop.f32.mrb[0].mxu0 }
 0x103   :  { %v157_v38 = vpop.f32.mrb[1].mxu0 }
 0x104   :  { %v7721_v39 = vpop.f32.mrb[2].mxu0  ;;  %v7731_v44 = vpop.f32.mrb[0].mxu1 }
 0x105   :  { %v7723_v40 = vpop.f32.mrb[3].mxu0  ;;  %v228_v46 = vpop.f32.mrb[1].mxu1 }
 0x106   :  { %v7735_v47 = vpop.f32.mrb[2].mxu1 }
 0x107   :  { %v7737_v48 = vpop.f32.mrb[3].mxu1 }
 0x10a   :  { %v7725_v41 = vpop.f32.mrb[4].mxu0 }
 0x10b   :  { %v7727_v42 = vpop.f32.mrb[5].mxu0 }
 0x10c   :  { %v7729_v43 = vpop.f32.mrb[6].mxu0  ;;  %v7745_v52 = vpop.f32.mrb[4].mxu1 }
 0x10d   :  { %v7733_v45 = vpop.f32.mrb[7].mxu0  ;;  %v7749_v54 = vpop.f32.mrb[5].mxu1 }
 0x10e   :  { %v7751_v55 = vpop.f32.mrb[6].mxu1 }
 0x10f   :  { %9422 = vst [vmem:[#allocation11_spill] sm:$0xff] %v7751_v55  ;;  %v7753_v56 = vpop.f32.mrb[7].mxu1 }
 0x112   :  { %v7739_v49 = vpop.f32.mrb[8].mxu0 }
 0x113   :  { %v7741_v50 = vpop.f32.mrb[9].mxu0 }
 0x114   :  { %v7743_v51 = vpop.f32.mrb[10].mxu0 }
 0x115   :  { %v7747_v53 = vpop.f32.mrb[11].mxu0 }
 0x11a   :  { %v7755_v57 = vpop.f32.mrb[12].mxu0 }
 0x11b   :  { %v7757_v58 = vpop.f32.mrb[13].mxu0 }
 0x11c   :  { %v7759_v59 = vpop.f32.mrb[14].mxu0 }
 0x11d   :  { %v7761_v60 = vpop.f32.mrb[15].mxu0 }
 0x11e   :  { %9423 = vst [vmem:[#allocation12_spill] sm:$0xff] %v7761_v60 }
 0x122   :  { %v483_v61 = vpop.f32.mrb[16].mxu0 }
 0x123   :  { %v530_v62 = vadd.f32 %v483_v61, %v155_v37  ;;  %v485_v63 = vpop.f32.mrb[17].mxu0 }
 0x124   :  { %v531_v0 = vadd.f32 %v485_v63, %v157_v38  ;;  %v487_v2 = vpop.f32.mrb[18].mxu0  ;;  %v524_v5 = vpop.f32.mrb[8].mxu1 }
 0x125   :  { %v5508_v3 = vmul.f32 -1.442695, %v530_v62  ;;  %v488_v4 = vpop.f32.mrb[19].mxu0  ;;  %v6091_v7 = vpop.f32.mrb[9].mxu1 }
 0x126   :  { %v527_v12 = vpop.f32.mrb[10].mxu1  ;;  %v5509_v13 = vmul.f32 -1.442695, %v531_v0 }
 0x127   :  { %7052 = vpow2.f32 %v5508_v3  ;;  %v6092_v16 = vpop.f32.mrb[11].mxu1 }
 0x128   :  { %7054 = vpow2.f32 %v5509_v13 }
 0x131   :  { %v7053_v20 = vpop.eup %7052 }
 0x132   :  { %v538_v25 = vadd.f32 1.0, %v7053_v20  ;;  %v7055_v1 = vpop.eup %7054 }
 0x133   :  { %v539_v60 = vadd.f32 1.0, %v7055_v1  ;;  %v9424_v1 = vmov 0.0  }
 0x134   :  { %7056 = vrcp.f32 %v538_v25 }
 0x13e   :  { %v7057_v17 = vpop.eup %7056 }
 0x13f   :  { %v544_v55 = vmul.f32 %v7057_v17, %v524_v5  ;;  %v9425_v17 = vmov 0  }
 0x141   :  { %v545_v37 = vadd.f32 %v544_v55, %v228_v46 }
 0x143   :  { %7058 = vtanh.f32 %v545_v37 }
 0x144   :  { %7060 = vrcp.f32 %v539_v60 }
 0x14d   :  { %v7059_v38 = vpop.eup %7058 }
 0x14e   :  { %v547_v61 = vsub.f32 0.0, %v7059_v38  ;;  %v7061_v62 = vpop.eup %7060 }
 0x150   :  { %v548_v63 = vmul.f32 %v7061_v62, %v547_v61 }
 0x152   :  { %v7763_v2 = vadd.f32 %v7059_v38, %v548_v63 }
 0x154   :  { %v557_v0 = vpack.c.bf16 %v7763_v2, %v7763_v2 }
 0x156   :  { %591 = vmatmul.mubr.bf16.vlgmr.msra.gmra.mrb[20].mxu0 %v557_v0  ;;  %6110 = vmatmul.mubr.bf16.vlgmr.msra.gmra.mrb[12].mxu1 %v557_v0 }
 0x157   :  { %669 = vmatpush1.bf16.msra.mxu0 %v7577_v8  ;;  %6114 = vmatpush3.bf16.msra.mxu1 %v7606_v18 }
 0x158   :  { %670 = vmatprep.subr.bf16.mxu0 %v7580_v9  ;;  %6115 = vmatprep.subr.bf16.mxu1 %v9424_v1 }
 0x159   :  { %700 = vmatprep.mubr.bf16.mxu0 %v9425_v17  ;;  %6129 = vmatprep.mubr.msk.bf16.mxu1 %vm7492_vm2, %v9424_v1 }
 0x15b   :  { %671 = vmatpush1.bf16.msra.mxu0 %v7584_v10  ;;  %6116 = vmatpush3.bf16.msra.mxu1 %v7620_v22 }
 0x15c   :  { %672 = vmatprep.subr.bf16.mxu0 %v7588_v11  ;;  %6117 = vmatprep.subr.bf16.mxu1 %v9424_v1 }
 0x15f   :  { %673 = vmatpush1.bf16.msra.mxu0 %v7597_v14  ;;  %6118 = vmatpush3.bf16.msra.mxu1 %v7636_v27 }
 0x160   :  { %674 = vmatprep.subr.bf16.mxu0 %v7600_v15  ;;  %6119 = vmatprep.subr.bf16.mxu1 %v9424_v1 }
 0x163   :  { %675 = vmatpush1.bf16.msra.mxu0 %v7609_v19  ;;  %6120 = vmatpush3.bf16.msra.mxu1 %v7644_v29 }
 0x164   :  { %676 = vmatprep.subr.bf16.mxu0 %v7616_v21  ;;  %6121 = vmatprep.subr.bf16.mxu1 %v9424_v1 }
 0x167   :  { %677 = vmatpush1.bf16.msra.mxu0 %v7623_v23  ;;  %6122 = vmatpush3.bf16.msra.mxu1 %v7657_v32 }
 0x168   :  { %678 = vmatprep.subr.bf16.mxu0 %v7627_v24  ;;  %6123 = vmatprep.subr.bf16.mxu1 %v9424_v1 }
 0x16b   :  { %679 = vmatpush1.bf16.msra.mxu0 %v7633_v26  ;;  %6124 = vmatpush3.bf16.msra.mxu1 %v7667_v34 }
 0x16c   :  { %680 = vmatprep.subr.bf16.mxu0 %v7639_v28  ;;  %6125 = vmatprep.subr.bf16.mxu1 %v9424_v1 }
 0x16f   :  { %681 = vmatpush1.bf16.msra.mxu0 %v7648_v30  ;;  %6126 = vmatpush3.bf16.msra.mxu1 %v7673_v35 }
 0x170   :  { %682 = vmatprep.subr.bf16.mxu0 %v7653_v31  ;;  %6127 = vmatprep.subr.bf16.mxu1 %v9424_v1 }
 0x173   :  { %683 = vmatpush1.bf16.msra.mxu0 %v7660_v33  ;;  %6128 = vmatpush3.bf16.msra.mxu1 %v7679_v36 }
 0x174   :  { %778 = vmatprep.subr.bf16.mxu0 %v7572_v6  ;;  %6133 = vmatprep.subr.bf16.mxu1 %v9424_v1 }
 0x229   :  { %v592_v46 = vpop.f32.mrb[20].mxu0  ;;  %v633_v55 = vpop.f32.mrb[12].mxu1 }
 0x22a   :  { %v639_v60 = vadd.f32 %v592_v46, %v7721_v39  ;;  %v594_v3 = vpop.f32.mrb[21].mxu0  ;;  %v6111_v4 = vpop.f32.mrb[13].mxu1 }
 0x22b   :  { %v640_v5 = vadd.f32 %v594_v3, %v7723_v40  ;;  %v596_v7 = vpop.f32.mrb[22].mxu0  ;;  %v636_v12 = vpop.f32.mrb[14].mxu1 }
 0x22c   :  { %v5510_v13 = vmul.f32 -1.442695, %v639_v60  ;;  %v597_v16 = vpop.f32.mrb[23].mxu0  ;;  %v6112_v20 = vpop.f32.mrb[15].mxu1 }
 0x22d   :  { %v5511_v25 = vmul.f32 -1.442695, %v640_v5 }
 0x22e   :  { %7062 = vpow2.f32 %v5510_v13 }
 0x22f   :  { %7064 = vpow2.f32 %v5511_v25 }
 0x238   :  { %v7063_v37 = vpop.eup %7062 }
 0x239   :  { %v647_v38 = vadd.f32 1.0, %v7063_v37  ;;  %v7065_v6 = vpop.eup %7064 }
 0x23a   :  { %v648_v63 = vadd.f32 1.0, %v7065_v6 }
 0x23b   :  { %7066 = vrcp.f32 %v647_v38 }
 0x245   :  { %v7067_v61 = vpop.eup %7066 }
 0x246   :  { %v653_v62 = vmul.f32 %v7067_v61, %v633_v55 }
 0x248   :  { %v654_v39 = vadd.f32 %v653_v62, %v7737_v48 }
 0x24a   :  { %7068 = vtanh.f32 %v654_v39 }
 0x24b   :  { %7070 = vrcp.f32 %v648_v63 }
 0x254   :  { %v7069_v40 = vpop.eup %7068 }
 0x255   :  { %v656_v0 = vsub.f32 %v7763_v2, %v7069_v40  ;;  %v7071_v46 = vpop.eup %7070 }
 0x257   :  { %v657_v60 = vmul.f32 %v7071_v46, %v656_v0  ;;  %v7866_v0 = vld [vmem:[#allocation7 + $0x18] ss:$12 sps:$4 sm:$0xff]   ;;  %v7870_v46 = vld [vmem:[#allocation7 + $0x34] ss:$12 sps:$4 sm:$0xff]  }
 0x259   :  { %v7806_v3 = vadd.f32 %v7069_v40, %v657_v60  ;;  %v7855_v40 = vld [vmem:[#allocation7] ss:$12 sps:$4 sm:$0xff]  }
 0x25a   :  { %v7878_v60 = vld [vmem:[#allocation7 + $0x4c] ss:$12 sps:$4 sm:$0xff]  }
 0x25b   :  { %v667_v4 = vpack.c.bf16 %v7806_v3, %v7806_v3 }
 0x25d   :  { %701 = vmatmul.mubr.bf16.vlgmr.msra.gmra.mrb[24].mxu0 %v667_v4  ;;  %6130 = vmatmul.mubr.bf16.vlgmr.msra.gmra.mrb[16].mxu1 %v667_v4  ;;  %v7882_v4 = vld [vmem:[#allocation7 + $0x48] ss:$12 sps:$4 sm:$0xff]  }
 0x25e   :  { %779 = vmatpush1.bf16.msra.mxu0 %v7577_v8  ;;  %6134 = vmatpush3.bf16.msra.mxu1 %v7606_v18  ;;  %v7843_v8 = vld [vmem:[#allocation7 + $0x4] ss:$12 sps:$4 sm:$0xff]  }
 0x25f   :  { %780 = vmatprep.subr.bf16.mxu0 %v7580_v9  ;;  %6135 = vmatprep.subr.bf16.mxu1 %v9424_v1 }
 0x260   :  { %810 = vmatprep.mubr.bf16.mxu0 %v9425_v17  ;;  %6149 = vmatprep.mubr.msk.bf16.mxu1 %vm7492_vm2, %v9424_v1 }
 0x262   :  { %781 = vmatpush1.bf16.msra.mxu0 %v7584_v10  ;;  %6136 = vmatpush3.bf16.msra.mxu1 %v7620_v22 }
 0x263   :  { %782 = vmatprep.subr.bf16.mxu0 %v7588_v11  ;;  %6137 = vmatprep.subr.bf16.mxu1 %v9424_v1 }
 0x266   :  { %783 = vmatpush1.bf16.msra.mxu0 %v7597_v14  ;;  %6138 = vmatpush3.bf16.msra.mxu1 %v7636_v27 }
 0x267   :  { %784 = vmatprep.subr.bf16.mxu0 %v7600_v15  ;;  %6139 = vmatprep.subr.bf16.mxu1 %v9424_v1 }
 0x26a   :  { %785 = vmatpush1.bf16.msra.mxu0 %v7609_v19  ;;  %6140 = vmatpush3.bf16.msra.mxu1 %v7644_v29 }
 0x26b   :  { %786 = vmatprep.subr.bf16.mxu0 %v7616_v21  ;;  %6141 = vmatprep.subr.bf16.mxu1 %v9424_v1 }
 0x26e   :  { %787 = vmatpush1.bf16.msra.mxu0 %v7623_v23  ;;  %6142 = vmatpush3.bf16.msra.mxu1 %v7657_v32 }
 0x26f   :  { %788 = vmatprep.subr.bf16.mxu0 %v7627_v24  ;;  %6143 = vmatprep.subr.bf16.mxu1 %v9424_v1 }
 0x272   :  { %789 = vmatpush1.bf16.msra.mxu0 %v7633_v26  ;;  %6144 = vmatpush3.bf16.msra.mxu1 %v7667_v34 }
 0x273   :  { %790 = vmatprep.subr.bf16.mxu0 %v7639_v28  ;;  %6145 = vmatprep.subr.bf16.mxu1 %v9424_v1 }
 0x276   :  { %791 = vmatpush1.bf16.msra.mxu0 %v7648_v30  ;;  %6146 = vmatpush3.bf16.msra.mxu1 %v7673_v35 }
 0x277   :  { %792 = vmatprep.subr.bf16.mxu0 %v7653_v31  ;;  %6147 = vmatprep.subr.bf16.mxu1 %v9424_v1 }
 0x27a   :  { %793 = vmatpush1.bf16.msra.mxu0 %v7660_v33  ;;  %6148 = vmatpush3.bf16.msra.mxu1 %v7679_v36 }
 0x27b   :  { %888 = vmatprep.subr.bf16.mxu0 %v7843_v8  ;;  %6153 = vmatprep.subr.bf16.mxu1 %v9424_v1 }
 0x330   :  { %v702_v9 = vpop.f32.mrb[24].mxu0  ;;  %v743_v10 = vpop.f32.mrb[16].mxu1 }
 0x331   :  { %v749_v11 = vadd.f32 %v702_v9, %v7725_v41  ;;  %v704_v14 = vpop.f32.mrb[25].mxu0  ;;  %v6131_v15 = vpop.f32.mrb[17].mxu1 }
 0x332   :  { %v750_v19 = vadd.f32 %v704_v14, %v7727_v42  ;;  %v706_v21 = vpop.f32.mrb[26].mxu0  ;;  %v746_v48 = vpop.f32.mrb[18].mxu1 }
 0x333   :  { %v5512_v55 = vmul.f32 -1.442695, %v749_v11  ;;  %v707_v5 = vpop.f32.mrb[27].mxu0  ;;  %v6132_v7 = vpop.f32.mrb[19].mxu1 }
 0x334   :  { %v5513_v12 = vmul.f32 -1.442695, %v750_v19 }
 0x335   :  { %7072 = vpow2.f32 %v5512_v55 }
 0x336   :  { %7074 = vpow2.f32 %v5513_v12 }
 0x33f   :  { %v7073_v13 = vpop.eup %7072 }
 0x340   :  { %v757_v16 = vadd.f32 1.0, %v7073_v13  ;;  %v7075_v20 = vpop.eup %7074 }
 0x341   :  { %v758_v38 = vadd.f32 1.0, %v7075_v20  ;;  %v7930_v20 = vld [vmem:[#allocation7 + $0x38] ss:$12 sps:$4 sm:$0xff]  }
 0x342   :  { %7076 = vrcp.f32 %v757_v16  ;;  %v7915_v16 = vld [vmem:[#allocation7 + $0x8] ss:$12 sps:$4 sm:$0xff]  }
 0x34c   :  { %v7077_v25 = vpop.eup %7076 }
 0x34d   :  { %v763_v37 = vmul.f32 %v7077_v25, %v743_v10  ;;  %v7936_v25 = vld [vmem:[#allocation7 + $0x50] ss:$12 sps:$4 sm:$0xff]  }
 0x34f   :  { %v764_v41 = vadd.f32 %v7731_v44, %v763_v37  ;;  %v7859_v44 = vld [vmem:[#allocation7 + $0x1c] ss:$12 sps:$4 sm:$0xff]   ;;  %v7941_v37 = vld [vmem:[#allocation7 + $0x60] ss:$12 sps:$4 sm:$0xff]  }
 0x351   :  { %7078 = vtanh.f32 %v764_v41  ;;  %v7944_v41 = vld [vmem:[#allocation7 + $0x68] ss:$12 sps:$4 sm:$0xff]  }
 0x352   :  { %7080 = vrcp.f32 %v758_v38  ;;  %v7947_v38 = vld [vmem:[#allocation7 + $0x7c] ss:$12 sps:$4 sm:$0xff]  }
 0x35b   :  { %v7079_v42 = vpop.eup %7078 }
 0x35c   :  { %v766_v6 = vsub.f32 %v7806_v3, %v7079_v42  ;;  %v7081_v61 = vpop.eup %7080 }
 0x35e   :  { %v767_v62 = vmul.f32 %v7081_v61, %v766_v6  ;;  %v7955_v6 = vld [vmem:[#allocation7 + $0x94] ss:$12 sps:$4 sm:$0xff]   ;;  %v7959_v61 = vld [vmem:[#allocation7 + $0x90] ss:$12 sps:$4 sm:$0xff]  }
 0x360   :  { %v7851_v39 = vadd.f32 %v7079_v42, %v767_v62  ;;  %v7951_v42 = vld [vmem:[#allocation7 + $0x78] ss:$12 sps:$4 sm:$0xff]  }
 0x361   :  { %v7963_v62 = vld [vmem:[#allocation7 + $0xac] ss:$12 sps:$4 sm:$0xff]  }
 0x362   :  { %v777_v63 = vpack.c.bf16 %v7851_v39, %v7851_v39 }
 0x364   :  { %811 = vmatmul.mubr.bf16.vlgmr.msra.gmra.mrb[28].mxu0 %v777_v63  ;;  %6150 = vmatmul.mubr.bf16.vlgmr.msra.gmra.mrb[20].mxu1 %v777_v63  ;;  %v7967_v63 = vld [vmem:[#allocation7 + $0xa8] ss:$12 sps:$4 sm:$0xff]  }
 0x365   :  { %889 = vmatpush1.bf16.msra.mxu0 %v7855_v40  ;;  %6154 = vmatpush3.bf16.msra.mxu1 %v7606_v18  ;;  %v7874_v18 = vld [vmem:[#allocation7 + $0x30] ss:$12 sps:$4 sm:$0xff]  }
 0x366   :  { %890 = vmatprep.subr.bf16.mxu0 %v7859_v44  ;;  %6155 = vmatprep.subr.bf16.mxu1 %v9424_v1 }
 0x367   :  { %920 = vmatprep.mubr.bf16.mxu0 %v9425_v17  ;;  %6169 = vmatprep.mubr.msk.bf16.mxu1 %vm7492_vm2, %v9424_v1 }
 0x369   :  { %891 = vmatpush1.bf16.msra.mxu0 %v7866_v0  ;;  %6156 = vmatpush3.bf16.msra.mxu1 %v7620_v22  ;;  %v7886_v22 = vld [vmem:[#allocation7 + $0x64] ss:$12 sps:$4 sm:$0xff]  }
 0x36a   :  { %892 = vmatprep.subr.bf16.mxu0 %v7870_v46  ;;  %6157 = vmatprep.subr.bf16.mxu1 %v9424_v1 }
 0x36d   :  { %893 = vmatpush1.bf16.msra.mxu0 %v7874_v18  ;;  %6158 = vmatpush3.bf16.msra.mxu1 %v7636_v27 }
 0x36e   :  { %894 = vmatprep.subr.bf16.mxu0 %v7878_v60  ;;  %6159 = vmatprep.subr.bf16.mxu1 %v9424_v1 }
 0x371   :  { %895 = vmatpush1.bf16.msra.mxu0 %v7882_v4  ;;  %6160 = vmatpush3.bf16.msra.mxu1 %v7644_v29 }
 0x372   :  { %896 = vmatprep.subr.bf16.mxu0 %v7886_v22  ;;  %6161 = vmatprep.subr.bf16.mxu1 %v9424_v1 }
 0x375   :  { %897 = vmatpush1.bf16.msra.mxu0 %v7623_v23  ;;  %6162 = vmatpush3.bf16.msra.mxu1 %v7657_v32 }
 0x376   :  { %898 = vmatprep.subr.bf16.mxu0 %v7627_v24  ;;  %6163 = vmatprep.subr.bf16.mxu1 %v9424_v1 }
 0x379   :  { %899 = vmatpush1.bf16.msra.mxu0 %v7633_v26  ;;  %6164 = vmatpush3.bf16.msra.mxu1 %v7667_v34 }
 0x37a   :  { %900 = vmatprep.subr.bf16.mxu0 %v7639_v28  ;;  %6165 = vmatprep.subr.bf16.mxu1 %v9424_v1 }
 0x37d   :  { %901 = vmatpush1.bf16.msra.mxu0 %v7648_v30  ;;  %6166 = vmatpush3.bf16.msra.mxu1 %v7673_v35 }
 0x37e   :  { %902 = vmatprep.subr.bf16.mxu0 %v7653_v31  ;;  %6167 = vmatprep.subr.bf16.mxu1 %v9424_v1 }
 0x381   :  { %903 = vmatpush1.bf16.msra.mxu0 %v7660_v33  ;;  %6168 = vmatpush3.bf16.msra.mxu1 %v7679_v36 }
 0x382   :  { %998 = vmatprep.subr.bf16.mxu0 %v7843_v8  ;;  %6173 = vmatprep.subr.bf16.mxu1 %v9424_v1 }
 0x437   :  { %v812_v23 = vpop.f32.mrb[28].mxu0  ;;  %v853_v24 = vpop.f32.mrb[20].mxu1 }
 0x438   :  { %v859_v26 = vadd.f32 %v812_v23, %v7729_v43  ;;  %v814_v27 = vpop.f32.mrb[29].mxu0  ;;  %v6151_v28 = vpop.f32.mrb[21].mxu1 }
 0x439   :  { %v860_v29 = vadd.f32 %v814_v27, %v7733_v45  ;;  %v816_v30 = vpop.f32.mrb[30].mxu0  ;;  %v856_v31 = vpop.f32.mrb[22].mxu1 }
 0x43a   :  { %v5514_v32 = vmul.f32 -1.442695, %v859_v26  ;;  %v817_v9 = vpop.f32.mrb[31].mxu0  ;;  %v6152_v10 = vpop.f32.mrb[23].mxu1 }
 0x43b   :  { %v5515_v33 = vmul.f32 -1.442695, %v860_v29 }
 0x43c   :  { %7082 = vpow2.f32 %v5514_v32 }
 0x43d   :  { %7084 = vpow2.f32 %v5515_v33 }
 0x446   :  { %v7083_v11 = vpop.eup %7082 }
 0x447   :  { %v867_v14 = vadd.f32 1.0, %v7083_v11  ;;  %v7085_v15 = vpop.eup %7084 }
 0x448   :  { %v868_v48 = vadd.f32 1.0, %v7085_v15 }
 0x449   :  { %7086 = vrcp.f32 %v867_v14 }
 0x453   :  { %v7087_v19 = vpop.eup %7086 }
 0x454   :  { %v873_v21 = vmul.f32 %v7087_v19, %v853_v24 }
 0x456   :  { %v874_v43 = vadd.f32 %v7735_v47, %v873_v21  ;;  %v7924_v47 = vld [vmem:[#allocation7 + $0x20] ss:$12 sps:$4 sm:$0xff]  }
 0x458   :  { %7088 = vtanh.f32 %v874_v43 }
 0x459   :  { %7090 = vrcp.f32 %v868_v48 }
 0x462   :  { %v7089_v45 = vpop.eup %7088 }
 0x463   :  { %v876_v55 = vsub.f32 %v7851_v39, %v7089_v45  ;;  %v7091_v5 = vpop.eup %7090 }
 0x465   :  { %v877_v7 = vmul.f32 %v7091_v5, %v876_v55  ;;  %v8011_v55 = vld [vmem:[#allocation7 + $0x98] ss:$12 sps:$4 sm:$0xff]   ;;  %v8017_v5 = vld [vmem:[#allocation7 + $0xb0] ss:$12 sps:$4 sm:$0xff]  }
 0x467   :  { %v7910_v12 = vadd.f32 %v7089_v45, %v877_v7 }
 0x469   :  { %v887_v13 = vpack.c.bf16 %v7910_v12, %v7910_v12 }
 0x46b   :  { %921 = vmatmul.mubr.bf16.vlgmr.msra.gmra.mrb[32].mxu0 %v887_v13  ;;  %6170 = vmatmul.mubr.bf16.vlgmr.msra.gmra.mrb[24].mxu1 %v887_v13 }
 0x46c   :  { %999 = vmatpush1.bf16.msra.mxu0 %v7855_v40  ;;  %6174 = vmatpush3.bf16.msra.mxu1 %v7915_v16 }
 0x46d   :  { %1000 = vmatprep.subr.bf16.mxu0 %v7859_v44  ;;  %6175 = vmatprep.subr.bf16.mxu1 %v9424_v1 }
 0x46e   :  { %1030 = vmatprep.mubr.bf16.mxu0 %v9425_v17  ;;  %6189 = vmatprep.mubr.msk.bf16.mxu1 %vm7492_vm2, %v9424_v1 }
 0x470   :  { %1001 = vmatpush1.bf16.msra.mxu0 %v7866_v0  ;;  %6176 = vmatpush3.bf16.msra.mxu1 %v7924_v47 }
 0x471   :  { %1002 = vmatprep.subr.bf16.mxu0 %v7870_v46  ;;  %6177 = vmatprep.subr.bf16.mxu1 %v9424_v1 }
 0x474   :  { %1003 = vmatpush1.bf16.msra.mxu0 %v7874_v18  ;;  %6178 = vmatpush3.bf16.msra.mxu1 %v7930_v20 }
 0x475   :  { %1004 = vmatprep.subr.bf16.mxu0 %v7878_v60  ;;  %6179 = vmatprep.subr.bf16.mxu1 %v9424_v1 }
 0x478   :  { %1005 = vmatpush1.bf16.msra.mxu0 %v7882_v4  ;;  %6180 = vmatpush3.bf16.msra.mxu1 %v7936_v25 }
 0x479   :  { %1006 = vmatprep.subr.bf16.mxu0 %v7886_v22  ;;  %6181 = vmatprep.subr.bf16.mxu1 %v9424_v1 }
 0x47c   :  { %1007 = vmatpush1.bf16.msra.mxu0 %v7941_v37  ;;  %6182 = vmatpush3.bf16.msra.mxu1 %v7944_v41 }
 0x47d   :  { %1008 = vmatprep.subr.bf16.mxu0 %v7947_v38  ;;  %6183 = vmatprep.subr.bf16.mxu1 %v9424_v1 }
 0x480   :  { %1009 = vmatpush1.bf16.msra.mxu0 %v7951_v42  ;;  %6184 = vmatpush3.bf16.msra.mxu1 %v7667_v34 }
 0x481   :  { %1010 = vmatprep.subr.bf16.mxu0 %v7955_v6  ;;  %6185 = vmatprep.subr.bf16.mxu1 %v9424_v1 }
 0x484   :  { %1011 = vmatpush1.bf16.msra.mxu0 %v7959_v61  ;;  %6186 = vmatpush3.bf16.msra.mxu1 %v7673_v35 }
 0x485   :  { %1012 = vmatprep.subr.bf16.mxu0 %v7963_v62  ;;  %6187 = vmatprep.subr.bf16.mxu1 %v9424_v1 }
 0x488   :  { %1013 = vmatpush1.bf16.msra.mxu0 %v7967_v63  ;;  %6188 = vmatpush3.bf16.msra.mxu1 %v7679_v36 }
 0x489   :  { %1108 = vmatprep.subr.bf16.mxu0 %v7843_v8  ;;  %6193 = vmatprep.subr.bf16.mxu1 %v9424_v1 }
 0x53e   :  { %v922_v34 = vpop.f32.mrb[32].mxu0  ;;  %v963_v23 = vpop.f32.mrb[24].mxu1 }
 0x53f   :  { %v969_v35 = vadd.f32 %v922_v34, %v7739_v49  ;;  %v924_v24 = vpop.f32.mrb[33].mxu0  ;;  %v6171_v26 = vpop.f32.mrb[25].mxu1 }
 0x540   :  { %v970_v27 = vadd.f32 %v924_v24, %v7741_v50  ;;  %v926_v28 = vpop.f32.mrb[34].mxu0  ;;  %v966_v29 = vpop.f32.mrb[26].mxu1 }
 0x541   :  { %v5516_v30 = vmul.f32 -1.442695, %v969_v35  ;;  %v927_v31 = vpop.f32.mrb[35].mxu0  ;;  %v6172_v32 = vpop.f32.mrb[27].mxu1 }
 0x542   :  { %v5517_v9 = vmul.f32 -1.442695, %v970_v27 }
 0x543   :  { %7092 = vpow2.f32 %v5516_v30 }
 0x544   :  { %7094 = vpow2.f32 %v5517_v9 }
 0x54d   :  { %v7093_v36 = vpop.eup %7092 }
 0x54e   :  { %v977_v10 = vadd.f32 1.0, %v7093_v36  ;;  %v7095_v33 = vpop.eup %7094 }
 0x54f   :  { %v978_v15 = vadd.f32 1.0, %v7095_v33 }
 0x550   :  { %7096 = vrcp.f32 %v977_v10 }
 0x55a   :  { %v7097_v11 = vpop.eup %7096 }
 0x55b   :  { %v983_v14 = vmul.f32 %v7097_v11, %v963_v23 }
 0x55d   :  { %v984_v49 = vadd.f32 %v983_v14, %v7749_v54  ;;  %v8005_v54 = vld [vmem:[#allocation7 + $0x80] ss:$12 sps:$4 sm:$0xff]  }
 0x55f   :  { %7098 = vtanh.f32 %v984_v49 }
 0x560   :  { %7100 = vrcp.f32 %v978_v15 }
 0x569   :  { %v7099_v50 = vpop.eup %7098 }
 0x56a   :  { %v986_v19 = vsub.f32 %v7910_v12, %v7099_v50  ;;  %v7101_v21 = vpop.eup %7100 }
 0x56c   :  { %v987_v43 = vmul.f32 %v7101_v21, %v986_v19 }
 0x56e   :  { %v7977_v48 = vadd.f32 %v7099_v50, %v987_v43 }
 0x570   :  { %v997_v45 = vpack.c.bf16 %v7977_v48, %v7977_v48 }
 0x572   :  { %1031 = vmatmul.mubr.bf16.vlgmr.msra.gmra.mrb[36].mxu0 %v997_v45  ;;  %6190 = vmatmul.mubr.bf16.vlgmr.msra.gmra.mrb[28].mxu1 %v997_v45  ;;  %v6852_v45 = vld [vmem:[#allocation5] ss:$12 sps:$4 sm:$0xff]  }
 0x573   :  { %1109 = vmatpush1.bf16.msra.mxu0 %v7855_v40  ;;  %6194 = vmatpush3.bf16.msra.mxu1 %v7915_v16 }
 0x574   :  { %1110 = vmatprep.subr.bf16.mxu0 %v7859_v44  ;;  %6195 = vmatprep.subr.bf16.mxu1 %v9424_v1 }
 0x575   :  { %1140 = vmatprep.mubr.bf16.mxu0 %v9425_v17  ;;  %6209 = vmatprep.mubr.msk.bf16.mxu1 %vm7492_vm2, %v9424_v1 }
 0x577   :  { %1111 = vmatpush1.bf16.msra.mxu0 %v7866_v0  ;;  %6196 = vmatpush3.bf16.msra.mxu1 %v7924_v47 }
 0x578   :  { %1112 = vmatprep.subr.bf16.mxu0 %v7870_v46  ;;  %6197 = vmatprep.subr.bf16.mxu1 %v9424_v1 }
 0x57b   :  { %1113 = vmatpush1.bf16.msra.mxu0 %v7874_v18  ;;  %6198 = vmatpush3.bf16.msra.mxu1 %v7930_v20 }
 0x57c   :  { %1114 = vmatprep.subr.bf16.mxu0 %v7878_v60  ;;  %6199 = vmatprep.subr.bf16.mxu1 %v9424_v1 }
 0x57f   :  { %1115 = vmatpush1.bf16.msra.mxu0 %v7882_v4  ;;  %6200 = vmatpush3.bf16.msra.mxu1 %v7936_v25 }
 0x580   :  { %1116 = vmatprep.subr.bf16.mxu0 %v7886_v22  ;;  %6201 = vmatprep.subr.bf16.mxu1 %v9424_v1 }
 0x583   :  { %1117 = vmatpush1.bf16.msra.mxu0 %v7941_v37  ;;  %6202 = vmatpush3.bf16.msra.mxu1 %v7944_v41 }
 0x584   :  { %1118 = vmatprep.subr.bf16.mxu0 %v7947_v38  ;;  %6203 = vmatprep.subr.bf16.mxu1 %v9424_v1 }
 0x587   :  { %1119 = vmatpush1.bf16.msra.mxu0 %v7951_v42  ;;  %6204 = vmatpush3.bf16.msra.mxu1 %v8005_v54 }
 0x588   :  { %1120 = vmatprep.subr.bf16.mxu0 %v7955_v6  ;;  %6205 = vmatprep.subr.bf16.mxu1 %v9424_v1 }
 0x58b   :  { %1121 = vmatpush1.bf16.msra.mxu0 %v7959_v61  ;;  %6206 = vmatpush3.bf16.msra.mxu1 %v8011_v55 }
 0x58c   :  { %1122 = vmatprep.subr.bf16.mxu0 %v7963_v62  ;;  %6207 = vmatprep.subr.bf16.mxu1 %v9424_v1 }
 0x58f   :  { %1123 = vmatpush1.bf16.msra.mxu0 %v7967_v63  ;;  %6208 = vmatpush3.bf16.msra.mxu1 %v8017_v5 }
 0x590   :  { %1218 = vmatprep.subr.bf16.mxu0 %v7843_v8  ;;  %6213 = vmatprep.subr.bf16.mxu1 %v9424_v1 }
 0x645   :  { %v1032_v7 = vpop.f32.mrb[36].mxu0  ;;  %v1073_v13 = vpop.f32.mrb[28].mxu1 }
 0x646   :  { %v1079_v34 = vadd.f32 %v1032_v7, %v7743_v51  ;;  %v1034_v23 = vpop.f32.mrb[37].mxu0  ;;  %v6191_v35 = vpop.f32.mrb[29].mxu1  ;;  %v6856_v7 = vld [vmem:[#allocation5 + $0x18] ss:$12 sps:$4 sm:$0xff]  }
 0x647   :  { %v1080_v24 = vadd.f32 %v1034_v23, %v7747_v53  ;;  %v1036_v26 = vpop.f32.mrb[38].mxu0  ;;  %v1076_v27 = vpop.f32.mrb[30].mxu1  ;;  %v6860_v23 = vld [vmem:[#allocation5 + $0x30] ss:$12 sps:$4 sm:$0xff]   ;;  %v6866_v35 = vld [vmem:[#allocation5 + $0x4c] ss:$12 sps:$4 sm:$0xff]  }
 0x648   :  { %v5518_v28 = vmul.f32 -1.442695, %v1079_v34  ;;  %v1037_v29 = vpop.f32.mrb[39].mxu0  ;;  %v6192_v30 = vpop.f32.mrb[31].mxu1  ;;  %v6863_v34 = vld [vmem:[#allocation5 + $0x38] ss:$12 sps:$4 sm:$0xff]  }
 0x649   :  { %v5519_v31 = vmul.f32 -1.442695, %v1080_v24  ;;  %v6867_v24 = vld [vmem:[#allocation5 + $0x50] ss:$12 sps:$4 sm:$0xff]   ;;  %v6871_v26 = vld [vmem:[#allocation5 + $0x68] ss:$12 sps:$4 sm:$0xff]  }
 0x64a   :  { %7102 = vpow2.f32 %v5518_v28  ;;  %v6868_v27 = vld [vmem:[#allocation5 + $0x60] ss:$12 sps:$4 sm:$0xff]   ;;  %v6874_v28 = vld [vmem:[#allocation5 + $0x7c] ss:$12 sps:$4 sm:$0xff]   ;;  %v6872_v30 = vld [vmem:[#allocation5 + $0x78] ss:$12 sps:$4 sm:$0xff]  }
 0x64b   :  { %7104 = vpow2.f32 %v5519_v31  ;;  %v6875_v29 = vld [vmem:[#allocation5 + $0x80] ss:$12 sps:$4 sm:$0xff]  }
 0x64c   :  { %v6878_v31 = vld [vmem:[#allocation5 + $0x94] ss:$12 sps:$4 sm:$0xff]  }
 0x654   :  { %v7103_v32 = vpop.eup %7102 }
 0x655   :  { %v1087_v9 = vadd.f32 1.0, %v7103_v32  ;;  %v7105_v8 = vpop.eup %7104  ;;  %v6879_v32 = vld [vmem:[#allocation5 + $0x98] ss:$12 sps:$4 sm:$0xff]  }
 0x656   :  { %v1088_v33 = vadd.f32 1.0, %v7105_v8  ;;  %v6882_v8 = vld [vmem:[#allocation5 + $0xac] ss:$12 sps:$4 sm:$0xff]  }
 0x657   :  { %7106 = vrcp.f32 %v1087_v9  ;;  %v6876_v9 = vld [vmem:[#allocation5 + $0x90] ss:$12 sps:$4 sm:$0xff]  }
 0x661   :  { %v7107_v36 = vpop.eup %7106 }
 0x662   :  { %v1093_v10 = vmul.f32 %v7107_v36, %v1073_v13  ;;  %v6862_v13 = vld [vmem:[#allocation5 + $0x34] ss:$12 sps:$4 sm:$0xff]   ;;  %v6883_v36 = vld [vmem:[#allocation5 + $0xb0] ss:$12 sps:$4 sm:$0xff]  }
 0x664   :  { %v1094_v51 = vadd.f32 %v1093_v10, %v7753_v56  ;;  %v6854_v56 = vld [vmem:[#allocation5 + $0x4] ss:$12 sps:$4 sm:$0xff]   ;;  %v6880_v10 = vld [vmem:[#allocation5 + $0xa8] ss:$12 sps:$4 sm:$0xff]  }
 0x666   :  { %7108 = vtanh.f32 %v1094_v51  ;;  %v1330_v51 = vpack.c.bf16 %v7910_v12, %v7851_v39  ;;  %v8088_v39 = vld [vmem:[#allocation7 + $0xdc] ss:$12 sps:$4 sm:$0xff]   ;;  %v8090_v12 = vld [vmem:[#allocation7 + $0xd8] ss:$12 sps:$4 sm:$0xff]  }
 0x667   :  { %7110 = vrcp.f32 %v1088_v33 }
 0x670   :  { %v7109_v53 = vpop.eup %7108 }
 0x671   :  { %v1096_v11 = vsub.f32 %v7977_v48, %v7109_v53  ;;  %v7111_v14 = vpop.eup %7110 }
 0x673   :  { %v1097_v49 = vmul.f32 %v7111_v14, %v1096_v11  ;;  %v8084_v11 = vld [vmem:[#allocation7 + $0xc0] ss:$12 sps:$4 sm:$0xff]   ;;  %v8096_v14 = vld [vmem:[#allocation7 + $0xf0] ss:$12 sps:$4 sm:$0xff]  }
 0x675   :  { %v8026_v15 = vadd.f32 %v7109_v53, %v1097_v49  ;;  %v8082_v53 = vld [vmem:[#allocation7 + $0xc4] ss:$12 sps:$4 sm:$0xff]   ;;  %v8100_v49 = vld [vmem:[#allocation7 + $0x10c] ss:$12 sps:$4 sm:$0xff]  }
 0x677   :  { %v1107_v50 = vpack.c.bf16 %v8026_v15, %v8026_v15  ;;  %v1331_v33 = vpack.c.bf16 %v8026_v15, %v7977_v48  ;;  %v8094_v48 = vld [vmem:[#allocation7 + $0xf4] ss:$12 sps:$4 sm:$0xff]  }
 0x679   :  { %1141 = vmatmul.mubr.bf16.vlgmr.msra.gmra.mrb[40].mxu0 %v1107_v50  ;;  %6210 = vmatmul.mubr.bf16.vlgmr.msra.gmra.mrb[32].mxu1 %v1107_v50  ;;  %v8106_v50 = vld [vmem:[#allocation7 + $0x124] ss:$12 sps:$4 sm:$0xff]  }
 0x67a   :  { %1219 = vmatpush1.bf16.msra.mxu0 %v7855_v40  ;;  %6214 = vmatpush3.bf16.msra.mxu1 %v7915_v16  ;;  %v6855_v40 = vld [vmem:[#allocation5 + $0x8] ss:$12 sps:$4 sm:$0xff]  }
 0x67b   :  { %1220 = vmatprep.subr.bf16.mxu0 %v7859_v44  ;;  %6215 = vmatprep.subr.bf16.mxu1 %v9424_v1 }
 0x67c   :  { %1250 = vmatprep.mubr.bf16.mxu0 %v9425_v17  ;;  %6229 = vmatprep.mubr.msk.bf16.mxu1 %vm7492_vm2, %v9424_v1 }
 0x67e   :  { %1221 = vmatpush1.bf16.msra.mxu0 %v7866_v0  ;;  %6216 = vmatpush3.bf16.msra.mxu1 %v7924_v47 }
 0x67f   :  { %1222 = vmatprep.subr.bf16.mxu0 %v7870_v46  ;;  %6217 = vmatprep.subr.bf16.mxu1 %v9424_v1 }
 0x682   :  { %1223 = vmatpush1.bf16.msra.mxu0 %v7874_v18  ;;  %6218 = vmatpush3.bf16.msra.mxu1 %v7930_v20 }
 0x683   :  { %1224 = vmatprep.subr.bf16.mxu0 %v7878_v60  ;;  %6219 = vmatprep.subr.bf16.mxu1 %v9424_v1 }
 0x686   :  { %1225 = vmatpush1.bf16.msra.mxu0 %v7882_v4  ;;  %6220 = vmatpush3.bf16.msra.mxu1 %v7936_v25 }
 0x687   :  { %1226 = vmatprep.subr.bf16.mxu0 %v7886_v22  ;;  %6221 = vmatprep.subr.bf16.mxu1 %v9424_v1 }
 0x68a   :  { %1227 = vmatpush1.bf16.msra.mxu0 %v7941_v37  ;;  %6222 = vmatpush3.bf16.msra.mxu1 %v7944_v41 }
 0x68b   :  { %1228 = vmatprep.subr.bf16.mxu0 %v7947_v38  ;;  %6223 = vmatprep.subr.bf16.mxu1 %v9424_v1 }
 0x68e   :  { %1229 = vmatpush1.bf16.msra.mxu0 %v7951_v42  ;;  %6224 = vmatpush3.bf16.msra.mxu1 %v8005_v54 }
 0x68f   :  { %1230 = vmatprep.subr.bf16.mxu0 %v7955_v6  ;;  %6225 = vmatprep.subr.bf16.mxu1 %v9424_v1 }
 0x692   :  { %1231 = vmatpush1.bf16.msra.mxu0 %v7959_v61  ;;  %6226 = vmatpush3.bf16.msra.mxu1 %v8011_v55  ;;  %v6858_v55 = vld [vmem:[#allocation5 + $0x1c] ss:$12 sps:$4 sm:$0xff]  }
 0x693   :  { %1232 = vmatprep.subr.bf16.mxu0 %v7963_v62  ;;  %6227 = vmatprep.subr.bf16.mxu1 %v9424_v1 }
 0x696   :  { %1233 = vmatpush1.bf16.msra.mxu0 %v7967_v63  ;;  %6228 = vmatpush3.bf16.msra.mxu1 %v8017_v5  ;;  %v6859_v5 = vld [vmem:[#allocation5 + $0x20] ss:$12 sps:$4 sm:$0xff]  }
 0x697   :  { %1493 = vmatprep.subr.bf16.mxu0 %v6854_v56  ;;  %6233 = vmatprep.subr.bf16.mxu1 %v6855_v40  ;;  %v8108_v56 = vld [vmem:[#allocation7 + $0x120] ss:$12 sps:$4 sm:$0xff]  }
 0x74c   :  { %v1142_v44 = vpop.f32.mrb[40].mxu0  ;;  %v1183_v0 = vpop.f32.mrb[32].mxu1 }
 0x74d   :  { %v1189_v46 = vadd.f32 %v1142_v44, %v7755_v57  ;;  %v1144_v18 = vpop.f32.mrb[41].mxu0  ;;  %v6211_v60 = vpop.f32.mrb[33].mxu1  ;;  %v8114_v44 = vld [vmem:[#allocation7 + $0x138] ss:$12 sps:$4 sm:$0xff]  }
 0x74e   :  { %v1190_v4 = vadd.f32 %v1144_v18, %v7757_v58  ;;  %v1146_v22 = vpop.f32.mrb[42].mxu0  ;;  %v1186_v16 = vpop.f32.mrb[34].mxu1  ;;  %v8122_v18 = vld [vmem:[#allocation7 + $0xc8] ss:$12 sps:$4 sm:$0xff]   ;;  %v8124_v60 = vld [vmem:[#allocation7 + $0x16c] ss:$12 sps:$4 sm:$0xff]  }
 0x74f   :  { %v5520_v47 = vmul.f32 -1.442695, %v1189_v46  ;;  %v1147_v20 = vpop.f32.mrb[43].mxu0  ;;  %v6212_v25 = vpop.f32.mrb[35].mxu1  ;;  %v8120_v46 = vld [vmem:[#allocation7 + $0x150] ss:$12 sps:$4 sm:$0xff]  }
 0x750   :  { %v5521_v37 = vmul.f32 -1.442695, %v1190_v4  ;;  %v8129_v4 = vld [vmem:[#allocation7 + $0x168] ss:$12 sps:$4 sm:$0xff]   ;;  %v8131_v22 = vld [vmem:[#allocation7 + $0xe0] ss:$12 sps:$4 sm:$0xff]  }
 0x751   :  { %7112 = vpow2.f32 %v5520_v47  ;;  %v8139_v16 = vld [vmem:[#allocation7 + $0xf8] ss:$12 sps:$4 sm:$0xff]   ;;  %v8142_v47 = vld [vmem:[#allocation7 + $0x110] ss:$12 sps:$4 sm:$0xff]   ;;  %v8146_v20 = vld [vmem:[#allocation7 + $0x128] ss:$12 sps:$4 sm:$0xff]  }
 0x752   :  { %7114 = vpow2.f32 %v5521_v37  ;;  %v8150_v25 = vld [vmem:[#allocation7 + $0x140] ss:$12 sps:$4 sm:$0xff]   ;;  %v8154_v37 = vld [vmem:[#allocation7 + $0x158] ss:$12 sps:$4 sm:$0xff]  }
 0x75b   :  { %v7113_v41 = vpop.eup %7112 }
 0x75c   :  { %v1197_v38 = vadd.f32 1.0, %v7113_v41  ;;  %v7115_v42 = vpop.eup %7114  ;;  %v8158_v41 = vld [vmem:[#allocation7 + $0x170] ss:$12 sps:$4 sm:$0xff]  }
 0x75d   :  { %v1198_v62 = vadd.f32 1.0, %v7115_v42 }
 0x75e   :  { %7116 = vrcp.f32 %v1197_v38 }
 0x768   :  { %v7117_v6 = vpop.eup %7116 }
 0x769   :  { %v1203_v61 = vmul.f32 %v7117_v6, %v1183_v0  ;;  %v8118_v0 = vld [vmem:[#allocation7 + $0x154] ss:$12 sps:$4 sm:$0xff]  }
 0x76b   :  { %v1204_v57 = vadd.f32 %v7745_v52, %v1203_v61  ;;  %v1329_v52 = vpack.c.bf16 %v7806_v3, %v7763_v2  ;;  %v6864_v2 = vld [vmem:[#allocation5 + $0x48] ss:$12 sps:$4 sm:$0xff]   ;;  %v6870_v3 = vld [vmem:[#allocation5 + $0x64] ss:$12 sps:$4 sm:$0xff]  }
 0x76d   :  { %7118 = vtanh.f32 %v1204_v57 }
 0x76e   :  { %7120 = vrcp.f32 %v1198_v62  ;;  %v9426_v62 = vld [vmem:[#allocation12_spill] sm:$0xff] }
 0x777   :  { %v7119_v58 = vpop.eup %7118 }
 0x778   :  { %v1206_v63 = vsub.f32 %v8026_v15, %v7119_v58  ;;  %v7121_v19 = vpop.eup %7120  ;;  %v8102_v15 = vld [vmem:[#allocation7 + $0x108] ss:$12 sps:$4 sm:$0xff]  }
 0x77a   :  { %v1207_v21 = vmul.f32 %v7121_v19, %v1206_v63 }
 0x77c   :  { %v8067_v43 = vadd.f32 %v7119_v58, %v1207_v21 }
 0x77e   :  { %v1217_v54 = vpack.c.bf16 %v8067_v43, %v8067_v43 }
 0x780   :  { %1251 = vmatmul.mubr.bf16.vlgmr.msra.gmra.mrb[44].mxu0 %v1217_v54  ;;  %6230 = vmatmul.mubr.bf16.vlgmr.msra.gmra.mrb[36].mxu1 %v1217_v54 }
 0x781   :  { %1494 = vmatpush1.bf16.msra.mxu0 %v6852_v45  ;;  %6234 = vmatpush3.bf16.msra.mxu1 %v6855_v40  ;;  %v8112_v40 = vld [vmem:[#allocation7 + $0x13c] ss:$12 sps:$4 sm:$0xff]  }
 0x782   :  { %6249 = vmatprep.mubr.bf16.mxu1 %v1329_v52  ;;  %1495 = vmatprep.subr.bf16.mxu0 %v6858_v55 }
 0x783   :  { %6235 = vmatprep.subr.bf16.mxu1 %v6859_v5  ;;  %1525 = vmatprep.mubr.bf16.mxu0 %v9425_v17 }
 0x785   :  { %1496 = vmatpush1.bf16.msra.mxu0 %v6856_v7  ;;  %6236 = vmatpush3.bf16.msra.mxu1 %v6859_v5 }
 0x786   :  { %1497 = vmatprep.subr.bf16.mxu0 %v6862_v13  ;;  %6237 = vmatprep.subr.bf16.mxu1 %v6863_v34 }
 0x789   :  { %1498 = vmatpush1.bf16.msra.mxu0 %v6860_v23  ;;  %6238 = vmatpush3.bf16.msra.mxu1 %v6863_v34  ;;  %v9427_v23 = vld [vmem:[#allocation11_spill] sm:$0xff] }
 0x78a   :  { %1499 = vmatprep.subr.bf16.mxu0 %v6866_v35  ;;  %6239 = vmatprep.subr.bf16.mxu1 %v6867_v24 }
 0x78d   :  { %1500 = vmatpush1.bf16.msra.mxu0 %v6864_v2  ;;  %6240 = vmatpush3.bf16.msra.mxu1 %v6867_v24 }
 0x78e   :  { %1501 = vmatprep.subr.bf16.mxu0 %v6870_v3  ;;  %6241 = vmatprep.subr.bf16.mxu1 %v6871_v26 }
 0x791   :  { %1502 = vmatpush1.bf16.msra.mxu0 %v6868_v27  ;;  %6242 = vmatpush3.bf16.msra.mxu1 %v6871_v26 }
 0x792   :  { %1503 = vmatprep.subr.bf16.mxu0 %v6874_v28  ;;  %6243 = vmatprep.subr.bf16.mxu1 %v6875_v29 }
 0x795   :  { %1504 = vmatpush1.bf16.msra.mxu0 %v6872_v30  ;;  %6244 = vmatpush3.bf16.msra.mxu1 %v6875_v29 }
 0x796   :  { %1505 = vmatprep.subr.bf16.mxu0 %v6878_v31  ;;  %6245 = vmatprep.subr.bf16.mxu1 %v6879_v32 }
 0x799   :  { %1506 = vmatpush1.bf16.msra.mxu0 %v6876_v9  ;;  %6246 = vmatpush3.bf16.msra.mxu1 %v6879_v32 }
 0x79a   :  { %1507 = vmatprep.subr.bf16.mxu0 %v6882_v8  ;;  %6247 = vmatprep.subr.bf16.mxu1 %v6883_v36 }
 0x79d   :  { %1508 = vmatpush1.bf16.msra.mxu0 %v6880_v10  ;;  %6248 = vmatpush3.bf16.msra.mxu1 %v6883_v36 }
 0x79e   :  { %6257 = vmatprep.subr.bf16.mxu1 %v9424_v1  ;;  %1819 = vmatprep.subr.bf16.mxu0 %v8082_v53 }
 0x7a0   :  { %1526 = vmatmul.mubr.bf16.vlgmr.msra.gmra.mrb[48].mxu0 %v1329_v52  ;;  %6250 = vmatmul.mubr.bf16.vlgmr.msra.gmra.mrb[40].mxu1 %v1330_v51 }
 0x7a1   :  { %6253 = vmatprep.mubr.bf16.mxu1 %v1331_v33  ;;  %1535 = vmatprep.mubr.bf16.mxu0 %v9425_v17 }
 0x7a2   :  { %1820 = vmatpush1.bf16.msra.mxu0 %v8084_v11  ;;  %6258 = vmatpush3.bf16.msra.mxu1 %v8122_v18 }
 0x7a3   :  { %1821 = vmatprep.subr.bf16.mxu0 %v8088_v39  ;;  %6259 = vmatprep.subr.bf16.mxu1 %v9424_v1 }
 0x7a6   :  { %1822 = vmatpush1.bf16.msra.mxu0 %v8090_v12  ;;  %6260 = vmatpush3.bf16.msra.mxu1 %v8131_v22 }
 0x7a7   :  { %1823 = vmatprep.subr.bf16.mxu0 %v8094_v48  ;;  %6261 = vmatprep.subr.bf16.mxu1 %v9424_v1 }
 0x7a8   :  { %1536 = vmatmul.mubr.bf16.gmra.mrb[52].mxu0 %v1330_v51 }
 0x7a9   :  { %1545 = vmatprep.mubr.bf16.mxu0 %v9425_v17 }
 0x7aa   :  { %1824 = vmatpush1.bf16.msra.mxu0 %v8096_v14  ;;  %6262 = vmatpush3.bf16.msra.mxu1 %v8139_v16 }
 0x7ab   :  { %1825 = vmatprep.subr.bf16.mxu0 %v8100_v49  ;;  %6263 = vmatprep.subr.bf16.mxu1 %v9424_v1 }
 0x7ae   :  { %1826 = vmatpush1.bf16.msra.mxu0 %v8102_v15  ;;  %6264 = vmatpush3.bf16.msra.mxu1 %v8142_v47 }
 0x7af   :  { %1827 = vmatprep.subr.bf16.mxu0 %v8106_v50  ;;  %6265 = vmatprep.subr.bf16.mxu1 %v9424_v1 }
 0x7b0   :  { %1546 = vmatmul.mubr.bf16.gmra.mrb[56].mxu0 %v1331_v33 }
 0x7b1   :  { %1555 = vmatprep.mubr.bf16.mxu0 %v9425_v17 }
 0x7b2   :  { %1828 = vmatpush1.bf16.msra.mxu0 %v8108_v56  ;;  %6266 = vmatpush3.bf16.msra.mxu1 %v8146_v20 }
 0x7b3   :  { %1829 = vmatprep.subr.bf16.mxu0 %v8112_v40  ;;  %6267 = vmatprep.subr.bf16.mxu1 %v9424_v1 }
 0x7b6   :  { %1830 = vmatpush1.bf16.msra.mxu0 %v8114_v44  ;;  %6268 = vmatpush3.bf16.msra.mxu1 %v8150_v25 }
 0x7b7   :  { %1831 = vmatprep.subr.bf16.mxu0 %v8118_v0  ;;  %6269 = vmatprep.subr.bf16.mxu1 %v9424_v1 }
 0x7ba   :  { %1832 = vmatpush1.bf16.msra.mxu0 %v8120_v46  ;;  %6270 = vmatpush3.bf16.msra.mxu1 %v8154_v37 }
 0x7bb   :  { %1833 = vmatprep.subr.bf16.mxu0 %v8124_v60  ;;  %6271 = vmatprep.subr.bf16.mxu1 %v9424_v1 }
 0x7be   :  { %1834 = vmatpush1.bf16.msra.mxu0 %v8129_v4  ;;  %6272 = vmatpush3.bf16.msra.mxu1 %v8158_v41 }
 0x7bf   :  { %1925 = vmatprep.subr.bf16.mxu0 %v8082_v53  ;;  %6277 = vmatprep.subr.bf16.mxu1 %v9424_v1 }
 0x853   :  { %v1252_v38 = vpop.f32.mrb[44].mxu0  ;;  %v1293_v42 = vpop.f32.mrb[36].mxu1 }
 0x854   :  { %v1299_v6 = vadd.f32 %v1252_v38, %v7759_v59  ;;  %v1254_v61 = vpop.f32.mrb[45].mxu0  ;;  %v6231_v57 = vpop.f32.mrb[37].mxu1 }
 0x855   :  { %v1300_v58 = vadd.f32 %v1254_v61, %v9426_v62  ;;  %v1256_v63 = vpop.f32.mrb[46].mxu0  ;;  %v1296_v19 = vpop.f32.mrb[38].mxu1 }
 0x856   :  { %v5522_v21 = vmul.f32 -1.442695, %v1299_v6  ;;  %v1257_v45 = vpop.f32.mrb[47].mxu0  ;;  %v6232_v54 = vpop.f32.mrb[39].mxu1 }
 0x857   :  { %v5523_v55 = vmul.f32 -1.442695, %v1300_v58 }
 0x858   :  { %7122 = vpow2.f32 %v5522_v21 }
 0x859   :  { %7124 = vpow2.f32 %v5523_v55 }
 0x862   :  { %v7123_v5 = vpop.eup %7122 }
 0x863   :  { %v1307_v52 = vadd.f32 1.0, %v7123_v5  ;;  %v7125_v7 = vpop.eup %7124 }
 0x864   :  { %v1308_v35 = vadd.f32 1.0, %v7125_v7 }
 0x865   :  { %7126 = vrcp.f32 %v1307_v52 }
 0x86f   :  { %v7127_v13 = vpop.eup %7126 }
 0x870   :  { %v1313_v34 = vmul.f32 %v7127_v13, %v1293_v42 }
 0x872   :  { %v1314_v59 = vadd.f32 %v9427_v23, %v1313_v34 }
 0x873   :  { %v8166_v24 = vpop.f32.mrb[48].mxu0  ;;  %v8168_v2 = vpop.f32.mrb[40].mxu1 }
 0x874   :  { %7128 = vtanh.f32 %v1314_v59  ;;  %v8170_v3 = vpop.f32.mrb[49].mxu0  ;;  %v8172_v26 = vpop.f32.mrb[41].mxu1 }
 0x875   :  { %v8174_v27 = vpop.f32.mrb[50].mxu0  ;;  %v8176_v28 = vpop.f32.mrb[42].mxu1  ;;  %7130 = vrcp.f32 %v1308_v35 }
 0x876   :  { %v8178_v29 = vpop.f32.mrb[51].mxu0  ;;  %v8180_v30 = vpop.f32.mrb[43].mxu1 }
 0x87b   :  { %v8182_v31 = vpop.f32.mrb[52].mxu0 }
 0x87c   :  { %v8184_v32 = vpop.f32.mrb[53].mxu0 }
 0x87d   :  { %v8186_v9 = vpop.f32.mrb[54].mxu0 }
 0x87e   :  { %v7129_v8 = vpop.eup %7128  ;;  %v8188_v36 = vpop.f32.mrb[55].mxu0 }
 0x87f   :  { %v1316_v10 = vsub.f32 %v8067_v43, %v7129_v8  ;;  %v7131_v51 = vpop.eup %7130 }
 0x881   :  { %v1317_v33 = vmul.f32 %v7131_v51, %v1316_v10 }
 0x883   :  { %v8191_v38 = vpop.f32.mrb[56].mxu0  ;;  %v1318_v42 = vadd.f32 %v7129_v8, %v1317_v33 }
 0x884   :  { %v8193_v6 = vpop.f32.mrb[57].mxu0 }
 0x885   :  { %v8195_v61 = vpop.f32.mrb[58].mxu0  ;;  %v1332_v57 = vpack.c.bf16 %v1318_v42, %v8067_v43 }
 0x886   :  { %v8198_v62 = vpop.f32.mrb[59].mxu0 }
 0x887   :  { %1556 = vmatmul.mubr.bf16.gmra.mrb[60].mxu0 %v1332_v57  ;;  %6254 = vmatmul.mubr.bf16.gmra.mrb[44].mxu1 %v1332_v57 }
 0x888   :  { %1851 = vmatprep.mubr.bf16.mxu0 %v9425_v17  ;;  %6273 = vmatprep.mubr.msk.bf16.mxu1 %vm7492_vm2, %v9424_v1 }
 0x88f   :  { %1852 = vmatmul.mubr.bf16.vlgmr.msra.gmra.mrb[64].mxu0 %v9425_v17  ;;  %6274 = vmatmul.mubr.bf16.vlgmr.msra.gmra.mrb[48].mxu1 %v9425_v17 }
 0x890   :  { %1926 = vmatpush1.bf16.msra.mxu0 %v8084_v11  ;;  %6278 = vmatpush3.bf16.msra.mxu1 %v8122_v18 }
 0x891   :  { %1927 = vmatprep.subr.bf16.mxu0 %v8088_v39  ;;  %6279 = vmatprep.subr.bf16.mxu1 %v9424_v1 }
 0x892   :  { %1957 = vmatprep.mubr.bf16.mxu0 %v9425_v17  ;;  %6293 = vmatprep.mubr.msk.bf16.mxu1 %vm7492_vm2, %v9424_v1 }
 0x894   :  { %1928 = vmatpush1.bf16.msra.mxu0 %v8090_v12  ;;  %6280 = vmatpush3.bf16.msra.mxu1 %v8131_v22 }
 0x895   :  { %1929 = vmatprep.subr.bf16.mxu0 %v8094_v48  ;;  %6281 = vmatprep.subr.bf16.mxu1 %v9424_v1 }
 0x898   :  { %1930 = vmatpush1.bf16.msra.mxu0 %v8096_v14  ;;  %6282 = vmatpush3.bf16.msra.mxu1 %v8139_v16 }
 0x899   :  { %1931 = vmatprep.subr.bf16.mxu0 %v8100_v49  ;;  %6283 = vmatprep.subr.bf16.mxu1 %v9424_v1 }
 0x89c   :  { %1932 = vmatpush1.bf16.msra.mxu0 %v8102_v15  ;;  %6284 = vmatpush3.bf16.msra.mxu1 %v8142_v47 }
 0x89d   :  { %1933 = vmatprep.subr.bf16.mxu0 %v8106_v50  ;;  %6285 = vmatprep.subr.bf16.mxu1 %v9424_v1 }
 0x8a0   :  { %1934 = vmatpush1.bf16.msra.mxu0 %v8108_v56  ;;  %6286 = vmatpush3.bf16.msra.mxu1 %v8146_v20 }
 0x8a1   :  { %1935 = vmatprep.subr.bf16.mxu0 %v8112_v40  ;;  %6287 = vmatprep.subr.bf16.mxu1 %v9424_v1 }
 0x8a4   :  { %1936 = vmatpush1.bf16.msra.mxu0 %v8114_v44  ;;  %6288 = vmatpush3.bf16.msra.mxu1 %v8150_v25 }
 0x8a5   :  { %1937 = vmatprep.subr.bf16.mxu0 %v8118_v0  ;;  %6289 = vmatprep.subr.bf16.mxu1 %v9424_v1 }
 0x8a8   :  { %1938 = vmatpush1.bf16.msra.mxu0 %v8120_v46  ;;  %6290 = vmatpush3.bf16.msra.mxu1 %v8154_v37 }
 0x8a9   :  { %1939 = vmatprep.subr.bf16.mxu0 %v8124_v60  ;;  %6291 = vmatprep.subr.bf16.mxu1 %v9424_v1 }
 0x8ac   :  { %1940 = vmatpush1.bf16.msra.mxu0 %v8129_v4  ;;  %6292 = vmatpush3.bf16.msra.mxu1 %v8158_v41 }
 0x8ad   :  { %2031 = vmatprep.subr.bf16.mxu0 %v8082_v53  ;;  %6297 = vmatprep.subr.bf16.mxu1 %v9424_v1 }
 0x95a   :  { %v8240_v43 = vpop.f32.mrb[60].mxu0  ;;  %v8242_v58 = vpop.f32.mrb[44].mxu1 }
 0x95b   :  { %9428 = vst [vmem:[#allocation12_spill] sm:$0xff] %v8242_v58  ;;  %v8244_v63 = vpop.f32.mrb[61].mxu0  ;;  %v8246_v19 = vpop.f32.mrb[45].mxu1 }
 0x95c   :  { %v8248_v21 = vpop.f32.mrb[62].mxu0  ;;  %v8250_v45 = vpop.f32.mrb[46].mxu1 }
 0x95d   :  { %9429 = vst [vmem:[#allocation11_spill] sm:$0xff] %v8248_v21  ;;  %9430 = vst [vmem:[#allocation13_spill] sm:$0xff] %v8250_v45  ;;  %v8252_v54 = vpop.f32.mrb[63].mxu0  ;;  %v8254_v55 = vpop.f32.mrb[47].mxu1 }
 0x95e   :  { %9431 = vst [vmem:[#allocation14_spill] sm:$0xff] %v8252_v54 }
 0x962   :  { %v1853_v5 = vpop.f32.mrb[64].mxu0  ;;  %v1894_v52 = vpop.f32.mrb[48].mxu1 }
 0x963   :  { %v1900_v7 = vadd.f32 %v1853_v5, %v8166_v24  ;;  %v1855_v13 = vpop.f32.mrb[65].mxu0  ;;  %v6275_v34 = vpop.f32.mrb[49].mxu1 }
 0x964   :  { %v1901_v23 = vadd.f32 %v1855_v13, %v8170_v3  ;;  %v1857_v59 = vpop.f32.mrb[66].mxu0  ;;  %v1897_v35 = vpop.f32.mrb[50].mxu1 }
 0x965   :  { %v5572_v8 = vmul.f32 -1.442695, %v1900_v7  ;;  %v1858_v10 = vpop.f32.mrb[67].mxu0  ;;  %v6276_v51 = vpop.f32.mrb[51].mxu1 }
 0x966   :  { %v5573_v33 = vmul.f32 -1.442695, %v1901_v23 }
 0x967   :  { %7132 = vpow2.f32 %v5572_v8 }
 0x968   :  { %7134 = vpow2.f32 %v5573_v33 }
 0x971   :  { %v7133_v42 = vpop.eup %7132 }
 0x972   :  { %v1908_v57 = vadd.f32 1.0, %v7133_v42  ;;  %v7135_v45 = vpop.eup %7134 }
 0x973   :  { %v1909_v58 = vadd.f32 1.0, %v7135_v45 }
 0x974   :  { %7136 = vrcp.f32 %v1908_v57 }
 0x97e   :  { %v7137_v54 = vpop.eup %7136 }
 0x97f   :  { %v1914_v21 = vmul.f32 %v7137_v54, %v1894_v52 }
 0x981   :  { %v1915_v24 = vadd.f32 %v1914_v21, %v8172_v26 }
 0x983   :  { %7138 = vtanh.f32 %v1915_v24 }
 0x984   :  { %7140 = vrcp.f32 %v1909_v58 }
 0x98d   :  { %v7139_v3 = vpop.eup %7138 }
 0x98e   :  { %v1917_v5 = vsub.f32 0.0, %v7139_v3  ;;  %v7141_v13 = vpop.eup %7140 }
 0x990   :  { %v1918_v7 = vmul.f32 %v7141_v13, %v1917_v5 }
 0x992   :  { %v8259_v34 = vadd.f32 %v7139_v3, %v1918_v7 }
 0x994   :  { %v1924_v23 = vpack.c.bf16 %v8259_v34, %v8259_v34 }
 0x996   :  { %1958 = vmatmul.mubr.bf16.vlgmr.msra.gmra.mrb[68].mxu0 %v1924_v23  ;;  %6294 = vmatmul.mubr.bf16.vlgmr.msra.gmra.mrb[52].mxu1 %v1924_v23 }
 0x997   :  { %2032 = vmatpush1.bf16.msra.mxu0 %v8084_v11  ;;  %6298 = vmatpush3.bf16.msra.mxu1 %v8122_v18 }
 0x998   :  { %2033 = vmatprep.subr.bf16.mxu0 %v8088_v39  ;;  %6299 = vmatprep.subr.bf16.mxu1 %v9424_v1 }
 0x999   :  { %2063 = vmatprep.mubr.bf16.mxu0 %v9425_v17  ;;  %6313 = vmatprep.mubr.msk.bf16.mxu1 %vm7492_vm2, %v9424_v1 }
 0x99b   :  { %2034 = vmatpush1.bf16.msra.mxu0 %v8090_v12  ;;  %6300 = vmatpush3.bf16.msra.mxu1 %v8131_v22 }
 0x99c   :  { %2035 = vmatprep.subr.bf16.mxu0 %v8094_v48  ;;  %6301 = vmatprep.subr.bf16.mxu1 %v9424_v1 }
 0x99f   :  { %2036 = vmatpush1.bf16.msra.mxu0 %v8096_v14  ;;  %6302 = vmatpush3.bf16.msra.mxu1 %v8139_v16 }
 0x9a0   :  { %2037 = vmatprep.subr.bf16.mxu0 %v8100_v49  ;;  %6303 = vmatprep.subr.bf16.mxu1 %v9424_v1 }
 0x9a3   :  { %2038 = vmatpush1.bf16.msra.mxu0 %v8102_v15  ;;  %6304 = vmatpush3.bf16.msra.mxu1 %v8142_v47 }
 0x9a4   :  { %2039 = vmatprep.subr.bf16.mxu0 %v8106_v50  ;;  %6305 = vmatprep.subr.bf16.mxu1 %v9424_v1 }
 0x9a7   :  { %2040 = vmatpush1.bf16.msra.mxu0 %v8108_v56  ;;  %6306 = vmatpush3.bf16.msra.mxu1 %v8146_v20 }
 0x9a8   :  { %2041 = vmatprep.subr.bf16.mxu0 %v8112_v40  ;;  %6307 = vmatprep.subr.bf16.mxu1 %v9424_v1 }
 0x9ab   :  { %2042 = vmatpush1.bf16.msra.mxu0 %v8114_v44  ;;  %6308 = vmatpush3.bf16.msra.mxu1 %v8150_v25 }
 0x9ac   :  { %2043 = vmatprep.subr.bf16.mxu0 %v8118_v0  ;;  %6309 = vmatprep.subr.bf16.mxu1 %v9424_v1 }
 0x9af   :  { %2044 = vmatpush1.bf16.msra.mxu0 %v8120_v46  ;;  %6310 = vmatpush3.bf16.msra.mxu1 %v8154_v37 }
 0x9b0   :  { %2045 = vmatprep.subr.bf16.mxu0 %v8124_v60  ;;  %6311 = vmatprep.subr.bf16.mxu1 %v9424_v1 }
 0x9b3   :  { %2046 = vmatpush1.bf16.msra.mxu0 %v8129_v4  ;;  %6312 = vmatpush3.bf16.msra.mxu1 %v8158_v41 }
 0x9b4   :  { %2137 = vmatprep.subr.bf16.mxu0 %v8082_v53  ;;  %6317 = vmatprep.subr.bf16.mxu1 %v9424_v1 }
 0xa69   :  { %v1959_v26 = vpop.f32.mrb[68].mxu0  ;;  %v2000_v58 = vpop.f32.mrb[52].mxu1 }
 0xa6a   :  { %v2006_v21 = vadd.f32 %v1959_v26, %v8174_v27  ;;  %v1961_v45 = vpop.f32.mrb[69].mxu0  ;;  %v6295_v54 = vpop.f32.mrb[53].mxu1 }
 0xa6b   :  { %v2007_v52 = vadd.f32 %v1961_v45, %v8178_v29  ;;  %v1963_v59 = vpop.f32.mrb[70].mxu0  ;;  %v2003_v35 = vpop.f32.mrb[54].mxu1 }
 0xa6c   :  { %v5574_v8 = vmul.f32 -1.442695, %v2006_v21  ;;  %v1964_v10 = vpop.f32.mrb[71].mxu0  ;;  %v6296_v51 = vpop.f32.mrb[55].mxu1 }
 0xa6d   :  { %v5575_v33 = vmul.f32 -1.442695, %v2007_v52 }
 0xa6e   :  { %7142 = vpow2.f32 %v5574_v8 }
 0xa6f   :  { %7144 = vpow2.f32 %v5575_v33 }
 0xa78   :  { %v7143_v42 = vpop.eup %7142 }
 0xa79   :  { %v2014_v57 = vadd.f32 1.0, %v7143_v42  ;;  %v7145_v24 = vpop.eup %7144 }
 0xa7a   :  { %v2015_v13 = vadd.f32 1.0, %v7145_v24 }
 0xa7b   :  { %7146 = vrcp.f32 %v2014_v57 }
 0xa85   :  { %v7147_v3 = vpop.eup %7146 }
 0xa86   :  { %v2020_v5 = vmul.f32 %v7147_v3, %v2000_v58 }
 0xa88   :  { %v2021_v27 = vadd.f32 %v2020_v5, %v8180_v30 }
 0xa8a   :  { %7148 = vtanh.f32 %v2021_v27 }
 0xa8b   :  { %7150 = vrcp.f32 %v2015_v13 }
 0xa94   :  { %v7149_v29 = vpop.eup %7148 }
 0xa95   :  { %v2023_v7 = vsub.f32 %v8259_v34, %v7149_v29  ;;  %v7151_v23 = vpop.eup %7150 }
 0xa97   :  { %v2024_v26 = vmul.f32 %v7151_v23, %v2023_v7 }
 0xa99   :  { %v8302_v21 = vadd.f32 %v7149_v29, %v2024_v26 }
 0xa9b   :  { %v2030_v45 = vpack.c.bf16 %v8302_v21, %v8302_v21 }
 0xa9d   :  { %2064 = vmatmul.mubr.bf16.vlgmr.msra.gmra.mrb[72].mxu0 %v2030_v45  ;;  %6314 = vmatmul.mubr.bf16.vlgmr.msra.gmra.mrb[56].mxu1 %v2030_v45 }
 0xa9e   :  { %2138 = vmatpush1.bf16.msra.mxu0 %v8084_v11  ;;  %6318 = vmatpush3.bf16.msra.mxu1 %v8122_v18 }
 0xa9f   :  { %2139 = vmatprep.subr.bf16.mxu0 %v8088_v39  ;;  %6319 = vmatprep.subr.bf16.mxu1 %v9424_v1 }
 0xaa0   :  { %2169 = vmatprep.mubr.bf16.mxu0 %v9425_v17  ;;  %6333 = vmatprep.mubr.msk.bf16.mxu1 %vm7492_vm2, %v9424_v1 }
 0xaa2   :  { %2140 = vmatpush1.bf16.msra.mxu0 %v8090_v12  ;;  %6320 = vmatpush3.bf16.msra.mxu1 %v8131_v22 }
 0xaa3   :  { %2141 = vmatprep.subr.bf16.mxu0 %v8094_v48  ;;  %6321 = vmatprep.subr.bf16.mxu1 %v9424_v1 }
 0xaa6   :  { %2142 = vmatpush1.bf16.msra.mxu0 %v8096_v14  ;;  %6322 = vmatpush3.bf16.msra.mxu1 %v8139_v16 }
 0xaa7   :  { %2143 = vmatprep.subr.bf16.mxu0 %v8100_v49  ;;  %6323 = vmatprep.subr.bf16.mxu1 %v9424_v1 }
 0xaaa   :  { %2144 = vmatpush1.bf16.msra.mxu0 %v8102_v15  ;;  %6324 = vmatpush3.bf16.msra.mxu1 %v8142_v47 }
 0xaab   :  { %2145 = vmatprep.subr.bf16.mxu0 %v8106_v50  ;;  %6325 = vmatprep.subr.bf16.mxu1 %v9424_v1 }
 0xaae   :  { %2146 = vmatpush1.bf16.msra.mxu0 %v8108_v56  ;;  %6326 = vmatpush3.bf16.msra.mxu1 %v8146_v20 }
 0xaaf   :  { %2147 = vmatprep.subr.bf16.mxu0 %v8112_v40  ;;  %6327 = vmatprep.subr.bf16.mxu1 %v9424_v1 }
 0xab2   :  { %2148 = vmatpush1.bf16.msra.mxu0 %v8114_v44  ;;  %6328 = vmatpush3.bf16.msra.mxu1 %v8150_v25 }
 0xab3   :  { %2149 = vmatprep.subr.bf16.mxu0 %v8118_v0  ;;  %6329 = vmatprep.subr.bf16.mxu1 %v9424_v1 }
 0xab6   :  { %2150 = vmatpush1.bf16.msra.mxu0 %v8120_v46  ;;  %6330 = vmatpush3.bf16.msra.mxu1 %v8154_v37 }
 0xab7   :  { %2151 = vmatprep.subr.bf16.mxu0 %v8124_v60  ;;  %6331 = vmatprep.subr.bf16.mxu1 %v9424_v1 }
 0xaba   :  { %2152 = vmatpush1.bf16.msra.mxu0 %v8129_v4  ;;  %6332 = vmatpush3.bf16.msra.mxu1 %v8158_v41 }
 0xabb   :  { %2243 = vmatprep.subr.bf16.mxu0 %v8082_v53  ;;  %6337 = vmatprep.subr.bf16.mxu1 %v9424_v1 }
 0xb70   :  { %v2065_v30 = vpop.f32.mrb[72].mxu0  ;;  %v2106_v58 = vpop.f32.mrb[56].mxu1 }
 0xb71   :  { %v2112_v54 = vadd.f32 %v2065_v30, %v8182_v31  ;;  %v2067_v52 = vpop.f32.mrb[73].mxu0  ;;  %v6315_v59 = vpop.f32.mrb[57].mxu1 }
 0xb72   :  { %v2113_v35 = vadd.f32 %v2067_v52, %v8184_v32  ;;  %v2069_v8 = vpop.f32.mrb[74].mxu0  ;;  %v2109_v10 = vpop.f32.mrb[58].mxu1 }
 0xb73   :  { %v5576_v51 = vmul.f32 -1.442695, %v2112_v54  ;;  %v2070_v33 = vpop.f32.mrb[75].mxu0  ;;  %v6316_v42 = vpop.f32.mrb[59].mxu1 }
 0xb74   :  { %v5577_v57 = vmul.f32 -1.442695, %v2113_v35 }
 0xb75   :  { %7152 = vpow2.f32 %v5576_v51 }
 0xb76   :  { %7154 = vpow2.f32 %v5577_v57 }
 0xb7f   :  { %v7153_v24 = vpop.eup %7152 }
 0xb80   :  { %v2120_v3 = vadd.f32 1.0, %v7153_v24  ;;  %v7155_v5 = vpop.eup %7154 }
 0xb81   :  { %v2121_v29 = vadd.f32 1.0, %v7155_v5 }
 0xb82   :  { %7156 = vrcp.f32 %v2120_v3 }
 0xb8c   :  { %v7157_v27 = vpop.eup %7156 }
 0xb8d   :  { %v2126_v13 = vmul.f32 %v7157_v27, %v2106_v58 }
 0xb8f   :  { %v2127_v31 = vadd.f32 %v8168_v2, %v2126_v13 }
 0xb91   :  { %7158 = vtanh.f32 %v2127_v31 }
 0xb92   :  { %7160 = vrcp.f32 %v2121_v29 }
 0xb9b   :  { %v7159_v32 = vpop.eup %7158 }
 0xb9c   :  { %v2129_v7 = vsub.f32 %v8302_v21, %v7159_v32  ;;  %v7161_v23 = vpop.eup %7160 }
 0xb9e   :  { %v2130_v26 = vmul.f32 %v7161_v23, %v2129_v7 }
 0xba0   :  { %v8345_v45 = vadd.f32 %v7159_v32, %v2130_v26 }
 0xba2   :  { %v2136_v30 = vpack.c.bf16 %v8345_v45, %v8345_v45 }
 0xba4   :  { %2170 = vmatmul.mubr.bf16.vlgmr.msra.gmra.mrb[76].mxu0 %v2136_v30  ;;  %6334 = vmatmul.mubr.bf16.vlgmr.msra.gmra.mrb[60].mxu1 %v2136_v30 }
 0xba5   :  { %2244 = vmatpush1.bf16.msra.mxu0 %v8084_v11  ;;  %6338 = vmatpush3.bf16.msra.mxu1 %v8122_v18 }
 0xba6   :  { %2245 = vmatprep.subr.bf16.mxu0 %v8088_v39  ;;  %6339 = vmatprep.subr.bf16.mxu1 %v9424_v1 }
 0xba7   :  { %2275 = vmatprep.mubr.bf16.mxu0 %v9425_v17  ;;  %6353 = vmatprep.mubr.msk.bf16.mxu1 %vm7492_vm2, %v9424_v1 }
 0xba9   :  { %2246 = vmatpush1.bf16.msra.mxu0 %v8090_v12  ;;  %6340 = vmatpush3.bf16.msra.mxu1 %v8131_v22 }
 0xbaa   :  { %2247 = vmatprep.subr.bf16.mxu0 %v8094_v48  ;;  %6341 = vmatprep.subr.bf16.mxu1 %v9424_v1 }
 0xbad   :  { %2248 = vmatpush1.bf16.msra.mxu0 %v8096_v14  ;;  %6342 = vmatpush3.bf16.msra.mxu1 %v8139_v16 }
 0xbae   :  { %2249 = vmatprep.subr.bf16.mxu0 %v8100_v49  ;;  %6343 = vmatprep.subr.bf16.mxu1 %v9424_v1 }
 0xbb1   :  { %2250 = vmatpush1.bf16.msra.mxu0 %v8102_v15  ;;  %6344 = vmatpush3.bf16.msra.mxu1 %v8142_v47 }
 0xbb2   :  { %2251 = vmatprep.subr.bf16.mxu0 %v8106_v50  ;;  %6345 = vmatprep.subr.bf16.mxu1 %v9424_v1 }
 0xbb5   :  { %2252 = vmatpush1.bf16.msra.mxu0 %v8108_v56  ;;  %6346 = vmatpush3.bf16.msra.mxu1 %v8146_v20 }
 0xbb6   :  { %2253 = vmatprep.subr.bf16.mxu0 %v8112_v40  ;;  %6347 = vmatprep.subr.bf16.mxu1 %v9424_v1 }
 0xbb9   :  { %2254 = vmatpush1.bf16.msra.mxu0 %v8114_v44  ;;  %6348 = vmatpush3.bf16.msra.mxu1 %v8150_v25 }
 0xbba   :  { %2255 = vmatprep.subr.bf16.mxu0 %v8118_v0  ;;  %6349 = vmatprep.subr.bf16.mxu1 %v9424_v1 }
 0xbbd   :  { %2256 = vmatpush1.bf16.msra.mxu0 %v8120_v46  ;;  %6350 = vmatpush3.bf16.msra.mxu1 %v8154_v37 }
 0xbbe   :  { %2257 = vmatprep.subr.bf16.mxu0 %v8124_v60  ;;  %6351 = vmatprep.subr.bf16.mxu1 %v9424_v1 }
 0xbc1   :  { %2258 = vmatpush1.bf16.msra.mxu0 %v8129_v4  ;;  %6352 = vmatpush3.bf16.msra.mxu1 %v8158_v41 }
 0xbc2   :  { %2349 = vmatprep.subr.bf16.mxu0 %v8082_v53  ;;  %6357 = vmatprep.subr.bf16.mxu1 %v9424_v1 }
 0xc77   :  { %v2171_v2 = vpop.f32.mrb[76].mxu0  ;;  %v2212_v58 = vpop.f32.mrb[60].mxu1 }
 0xc78   :  { %v2218_v54 = vadd.f32 %v2171_v2, %v8186_v9  ;;  %v2173_v52 = vpop.f32.mrb[77].mxu0  ;;  %v6335_v59 = vpop.f32.mrb[61].mxu1 }
 0xc79   :  { %v2219_v35 = vadd.f32 %v2173_v52, %v8188_v36  ;;  %v2175_v8 = vpop.f32.mrb[78].mxu0  ;;  %v2215_v10 = vpop.f32.mrb[62].mxu1 }
 0xc7a   :  { %v5578_v51 = vmul.f32 -1.442695, %v2218_v54  ;;  %v2176_v33 = vpop.f32.mrb[79].mxu0  ;;  %v6336_v42 = vpop.f32.mrb[63].mxu1 }
 0xc7b   :  { %v5579_v57 = vmul.f32 -1.442695, %v2219_v35 }
 0xc7c   :  { %7162 = vpow2.f32 %v5578_v51 }
 0xc7d   :  { %7164 = vpow2.f32 %v5579_v57 }
 0xc86   :  { %v7163_v24 = vpop.eup %7162 }
 0xc87   :  { %v2226_v3 = vadd.f32 1.0, %v7163_v24  ;;  %v7165_v5 = vpop.eup %7164 }
 0xc88   :  { %v2227_v31 = vadd.f32 1.0, %v7165_v5 }
 0xc89   :  { %7166 = vrcp.f32 %v2226_v3 }
 0xc93   :  { %v7167_v27 = vpop.eup %7166 }
 0xc94   :  { %v2232_v13 = vmul.f32 %v7167_v27, %v2212_v58 }
 0xc96   :  { %v2233_v9 = vadd.f32 %v8176_v28, %v2232_v13 }
 0xc98   :  { %7168 = vtanh.f32 %v2233_v9 }
 0xc99   :  { %7170 = vrcp.f32 %v2227_v31 }
 0xca2   :  { %v7169_v36 = vpop.eup %7168 }
 0xca3   :  { %v2235_v29 = vsub.f32 %v8345_v45, %v7169_v36  ;;  %v7171_v32 = vpop.eup %7170 }
 0xca5   :  { %v2236_v7 = vmul.f32 %v7171_v32, %v2235_v29 }
 0xca7   :  { %v8388_v23 = vadd.f32 %v7169_v36, %v2236_v7 }
 0xca9   :  { %v2242_v26 = vpack.c.bf16 %v8388_v23, %v8388_v23 }
 0xcab   :  { %2276 = vmatmul.mubr.bf16.vlgmr.msra.gmra.mrb[80].mxu0 %v2242_v26  ;;  %6354 = vmatmul.mubr.bf16.vlgmr.msra.gmra.mrb[64].mxu1 %v2242_v26 }
 0xcac   :  { %2350 = vmatpush1.bf16.msra.mxu0 %v8084_v11  ;;  %6358 = vmatpush3.bf16.msra.mxu1 %v8122_v18 }
 0xcad   :  { %2351 = vmatprep.subr.bf16.mxu0 %v8088_v39  ;;  %6359 = vmatprep.subr.bf16.mxu1 %v9424_v1 }
 0xcae   :  { %2381 = vmatprep.mubr.bf16.mxu0 %v9425_v17  ;;  %6373 = vmatprep.mubr.msk.bf16.mxu1 %vm7492_vm2, %v9424_v1 }
 0xcb0   :  { %2352 = vmatpush1.bf16.msra.mxu0 %v8090_v12  ;;  %6360 = vmatpush3.bf16.msra.mxu1 %v8131_v22 }
 0xcb1   :  { %2353 = vmatprep.subr.bf16.mxu0 %v8094_v48  ;;  %6361 = vmatprep.subr.bf16.mxu1 %v9424_v1 }
 0xcb4   :  { %2354 = vmatpush1.bf16.msra.mxu0 %v8096_v14  ;;  %6362 = vmatpush3.bf16.msra.mxu1 %v8139_v16 }
 0xcb5   :  { %2355 = vmatprep.subr.bf16.mxu0 %v8100_v49  ;;  %6363 = vmatprep.subr.bf16.mxu1 %v9424_v1 }
 0xcb8   :  { %2356 = vmatpush1.bf16.msra.mxu0 %v8102_v15  ;;  %6364 = vmatpush3.bf16.msra.mxu1 %v8142_v47 }
 0xcb9   :  { %2357 = vmatprep.subr.bf16.mxu0 %v8106_v50  ;;  %6365 = vmatprep.subr.bf16.mxu1 %v9424_v1 }
 0xcbc   :  { %2358 = vmatpush1.bf16.msra.mxu0 %v8108_v56  ;;  %6366 = vmatpush3.bf16.msra.mxu1 %v8146_v20 }
 0xcbd   :  { %2359 = vmatprep.subr.bf16.mxu0 %v8112_v40  ;;  %6367 = vmatprep.subr.bf16.mxu1 %v9424_v1 }
 0xcc0   :  { %2360 = vmatpush1.bf16.msra.mxu0 %v8114_v44  ;;  %6368 = vmatpush3.bf16.msra.mxu1 %v8150_v25 }
 0xcc1   :  { %2361 = vmatprep.subr.bf16.mxu0 %v8118_v0  ;;  %6369 = vmatprep.subr.bf16.mxu1 %v9424_v1 }
 0xcc4   :  { %2362 = vmatpush1.bf16.msra.mxu0 %v8120_v46  ;;  %6370 = vmatpush3.bf16.msra.mxu1 %v8154_v37 }
 0xcc5   :  { %2363 = vmatprep.subr.bf16.mxu0 %v8124_v60  ;;  %6371 = vmatprep.subr.bf16.mxu1 %v9424_v1 }
 0xcc8   :  { %2364 = vmatpush1.bf16.msra.mxu0 %v8129_v4  ;;  %6372 = vmatpush3.bf16.msra.mxu1 %v8158_v41 }
 0xcc9   :  { %2455 = vmatprep.subr.bf16.mxu0 %v8082_v53  ;;  %6377 = vmatprep.subr.bf16.mxu1 %v9424_v1 }
 0xd7e   :  { %v2277_v28 = vpop.f32.mrb[80].mxu0  ;;  %v2318_v30 = vpop.f32.mrb[64].mxu1 }
 0xd7f   :  { %v2324_v2 = vadd.f32 %v2277_v28, %v8191_v38  ;;  %v2279_v58 = vpop.f32.mrb[81].mxu0  ;;  %v6355_v54 = vpop.f32.mrb[65].mxu1 }
 0xd80   :  { %v2325_v52 = vadd.f32 %v2279_v58, %v8193_v6  ;;  %v2281_v59 = vpop.f32.mrb[82].mxu0  ;;  %v2321_v35 = vpop.f32.mrb[66].mxu1  ;;  %v7396_v54 = vld [vmem:[#allocation7 + $0xc0] ss:$12 sps:$4 sm:$0xff]  }
 0xd81   :  { %v5580_v8 = vmul.f32 -1.442695, %v2324_v2  ;;  %v2282_v10 = vpop.f32.mrb[83].mxu0  ;;  %v6356_v51 = vpop.f32.mrb[67].mxu1  ;;  %v7399_v59 = vld [vmem:[#allocation7 + $0xf0] ss:$12 sps:$4 sm:$0xff]  }
 0xd82   :  { %v5581_v33 = vmul.f32 -1.442695, %v2325_v52  ;;  %v7398_v52 = vld [vmem:[#allocation7 + $0xf4] ss:$12 sps:$4 sm:$0xff]   ;;  %v7402_v35 = vld [vmem:[#allocation7 + $0x124] ss:$12 sps:$4 sm:$0xff]  }
 0xd83   :  { %7172 = vpow2.f32 %v5580_v8  ;;  %v7404_v8 = vld [vmem:[#allocation7 + $0x13c] ss:$12 sps:$4 sm:$0xff]   ;;  %v7406_v10 = vld [vmem:[#allocation7 + $0x154] ss:$12 sps:$4 sm:$0xff]   ;;  %v7408_v51 = vld [vmem:[#allocation7 + $0x16c] ss:$12 sps:$4 sm:$0xff]  }
 0xd84   :  { %7174 = vpow2.f32 %v5581_v33  ;;  %v6918_v33 = vld [vmem:[#allocation5 + $0xc4] ss:$12 sps:$4 sm:$0xff]  }
 0xd8d   :  { %v7173_v42 = vpop.eup %7172 }
 0xd8e   :  { %v2332_v57 = vadd.f32 1.0, %v7173_v42  ;;  %v7175_v24 = vpop.eup %7174  ;;  %v6919_v42 = vld [vmem:[#allocation5 + $0xc8] ss:$12 sps:$4 sm:$0xff]  }
 0xd8f   :  { %v2333_v27 = vadd.f32 1.0, %v7175_v24 }
 0xd90   :  { %7176 = vrcp.f32 %v2332_v57 }
 0xd9a   :  { %v7177_v3 = vpop.eup %7176 }
 0xd9b   :  { %v2338_v5 = vmul.f32 %v7177_v3, %v2318_v30 }
 0xd9d   :  { %v2339_v38 = vadd.f32 %v2338_v5, %v8246_v19 }
 0xd9f   :  { %7178 = vtanh.f32 %v2339_v38 }
 0xda0   :  { %7180 = vrcp.f32 %v2333_v27 }
 0xda9   :  { %v7179_v6 = vpop.eup %7178 }
 0xdaa   :  { %v2341_v13 = vsub.f32 %v8388_v23, %v7179_v6  ;;  %v7181_v9 = vpop.eup %7180 }
 0xdac   :  { %v2342_v31 = vmul.f32 %v7181_v9, %v2341_v13 }
 0xdae   :  { %v8431_v36 = vadd.f32 %v7179_v6, %v2342_v31 }
 0xdb0   :  { %v2348_v29 = vpack.c.bf16 %v8431_v36, %v8431_v36 }
 0xdb2   :  { %2382 = vmatmul.mubr.bf16.vlgmr.msra.gmra.mrb[84].mxu0 %v2348_v29  ;;  %6374 = vmatmul.mubr.bf16.vlgmr.msra.gmra.mrb[68].mxu1 %v2348_v29 }
 0xdb3   :  { %2456 = vmatpush1.bf16.msra.mxu0 %v8084_v11  ;;  %6378 = vmatpush3.bf16.msra.mxu1 %v8122_v18 }
 0xdb4   :  { %2457 = vmatprep.subr.bf16.mxu0 %v8088_v39  ;;  %6379 = vmatprep.subr.bf16.mxu1 %v9424_v1 }
 0xdb5   :  { %2487 = vmatprep.mubr.bf16.mxu0 %v9425_v17  ;;  %6393 = vmatprep.mubr.msk.bf16.mxu1 %vm7492_vm2, %v9424_v1 }
 0xdb7   :  { %2458 = vmatpush1.bf16.msra.mxu0 %v8090_v12  ;;  %6380 = vmatpush3.bf16.msra.mxu1 %v8131_v22 }
 0xdb8   :  { %2459 = vmatprep.subr.bf16.mxu0 %v8094_v48  ;;  %6381 = vmatprep.subr.bf16.mxu1 %v9424_v1 }
 0xdbb   :  { %2460 = vmatpush1.bf16.msra.mxu0 %v8096_v14  ;;  %6382 = vmatpush3.bf16.msra.mxu1 %v8139_v16 }
 0xdbc   :  { %2461 = vmatprep.subr.bf16.mxu0 %v8100_v49  ;;  %6383 = vmatprep.subr.bf16.mxu1 %v9424_v1 }
 0xdbf   :  { %2462 = vmatpush1.bf16.msra.mxu0 %v8102_v15  ;;  %6384 = vmatpush3.bf16.msra.mxu1 %v8142_v47 }
 0xdc0   :  { %2463 = vmatprep.subr.bf16.mxu0 %v8106_v50  ;;  %6385 = vmatprep.subr.bf16.mxu1 %v9424_v1 }
 0xdc3   :  { %2464 = vmatpush1.bf16.msra.mxu0 %v8108_v56  ;;  %6386 = vmatpush3.bf16.msra.mxu1 %v8146_v20 }
 0xdc4   :  { %2465 = vmatprep.subr.bf16.mxu0 %v8112_v40  ;;  %6387 = vmatprep.subr.bf16.mxu1 %v9424_v1 }
 0xdc7   :  { %2466 = vmatpush1.bf16.msra.mxu0 %v8114_v44  ;;  %6388 = vmatpush3.bf16.msra.mxu1 %v8150_v25 }
 0xdc8   :  { %2467 = vmatprep.subr.bf16.mxu0 %v8118_v0  ;;  %6389 = vmatprep.subr.bf16.mxu1 %v9424_v1 }
 0xdcb   :  { %2468 = vmatpush1.bf16.msra.mxu0 %v8120_v46  ;;  %6390 = vmatpush3.bf16.msra.mxu1 %v8154_v37 }
 0xdcc   :  { %2469 = vmatprep.subr.bf16.mxu0 %v8124_v60  ;;  %6391 = vmatprep.subr.bf16.mxu1 %v9424_v1 }
 0xdcf   :  { %2470 = vmatpush1.bf16.msra.mxu0 %v8129_v4  ;;  %6392 = vmatpush3.bf16.msra.mxu1 %v8158_v41 }
 0xdd0   :  { %2561 = vmatprep.subr.bf16.mxu0 %v8082_v53  ;;  %6397 = vmatprep.subr.bf16.mxu1 %v9424_v1 }
 0xe85   :  { %v2383_v11 = vpop.f32.mrb[84].mxu0  ;;  %v2424_v12 = vpop.f32.mrb[68].mxu1 }
 0xe86   :  { %v2430_v48 = vadd.f32 %v2383_v11, %v8195_v61  ;;  %v2385_v14 = vpop.f32.mrb[85].mxu0  ;;  %v6375_v49 = vpop.f32.mrb[69].mxu1 }
 0xe87   :  { %v2431_v15 = vadd.f32 %v2385_v14, %v8198_v62  ;;  %v2387_v50 = vpop.f32.mrb[86].mxu0  ;;  %v2427_v56 = vpop.f32.mrb[70].mxu1  ;;  %v9432_v14 = vld [vmem:[#allocation12_spill] sm:$0xff] }
 0xe88   :  { %v5582_v40 = vmul.f32 -1.442695, %v2430_v48  ;;  %v2388_v44 = vpop.f32.mrb[87].mxu0  ;;  %v6376_v0 = vpop.f32.mrb[71].mxu1 }
 0xe89   :  { %v5583_v46 = vmul.f32 -1.442695, %v2431_v15  ;;  %v6916_v44 = vld [vmem:[#allocation5 + $0xc0] ss:$12 sps:$4 sm:$0xff]  }
 0xe8a   :  { %7182 = vpow2.f32 %v5582_v40 }
 0xe8b   :  { %7184 = vpow2.f32 %v5583_v46  ;;  %v6922_v46 = vld [vmem:[#allocation5 + $0xdc] ss:$12 sps:$4 sm:$0xff]  }
 0xe94   :  { %v7183_v60 = vpop.eup %7182 }
 0xe95   :  { %v2438_v4 = vadd.f32 1.0, %v7183_v60  ;;  %v7185_v53 = vpop.eup %7184  ;;  %v6923_v60 = vld [vmem:[#allocation5 + $0xe0] ss:$12 sps:$4 sm:$0xff]  }
 0xe96   :  { %v2439_v7 = vadd.f32 1.0, %v7185_v53  ;;  %v6920_v53 = vld [vmem:[#allocation5 + $0xd8] ss:$12 sps:$4 sm:$0xff]  }
 0xe97   :  { %7186 = vrcp.f32 %v2438_v4  ;;  %v2671_v4 = vpack.c.bf16 %v8302_v21, %v8259_v34  ;;  %v6928_v34 = vld [vmem:[#allocation5 + $0x108] ss:$12 sps:$4 sm:$0xff]   ;;  %v6934_v21 = vld [vmem:[#allocation5 + $0x124] ss:$12 sps:$4 sm:$0xff]  }
 0xea1   :  { %v7187_v19 = vpop.eup %7186 }
 0xea2   :  { %v2444_v32 = vmul.f32 %v7187_v19, %v2424_v12  ;;  %v6926_v19 = vld [vmem:[#allocation5 + $0xf4] ss:$12 sps:$4 sm:$0xff]  }
 0xea4   :  { %v2445_v61 = vadd.f32 %v2444_v32, %v8254_v55  ;;  %v7397_v55 = vld [vmem:[#allocation7 + $0xd8] ss:$12 sps:$4 sm:$0xff]  }
 0xea5   :  { %v6927_v32 = vld [vmem:[#allocation5 + $0xf8] ss:$12 sps:$4 sm:$0xff]  }
 0xea6   :  { %7188 = vtanh.f32 %v2445_v61  ;;  %v6924_v61 = vld [vmem:[#allocation5 + $0xf0] ss:$12 sps:$4 sm:$0xff]  }
 0xea7   :  { %7190 = vrcp.f32 %v2439_v7  ;;  %v6930_v7 = vld [vmem:[#allocation5 + $0x10c] ss:$12 sps:$4 sm:$0xff]  }
 0xeb0   :  { %v7189_v62 = vpop.eup %7188 }
 0xeb1   :  { %v2447_v26 = vsub.f32 %v8431_v36, %v7189_v62  ;;  %v7191_v28 = vpop.eup %7190 }
 0xeb3   :  { %v2448_v30 = vmul.f32 %v7191_v28, %v2447_v26  ;;  %v6935_v26 = vld [vmem:[#allocation5 + $0x128] ss:$12 sps:$4 sm:$0xff]   ;;  %v6932_v28 = vld [vmem:[#allocation5 + $0x120] ss:$12 sps:$4 sm:$0xff]  }
 0xeb5   :  { %v8474_v2 = vadd.f32 %v7189_v62, %v2448_v30  ;;  %v6931_v62 = vld [vmem:[#allocation5 + $0x110] ss:$12 sps:$4 sm:$0xff]  }
 0xeb6   :  { %v6938_v30 = vld [vmem:[#allocation5 + $0x13c] ss:$12 sps:$4 sm:$0xff]  }
 0xeb7   :  { %v2454_v58 = vpack.c.bf16 %v8474_v2, %v8474_v2 }
 0xeb9   :  { %2488 = vmatmul.mubr.bf16.vlgmr.msra.gmra.mrb[88].mxu0 %v2454_v58  ;;  %6394 = vmatmul.mubr.bf16.vlgmr.msra.gmra.mrb[72].mxu1 %v2454_v58  ;;  %v6939_v58 = vld [vmem:[#allocation5 + $0x140] ss:$12 sps:$4 sm:$0xff]  }
 0xeba   :  { %2562 = vmatpush1.bf16.msra.mxu0 %v7396_v54  ;;  %6398 = vmatpush3.bf16.msra.mxu1 %v8122_v18  ;;  %v7401_v18 = vld [vmem:[#allocation7 + $0x108] ss:$12 sps:$4 sm:$0xff]   ;;  %v6936_v54 = vld [vmem:[#allocation5 + $0x138] ss:$12 sps:$4 sm:$0xff]  }
 0xebb   :  { %2563 = vmatprep.subr.bf16.mxu0 %v8088_v39  ;;  %6399 = vmatprep.subr.bf16.mxu1 %v9424_v1  ;;  %v7400_v39 = vld [vmem:[#allocation7 + $0x10c] ss:$12 sps:$4 sm:$0xff]  }
 0xebc   :  { %2593 = vmatprep.mubr.bf16.mxu0 %v9425_v17  ;;  %6413 = vmatprep.mubr.msk.bf16.mxu1 %vm7492_vm2, %v9424_v1 }
 0xebe   :  { %2564 = vmatpush1.bf16.msra.mxu0 %v7397_v55  ;;  %6400 = vmatpush3.bf16.msra.mxu1 %v8131_v22  ;;  %v7403_v22 = vld [vmem:[#allocation7 + $0x120] ss:$12 sps:$4 sm:$0xff]  }
 0xebf   :  { %2565 = vmatprep.subr.bf16.mxu0 %v7398_v52  ;;  %6401 = vmatprep.subr.bf16.mxu1 %v9424_v1  ;;  %v6942_v55 = vld [vmem:[#allocation5 + $0x154] ss:$12 sps:$4 sm:$0xff]   ;;  %v6943_v52 = vld [vmem:[#allocation5 + $0x158] ss:$12 sps:$4 sm:$0xff]  }
 0xec2   :  { %2566 = vmatpush1.bf16.msra.mxu0 %v7399_v59  ;;  %6402 = vmatpush3.bf16.msra.mxu1 %v8139_v16  ;;  %v7405_v16 = vld [vmem:[#allocation7 + $0x138] ss:$12 sps:$4 sm:$0xff]   ;;  %v6940_v59 = vld [vmem:[#allocation5 + $0x150] ss:$12 sps:$4 sm:$0xff]  }
 0xec3   :  { %2567 = vmatprep.subr.bf16.mxu0 %v7400_v39  ;;  %6403 = vmatprep.subr.bf16.mxu1 %v9424_v1  ;;  %v6946_v39 = vld [vmem:[#allocation5 + $0x16c] ss:$12 sps:$4 sm:$0xff]  }
 0xec6   :  { %2568 = vmatpush1.bf16.msra.mxu0 %v7401_v18  ;;  %6404 = vmatpush3.bf16.msra.mxu1 %v8142_v47  ;;  %v7407_v47 = vld [vmem:[#allocation7 + $0x150] ss:$12 sps:$4 sm:$0xff]  }
 0xec7   :  { %2569 = vmatprep.subr.bf16.mxu0 %v7402_v35  ;;  %6405 = vmatprep.subr.bf16.mxu1 %v9424_v1  ;;  %v6947_v18 = vld [vmem:[#allocation5 + $0x170] ss:$12 sps:$4 sm:$0xff]   ;;  %v6944_v35 = vld [vmem:[#allocation5 + $0x168] ss:$12 sps:$4 sm:$0xff]  }
 0xeca   :  { %2570 = vmatpush1.bf16.msra.mxu0 %v7403_v22  ;;  %6406 = vmatpush3.bf16.msra.mxu1 %v8146_v20  ;;  %v7409_v20 = vld [vmem:[#allocation7 + $0x168] ss:$12 sps:$4 sm:$0xff]   ;;  %v2672_v22 = vpack.c.bf16 %v8388_v23, %v8345_v45  ;;  %v8524_v23 = vld [vmem:[#allocation7 + $0x198] ss:$12 sps:$4 sm:$0xff]  }
 0xecb   :  { %2571 = vmatprep.subr.bf16.mxu0 %v7404_v8  ;;  %6407 = vmatprep.subr.bf16.mxu1 %v9424_v1  ;;  %v2673_v8 = vpack.c.bf16 %v8474_v2, %v8431_v36  ;;  %v8522_v45 = vld [vmem:[#allocation7 + $0x19c] ss:$12 sps:$4 sm:$0xff]   ;;  %v8528_v36 = vld [vmem:[#allocation7 + $0x1b4] ss:$12 sps:$4 sm:$0xff]  }
 0xece   :  { %2572 = vmatpush1.bf16.msra.mxu0 %v7405_v16  ;;  %6408 = vmatpush3.bf16.msra.mxu1 %v8150_v25  ;;  %v8516_v16 = vld [vmem:[#allocation7 + $0x184] ss:$12 sps:$4 sm:$0xff]  }
 0xecf   :  { %2573 = vmatprep.subr.bf16.mxu0 %v7406_v10  ;;  %6409 = vmatprep.subr.bf16.mxu1 %v9424_v1  ;;  %v8518_v10 = vld [vmem:[#allocation7 + $0x180] ss:$12 sps:$4 sm:$0xff]  }
 0xed2   :  { %2574 = vmatpush1.bf16.msra.mxu0 %v7407_v47  ;;  %6410 = vmatpush3.bf16.msra.mxu1 %v8154_v37  ;;  %v8534_v47 = vld [vmem:[#allocation7 + $0x1cc] ss:$12 sps:$4 sm:$0xff]  }
 0xed3   :  { %2575 = vmatprep.subr.bf16.mxu0 %v7408_v51  ;;  %6411 = vmatprep.subr.bf16.mxu1 %v9424_v1  ;;  %v8536_v51 = vld [vmem:[#allocation7 + $0x1c8] ss:$12 sps:$4 sm:$0xff]  }
 0xed6   :  { %2576 = vmatpush1.bf16.msra.mxu0 %v7409_v20  ;;  %6412 = vmatpush3.bf16.msra.mxu1 %v8158_v41  ;;  %v8540_v20 = vld [vmem:[#allocation7 + $0x1e4] ss:$12 sps:$4 sm:$0xff]  }
 0xed7   :  { %2836 = vmatprep.subr.bf16.mxu0 %v6918_v33  ;;  %6417 = vmatprep.subr.bf16.mxu1 %v6919_v42  ;;  %v8542_v33 = vld [vmem:[#allocation7 + $0x1e0] ss:$12 sps:$4 sm:$0xff]  }
 0xf8c   :  { %v2489_v25 = vpop.f32.mrb[88].mxu0  ;;  %v2530_v57 = vpop.f32.mrb[72].mxu1 }
 0xf8d   :  { %v2536_v24 = vadd.f32 %v2489_v25, %v8240_v43  ;;  %v2491_v3 = vpop.f32.mrb[89].mxu0  ;;  %v6395_v5 = vpop.f32.mrb[73].mxu1  ;;  %v8548_v25 = vld [vmem:[#allocation7 + $0x1f8] ss:$12 sps:$4 sm:$0xff]  }
 0xf8e   :  { %v2537_v37 = vadd.f32 %v2491_v3, %v8244_v63  ;;  %v2493_v38 = vpop.f32.mrb[90].mxu0  ;;  %v2533_v27 = vpop.f32.mrb[74].mxu1  ;;  %v8556_v3 = vld [vmem:[#allocation7 + $0x188] ss:$12 sps:$4 sm:$0xff]   ;;  %v8558_v5 = vld [vmem:[#allocation7 + $0x22c] ss:$12 sps:$4 sm:$0xff]  }
 0xf8f   :  { %v5584_v6 = vmul.f32 -1.442695, %v2536_v24  ;;  %v2494_v13 = vpop.f32.mrb[91].mxu0  ;;  %v6396_v9 = vpop.f32.mrb[75].mxu1  ;;  %v8554_v24 = vld [vmem:[#allocation7 + $0x210] ss:$12 sps:$4 sm:$0xff]  }
 0xf90   :  { %v5585_v31 = vmul.f32 -1.442695, %v2537_v37  ;;  %v8563_v37 = vld [vmem:[#allocation7 + $0x228] ss:$12 sps:$4 sm:$0xff]   ;;  %v8565_v38 = vld [vmem:[#allocation7 + $0x1a0] ss:$12 sps:$4 sm:$0xff]  }
 0xf91   :  { %7192 = vpow2.f32 %v5584_v6  ;;  %v8573_v27 = vld [vmem:[#allocation7 + $0x1b8] ss:$12 sps:$4 sm:$0xff]   ;;  %v8576_v6 = vld [vmem:[#allocation7 + $0x1d0] ss:$12 sps:$4 sm:$0xff]   ;;  %v8580_v13 = vld [vmem:[#allocation7 + $0x1e8] ss:$12 sps:$4 sm:$0xff]  }
 0xf92   :  { %7194 = vpow2.f32 %v5585_v31  ;;  %v8584_v9 = vld [vmem:[#allocation7 + $0x200] ss:$12 sps:$4 sm:$0xff]   ;;  %v8588_v31 = vld [vmem:[#allocation7 + $0x218] ss:$12 sps:$4 sm:$0xff]  }
 0xf9b   :  { %v7193_v41 = vpop.eup %7192 }
 0xf9c   :  { %v2544_v29 = vadd.f32 1.0, %v7193_v41  ;;  %v7195_v11 = vpop.eup %7194  ;;  %v8592_v41 = vld [vmem:[#allocation7 + $0x230] ss:$12 sps:$4 sm:$0xff]  }
 0xf9d   :  { %v2545_v49 = vadd.f32 1.0, %v7195_v11 }
 0xf9e   :  { %7196 = vrcp.f32 %v2544_v29 }
 0xfa8   :  { %v7197_v12 = vpop.eup %7196 }
 0xfa9   :  { %v2550_v48 = vmul.f32 %v7197_v12, %v2530_v57  ;;  %v8552_v57 = vld [vmem:[#allocation7 + $0x214] ss:$12 sps:$4 sm:$0xff]  }
 0xfaa   :  { %v9433_v12 = vld [vmem:[#allocation11_spill] sm:$0xff] }
 0xfab   :  { %v2551_v43 = vadd.f32 %v9432_v14, %v2550_v48 }
 0xfad   :  { %7198 = vtanh.f32 %v2551_v43 }
 0xfae   :  { %7200 = vrcp.f32 %v2545_v49  ;;  %v9434_v49 = vld [vmem:[#allocation14_spill] sm:$0xff] }
 0xfb7   :  { %v7199_v63 = vpop.eup %7198 }
 0xfb8   :  { %v2553_v15 = vsub.f32 %v8474_v2, %v7199_v63  ;;  %v7201_v50 = vpop.eup %7200  ;;  %v8530_v2 = vld [vmem:[#allocation7 + $0x1b0] ss:$12 sps:$4 sm:$0xff]  }
 0xfba   :  { %v2554_v56 = vmul.f32 %v7201_v50, %v2553_v15 }
 0xfbc   :  { %v8501_v40 = vadd.f32 %v7199_v63, %v2554_v56 }
 0xfbe   :  { %v2560_v0 = vpack.c.bf16 %v8501_v40, %v8501_v40 }
 0xfc0   :  { %2594 = vmatmul.mubr.bf16.vlgmr.msra.gmra.mrb[92].mxu0 %v2560_v0  ;;  %6414 = vmatmul.mubr.bf16.vlgmr.msra.gmra.mrb[76].mxu1 %v2560_v0 }
 0xfc1   :  { %2837 = vmatpush1.bf16.msra.mxu0 %v6916_v44  ;;  %6418 = vmatpush3.bf16.msra.mxu1 %v6919_v42  ;;  %v8546_v42 = vld [vmem:[#allocation7 + $0x1fc] ss:$12 sps:$4 sm:$0xff]  }
 0xfc2   :  { %6433 = vmatprep.mubr.bf16.mxu1 %v2671_v4  ;;  %2838 = vmatprep.subr.bf16.mxu0 %v6922_v46 }
 0xfc3   :  { %6419 = vmatprep.subr.bf16.mxu1 %v6923_v60  ;;  %2868 = vmatprep.mubr.bf16.mxu0 %v9425_v17 }
 0xfc5   :  { %2839 = vmatpush1.bf16.msra.mxu0 %v6920_v53  ;;  %6420 = vmatpush3.bf16.msra.mxu1 %v6923_v60 }
 0xfc6   :  { %2840 = vmatprep.subr.bf16.mxu0 %v6926_v19  ;;  %6421 = vmatprep.subr.bf16.mxu1 %v6927_v32 }
 0xfc9   :  { %2841 = vmatpush1.bf16.msra.mxu0 %v6924_v61  ;;  %6422 = vmatpush3.bf16.msra.mxu1 %v6927_v32  ;;  %v9435_v61 = vld [vmem:[#allocation13_spill] sm:$0xff] }
 0xfca   :  { %2842 = vmatprep.subr.bf16.mxu0 %v6930_v7  ;;  %6423 = vmatprep.subr.bf16.mxu1 %v6931_v62 }
 0xfcd   :  { %2843 = vmatpush1.bf16.msra.mxu0 %v6928_v34  ;;  %6424 = vmatpush3.bf16.msra.mxu1 %v6931_v62 }
 0xfce   :  { %2844 = vmatprep.subr.bf16.mxu0 %v6934_v21  ;;  %6425 = vmatprep.subr.bf16.mxu1 %v6935_v26 }
 0xfd1   :  { %2845 = vmatpush1.bf16.msra.mxu0 %v6932_v28  ;;  %6426 = vmatpush3.bf16.msra.mxu1 %v6935_v26 }
 0xfd2   :  { %2846 = vmatprep.subr.bf16.mxu0 %v6938_v30  ;;  %6427 = vmatprep.subr.bf16.mxu1 %v6939_v58 }
 0xfd5   :  { %2847 = vmatpush1.bf16.msra.mxu0 %v6936_v54  ;;  %6428 = vmatpush3.bf16.msra.mxu1 %v6939_v58 }
 0xfd6   :  { %2848 = vmatprep.subr.bf16.mxu0 %v6942_v55  ;;  %6429 = vmatprep.subr.bf16.mxu1 %v6943_v52 }
 0xfd9   :  { %2849 = vmatpush1.bf16.msra.mxu0 %v6940_v59  ;;  %6430 = vmatpush3.bf16.msra.mxu1 %v6943_v52 }
 0xfda   :  { %2850 = vmatprep.subr.bf16.mxu0 %v6946_v39  ;;  %6431 = vmatprep.subr.bf16.mxu1 %v6947_v18 }
 0xfdd   :  { %2851 = vmatpush1.bf16.msra.mxu0 %v6944_v35  ;;  %6432 = vmatpush3.bf16.msra.mxu1 %v6947_v18 }
 0xfde   :  { %6441 = vmatprep.subr.bf16.mxu1 %v9424_v1  ;;  %3162 = vmatprep.subr.bf16.mxu0 %v8516_v16 }
 0xfe0   :  { %2869 = vmatmul.mubr.bf16.vlgmr.msra.gmra.mrb[96].mxu0 %v2671_v4  ;;  %6434 = vmatmul.mubr.bf16.vlgmr.msra.gmra.mrb[80].mxu1 %v2672_v22 }
 0xfe1   :  { %6437 = vmatprep.mubr.bf16.mxu1 %v2673_v8  ;;  %2878 = vmatprep.mubr.bf16.mxu0 %v9425_v17 }
 0xfe2   :  { %3163 = vmatpush1.bf16.msra.mxu0 %v8518_v10  ;;  %6442 = vmatpush3.bf16.msra.mxu1 %v8556_v3 }
 0xfe3   :  { %3164 = vmatprep.subr.bf16.mxu0 %v8522_v45  ;;  %6443 = vmatprep.subr.bf16.mxu1 %v9424_v1 }
 0xfe6   :  { %3165 = vmatpush1.bf16.msra.mxu0 %v8524_v23  ;;  %6444 = vmatpush3.bf16.msra.mxu1 %v8565_v38 }
 0xfe7   :  { %3166 = vmatprep.subr.bf16.mxu0 %v8528_v36  ;;  %6445 = vmatprep.subr.bf16.mxu1 %v9424_v1 }
 0xfe8   :  { %2879 = vmatmul.mubr.bf16.gmra.mrb[100].mxu0 %v2672_v22 }
 0xfe9   :  { %2888 = vmatprep.mubr.bf16.mxu0 %v9425_v17 }
 0xfea   :  { %3167 = vmatpush1.bf16.msra.mxu0 %v8530_v2  ;;  %6446 = vmatpush3.bf16.msra.mxu1 %v8573_v27 }
 0xfeb   :  { %3168 = vmatprep.subr.bf16.mxu0 %v8534_v47  ;;  %6447 = vmatprep.subr.bf16.mxu1 %v9424_v1 }
 0xfee   :  { %3169 = vmatpush1.bf16.msra.mxu0 %v8536_v51  ;;  %6448 = vmatpush3.bf16.msra.mxu1 %v8576_v6 }
 0xfef   :  { %3170 = vmatprep.subr.bf16.mxu0 %v8540_v20  ;;  %6449 = vmatprep.subr.bf16.mxu1 %v9424_v1 }
 0xff0   :  { %2889 = vmatmul.mubr.bf16.gmra.mrb[104].mxu0 %v2673_v8 }
 0xff1   :  { %2898 = vmatprep.mubr.bf16.mxu0 %v9425_v17 }
 0xff2   :  { %3171 = vmatpush1.bf16.msra.mxu0 %v8542_v33  ;;  %6450 = vmatpush3.bf16.msra.mxu1 %v8580_v13 }
 0xff3   :  { %3172 = vmatprep.subr.bf16.mxu0 %v8546_v42  ;;  %6451 = vmatprep.subr.bf16.mxu1 %v9424_v1 }
 0xff6   :  { %3173 = vmatpush1.bf16.msra.mxu0 %v8548_v25  ;;  %6452 = vmatpush3.bf16.msra.mxu1 %v8584_v9 }
 0xff7   :  { %3174 = vmatprep.subr.bf16.mxu0 %v8552_v57  ;;  %6453 = vmatprep.subr.bf16.mxu1 %v9424_v1 }
 0xffa   :  { %3175 = vmatpush1.bf16.msra.mxu0 %v8554_v24  ;;  %6454 = vmatpush3.bf16.msra.mxu1 %v8588_v31 }
 0xffb   :  { %3176 = vmatprep.subr.bf16.mxu0 %v8558_v5  ;;  %6455 = vmatprep.subr.bf16.mxu1 %v9424_v1 }
 0xffe   :  { %3177 = vmatpush1.bf16.msra.mxu0 %v8563_v37  ;;  %6456 = vmatpush3.bf16.msra.mxu1 %v8592_v41 }
 0xfff   :  { %3268 = vmatprep.subr.bf16.mxu0 %v8516_v16  ;;  %6461 = vmatprep.subr.bf16.mxu1 %v9424_v1 }
0x1093   :  { %v2595_v29 = vpop.f32.mrb[92].mxu0  ;;  %v2636_v11 = vpop.f32.mrb[76].mxu1 }
0x1094   :  { %v2642_v48 = vadd.f32 %v2595_v29, %v9433_v12  ;;  %v2597_v14 = vpop.f32.mrb[93].mxu0  ;;  %v6415_v43 = vpop.f32.mrb[77].mxu1 }
0x1095   :  { %v2643_v63 = vadd.f32 %v2597_v14, %v9434_v49  ;;  %v2599_v15 = vpop.f32.mrb[94].mxu0  ;;  %v2639_v50 = vpop.f32.mrb[78].mxu1 }
0x1096   :  { %v5586_v56 = vmul.f32 -1.442695, %v2642_v48  ;;  %v2600_v44 = vpop.f32.mrb[95].mxu0  ;;  %v6416_v0 = vpop.f32.mrb[79].mxu1 }
0x1097   :  { %v5587_v46 = vmul.f32 -1.442695, %v2643_v63 }
0x1098   :  { %7202 = vpow2.f32 %v5586_v56 }
0x1099   :  { %7204 = vpow2.f32 %v5587_v46 }
0x10a2   :  { %v7203_v60 = vpop.eup %7202 }
0x10a3   :  { %v2650_v4 = vadd.f32 1.0, %v7203_v60  ;;  %v7205_v53 = vpop.eup %7204 }
0x10a4   :  { %v2651_v62 = vadd.f32 1.0, %v7205_v53 }
0x10a5   :  { %7206 = vrcp.f32 %v2650_v4 }
0x10af   :  { %v7207_v19 = vpop.eup %7206 }
0x10b0   :  { %v2656_v32 = vmul.f32 %v7207_v19, %v2636_v11 }
0x10b2   :  { %v2657_v7 = vadd.f32 %v9435_v61, %v2656_v32 }
0x10b3   :  { %v8600_v34 = vpop.f32.mrb[96].mxu0  ;;  %v8602_v21 = vpop.f32.mrb[80].mxu1 }
0x10b4   :  { %7208 = vtanh.f32 %v2657_v7  ;;  %v8604_v26 = vpop.f32.mrb[97].mxu0  ;;  %v8606_v28 = vpop.f32.mrb[81].mxu1 }
0x10b5   :  { %v8608_v30 = vpop.f32.mrb[98].mxu0  ;;  %v8610_v58 = vpop.f32.mrb[82].mxu1  ;;  %7210 = vrcp.f32 %v2651_v62 }
0x10b6   :  { %v8612_v54 = vpop.f32.mrb[99].mxu0  ;;  %v8614_v55 = vpop.f32.mrb[83].mxu1 }
0x10bb   :  { %v8616_v52 = vpop.f32.mrb[100].mxu0 }
0x10bc   :  { %v8618_v59 = vpop.f32.mrb[101].mxu0 }
0x10bd   :  { %v8620_v39 = vpop.f32.mrb[102].mxu0 }
0x10be   :  { %v7209_v18 = vpop.eup %7208  ;;  %v8622_v35 = vpop.f32.mrb[103].mxu0 }
0x10bf   :  { %v2659_v22 = vsub.f32 %v8501_v40, %v7209_v18  ;;  %v7211_v8 = vpop.eup %7210 }
0x10c1   :  { %v2660_v29 = vmul.f32 %v7211_v8, %v2659_v22 }
0x10c3   :  { %v8625_v11 = vpop.f32.mrb[104].mxu0  ;;  %v2661_v12 = vadd.f32 %v7209_v18, %v2660_v29 }
0x10c4   :  { %v8627_v48 = vpop.f32.mrb[105].mxu0 }
0x10c5   :  { %v8629_v14 = vpop.f32.mrb[106].mxu0  ;;  %v2674_v43 = vpack.c.bf16 %v2661_v12, %v8501_v40 }
0x10c6   :  { %v8632_v49 = vpop.f32.mrb[107].mxu0 }
0x10c7   :  { %2899 = vmatmul.mubr.bf16.gmra.mrb[108].mxu0 %v2674_v43  ;;  %6438 = vmatmul.mubr.bf16.gmra.mrb[84].mxu1 %v2674_v43 }
0x10c8   :  { %3194 = vmatprep.mubr.bf16.mxu0 %v9425_v17  ;;  %6457 = vmatprep.mubr.msk.bf16.mxu1 %vm7492_vm2, %v9424_v1 }
0x10cf   :  { %3195 = vmatmul.mubr.bf16.vlgmr.msra.gmra.mrb[112].mxu0 %v9425_v17  ;;  %6458 = vmatmul.mubr.bf16.vlgmr.msra.gmra.mrb[88].mxu1 %v9425_v17 }
0x10d0   :  { %3269 = vmatpush1.bf16.msra.mxu0 %v8518_v10  ;;  %6462 = vmatpush3.bf16.msra.mxu1 %v8556_v3 }
0x10d1   :  { %3270 = vmatprep.subr.bf16.mxu0 %v8522_v45  ;;  %6463 = vmatprep.subr.bf16.mxu1 %v9424_v1 }
0x10d2   :  { %3300 = vmatprep.mubr.bf16.mxu0 %v9425_v17  ;;  %6477 = vmatprep.mubr.msk.bf16.mxu1 %vm7492_vm2, %v9424_v1 }
0x10d4   :  { %3271 = vmatpush1.bf16.msra.mxu0 %v8524_v23  ;;  %6464 = vmatpush3.bf16.msra.mxu1 %v8565_v38 }
0x10d5   :  { %3272 = vmatprep.subr.bf16.mxu0 %v8528_v36  ;;  %6465 = vmatprep.subr.bf16.mxu1 %v9424_v1 }
0x10d8   :  { %3273 = vmatpush1.bf16.msra.mxu0 %v8530_v2  ;;  %6466 = vmatpush3.bf16.msra.mxu1 %v8573_v27 }
0x10d9   :  { %3274 = vmatprep.subr.bf16.mxu0 %v8534_v47  ;;  %6467 = vmatprep.subr.bf16.mxu1 %v9424_v1 }
0x10dc   :  { %3275 = vmatpush1.bf16.msra.mxu0 %v8536_v51  ;;  %6468 = vmatpush3.bf16.msra.mxu1 %v8576_v6 }
0x10dd   :  { %3276 = vmatprep.subr.bf16.mxu0 %v8540_v20  ;;  %6469 = vmatprep.subr.bf16.mxu1 %v9424_v1 }
0x10e0   :  { %3277 = vmatpush1.bf16.msra.mxu0 %v8542_v33  ;;  %6470 = vmatpush3.bf16.msra.mxu1 %v8580_v13 }
0x10e1   :  { %3278 = vmatprep.subr.bf16.mxu0 %v8546_v42  ;;  %6471 = vmatprep.subr.bf16.mxu1 %v9424_v1 }
0x10e4   :  { %3279 = vmatpush1.bf16.msra.mxu0 %v8548_v25  ;;  %6472 = vmatpush3.bf16.msra.mxu1 %v8584_v9 }
0x10e5   :  { %3280 = vmatprep.subr.bf16.mxu0 %v8552_v57  ;;  %6473 = vmatprep.subr.bf16.mxu1 %v9424_v1 }
0x10e8   :  { %3281 = vmatpush1.bf16.msra.mxu0 %v8554_v24  ;;  %6474 = vmatpush3.bf16.msra.mxu1 %v8588_v31 }
0x10e9   :  { %3282 = vmatprep.subr.bf16.mxu0 %v8558_v5  ;;  %6475 = vmatprep.subr.bf16.mxu1 %v9424_v1 }
0x10ec   :  { %3283 = vmatpush1.bf16.msra.mxu0 %v8563_v37  ;;  %6476 = vmatpush3.bf16.msra.mxu1 %v8592_v41 }
0x10ed   :  { %3374 = vmatprep.subr.bf16.mxu0 %v8516_v16  ;;  %6481 = vmatprep.subr.bf16.mxu1 %v9424_v1 }
0x119a   :  { %v8674_v40 = vpop.f32.mrb[108].mxu0  ;;  %v8676_v63 = vpop.f32.mrb[84].mxu1 }
0x119b   :  { %9436 = vst [vmem:[#allocation12_spill] sm:$0xff] %v8676_v63  ;;  %v8678_v15 = vpop.f32.mrb[109].mxu0  ;;  %v8680_v50 = vpop.f32.mrb[85].mxu1 }
0x119c   :  { %v8682_v56 = vpop.f32.mrb[110].mxu0  ;;  %v8684_v44 = vpop.f32.mrb[86].mxu1 }
0x119d   :  { %9437 = vst [vmem:[#allocation11_spill] sm:$0xff] %v8682_v56  ;;  %9438 = vst [vmem:[#allocation14_spill] sm:$0xff] %v8684_v44  ;;  %v8686_v0 = vpop.f32.mrb[111].mxu0  ;;  %v8688_v46 = vpop.f32.mrb[87].mxu1 }
0x119e   :  { %9439 = vst [vmem:[#allocation13_spill] sm:$0xff] %v8686_v0 }
0x11a2   :  { %v3196_v60 = vpop.f32.mrb[112].mxu0  ;;  %v3237_v4 = vpop.f32.mrb[88].mxu1 }
0x11a3   :  { %v3243_v53 = vadd.f32 %v3196_v60, %v8600_v34  ;;  %v3198_v19 = vpop.f32.mrb[113].mxu0  ;;  %v6459_v32 = vpop.f32.mrb[89].mxu1 }
0x11a4   :  { %v3244_v61 = vadd.f32 %v3198_v19, %v8604_v26  ;;  %v3200_v7 = vpop.f32.mrb[114].mxu0  ;;  %v3240_v62 = vpop.f32.mrb[90].mxu1 }
0x11a5   :  { %v5636_v18 = vmul.f32 -1.442695, %v3243_v53  ;;  %v3201_v22 = vpop.f32.mrb[115].mxu0  ;;  %v6460_v8 = vpop.f32.mrb[91].mxu1 }
0x11a6   :  { %v5637_v29 = vmul.f32 -1.442695, %v3244_v61 }
0x11a7   :  { %7212 = vpow2.f32 %v5636_v18 }
0x11a8   :  { %7214 = vpow2.f32 %v5637_v29 }
0x11b1   :  { %v7213_v12 = vpop.eup %7212 }
0x11b2   :  { %v3251_v43 = vadd.f32 1.0, %v7213_v12  ;;  %v7215_v44 = vpop.eup %7214 }
0x11b3   :  { %v3252_v63 = vadd.f32 1.0, %v7215_v44 }
0x11b4   :  { %7216 = vrcp.f32 %v3251_v43 }
0x11be   :  { %v7217_v0 = vpop.eup %7216 }
0x11bf   :  { %v3257_v56 = vmul.f32 %v7217_v0, %v3237_v4 }
0x11c1   :  { %v3258_v34 = vadd.f32 %v3257_v56, %v8606_v28 }
0x11c3   :  { %7218 = vtanh.f32 %v3258_v34 }
0x11c4   :  { %7220 = vrcp.f32 %v3252_v63 }
0x11cd   :  { %v7219_v26 = vpop.eup %7218 }
0x11ce   :  { %v3260_v60 = vsub.f32 0.0, %v7219_v26  ;;  %v7221_v19 = vpop.eup %7220 }
0x11d0   :  { %v3261_v53 = vmul.f32 %v7221_v19, %v3260_v60 }
0x11d2   :  { %v8693_v32 = vadd.f32 %v7219_v26, %v3261_v53 }
0x11d4   :  { %v3267_v61 = vpack.c.bf16 %v8693_v32, %v8693_v32 }
0x11d6   :  { %3301 = vmatmul.mubr.bf16.vlgmr.msra.gmra.mrb[116].mxu0 %v3267_v61  ;;  %6478 = vmatmul.mubr.bf16.vlgmr.msra.gmra.mrb[92].mxu1 %v3267_v61 }
0x11d7   :  { %3375 = vmatpush1.bf16.msra.mxu0 %v8518_v10  ;;  %6482 = vmatpush3.bf16.msra.mxu1 %v8556_v3 }
0x11d8   :  { %3376 = vmatprep.subr.bf16.mxu0 %v8522_v45  ;;  %6483 = vmatprep.subr.bf16.mxu1 %v9424_v1 }
0x11d9   :  { %3406 = vmatprep.mubr.bf16.mxu0 %v9425_v17  ;;  %6497 = vmatprep.mubr.msk.bf16.mxu1 %vm7492_vm2, %v9424_v1 }
0x11db   :  { %3377 = vmatpush1.bf16.msra.mxu0 %v8524_v23  ;;  %6484 = vmatpush3.bf16.msra.mxu1 %v8565_v38 }
0x11dc   :  { %3378 = vmatprep.subr.bf16.mxu0 %v8528_v36  ;;  %6485 = vmatprep.subr.bf16.mxu1 %v9424_v1 }
0x11df   :  { %3379 = vmatpush1.bf16.msra.mxu0 %v8530_v2  ;;  %6486 = vmatpush3.bf16.msra.mxu1 %v8573_v27 }
0x11e0   :  { %3380 = vmatprep.subr.bf16.mxu0 %v8534_v47  ;;  %6487 = vmatprep.subr.bf16.mxu1 %v9424_v1 }
0x11e3   :  { %3381 = vmatpush1.bf16.msra.mxu0 %v8536_v51  ;;  %6488 = vmatpush3.bf16.msra.mxu1 %v8576_v6 }
0x11e4   :  { %3382 = vmatprep.subr.bf16.mxu0 %v8540_v20  ;;  %6489 = vmatprep.subr.bf16.mxu1 %v9424_v1 }
0x11e7   :  { %3383 = vmatpush1.bf16.msra.mxu0 %v8542_v33  ;;  %6490 = vmatpush3.bf16.msra.mxu1 %v8580_v13 }
0x11e8   :  { %3384 = vmatprep.subr.bf16.mxu0 %v8546_v42  ;;  %6491 = vmatprep.subr.bf16.mxu1 %v9424_v1 }
0x11eb   :  { %3385 = vmatpush1.bf16.msra.mxu0 %v8548_v25  ;;  %6492 = vmatpush3.bf16.msra.mxu1 %v8584_v9 }
0x11ec   :  { %3386 = vmatprep.subr.bf16.mxu0 %v8552_v57  ;;  %6493 = vmatprep.subr.bf16.mxu1 %v9424_v1 }
0x11ef   :  { %3387 = vmatpush1.bf16.msra.mxu0 %v8554_v24  ;;  %6494 = vmatpush3.bf16.msra.mxu1 %v8588_v31 }
0x11f0   :  { %3388 = vmatprep.subr.bf16.mxu0 %v8558_v5  ;;  %6495 = vmatprep.subr.bf16.mxu1 %v9424_v1 }
0x11f3   :  { %3389 = vmatpush1.bf16.msra.mxu0 %v8563_v37  ;;  %6496 = vmatpush3.bf16.msra.mxu1 %v8592_v41 }
0x11f4   :  { %3480 = vmatprep.subr.bf16.mxu0 %v8516_v16  ;;  %6501 = vmatprep.subr.bf16.mxu1 %v9424_v1 }
0x12a9   :  { %v3302_v28 = vpop.f32.mrb[116].mxu0  ;;  %v3343_v63 = vpop.f32.mrb[92].mxu1 }
0x12aa   :  { %v3349_v56 = vadd.f32 %v3302_v28, %v8608_v30  ;;  %v3304_v44 = vpop.f32.mrb[117].mxu0  ;;  %v6479_v0 = vpop.f32.mrb[93].mxu1 }
0x12ab   :  { %v3350_v4 = vadd.f32 %v3304_v44, %v8612_v54  ;;  %v3306_v7 = vpop.f32.mrb[118].mxu0  ;;  %v3346_v62 = vpop.f32.mrb[94].mxu1 }
0x12ac   :  { %v5638_v18 = vmul.f32 -1.442695, %v3349_v56  ;;  %v3307_v22 = vpop.f32.mrb[119].mxu0  ;;  %v6480_v8 = vpop.f32.mrb[95].mxu1 }
0x12ad   :  { %v5639_v29 = vmul.f32 -1.442695, %v3350_v4 }
0x12ae   :  { %7222 = vpow2.f32 %v5638_v18 }
0x12af   :  { %7224 = vpow2.f32 %v5639_v29 }
0x12b8   :  { %v7223_v12 = vpop.eup %7222 }
0x12b9   :  { %v3357_v43 = vadd.f32 1.0, %v7223_v12  ;;  %v7225_v34 = vpop.eup %7224 }
0x12ba   :  { %v3358_v19 = vadd.f32 1.0, %v7225_v34 }
0x12bb   :  { %7226 = vrcp.f32 %v3357_v43 }
0x12c5   :  { %v7227_v26 = vpop.eup %7226 }
0x12c6   :  { %v3363_v60 = vmul.f32 %v7227_v26, %v3343_v63 }
0x12c8   :  { %v3364_v30 = vadd.f32 %v3363_v60, %v8614_v55 }
0x12ca   :  { %7228 = vtanh.f32 %v3364_v30 }
0x12cb   :  { %7230 = vrcp.f32 %v3358_v19 }
0x12d4   :  { %v7229_v54 = vpop.eup %7228 }
0x12d5   :  { %v3366_v53 = vsub.f32 %v8693_v32, %v7229_v54  ;;  %v7231_v61 = vpop.eup %7230 }
0x12d7   :  { %v3367_v28 = vmul.f32 %v7231_v61, %v3366_v53 }
0x12d9   :  { %v8736_v56 = vadd.f32 %v7229_v54, %v3367_v28 }
0x12db   :  { %v3373_v44 = vpack.c.bf16 %v8736_v56, %v8736_v56 }
0x12dd   :  { %3407 = vmatmul.mubr.bf16.vlgmr.msra.gmra.mrb[120].mxu0 %v3373_v44  ;;  %6498 = vmatmul.mubr.bf16.vlgmr.msra.gmra.mrb[96].mxu1 %v3373_v44 }
0x12de   :  { %3481 = vmatpush1.bf16.msra.mxu0 %v8518_v10  ;;  %6502 = vmatpush3.bf16.msra.mxu1 %v8556_v3 }
0x12df   :  { %3482 = vmatprep.subr.bf16.mxu0 %v8522_v45  ;;  %6503 = vmatprep.subr.bf16.mxu1 %v9424_v1 }
0x12e0   :  { %3512 = vmatprep.mubr.bf16.mxu0 %v9425_v17  ;;  %6517 = vmatprep.mubr.msk.bf16.mxu1 %vm7492_vm2, %v9424_v1 }
0x12e2   :  { %3483 = vmatpush1.bf16.msra.mxu0 %v8524_v23  ;;  %6504 = vmatpush3.bf16.msra.mxu1 %v8565_v38 }
0x12e3   :  { %3484 = vmatprep.subr.bf16.mxu0 %v8528_v36  ;;  %6505 = vmatprep.subr.bf16.mxu1 %v9424_v1 }
0x12e6   :  { %3485 = vmatpush1.bf16.msra.mxu0 %v8530_v2  ;;  %6506 = vmatpush3.bf16.msra.mxu1 %v8573_v27 }
0x12e7   :  { %3486 = vmatprep.subr.bf16.mxu0 %v8534_v47  ;;  %6507 = vmatprep.subr.bf16.mxu1 %v9424_v1 }
0x12ea   :  { %3487 = vmatpush1.bf16.msra.mxu0 %v8536_v51  ;;  %6508 = vmatpush3.bf16.msra.mxu1 %v8576_v6 }
0x12eb   :  { %3488 = vmatprep.subr.bf16.mxu0 %v8540_v20  ;;  %6509 = vmatprep.subr.bf16.mxu1 %v9424_v1 }
0x12ee   :  { %3489 = vmatpush1.bf16.msra.mxu0 %v8542_v33  ;;  %6510 = vmatpush3.bf16.msra.mxu1 %v8580_v13 }
0x12ef   :  { %3490 = vmatprep.subr.bf16.mxu0 %v8546_v42  ;;  %6511 = vmatprep.subr.bf16.mxu1 %v9424_v1 }
0x12f2   :  { %3491 = vmatpush1.bf16.msra.mxu0 %v8548_v25  ;;  %6512 = vmatpush3.bf16.msra.mxu1 %v8584_v9 }
0x12f3   :  { %3492 = vmatprep.subr.bf16.mxu0 %v8552_v57  ;;  %6513 = vmatprep.subr.bf16.mxu1 %v9424_v1 }
0x12f6   :  { %3493 = vmatpush1.bf16.msra.mxu0 %v8554_v24  ;;  %6514 = vmatpush3.bf16.msra.mxu1 %v8588_v31 }
0x12f7   :  { %3494 = vmatprep.subr.bf16.mxu0 %v8558_v5  ;;  %6515 = vmatprep.subr.bf16.mxu1 %v9424_v1 }
0x12fa   :  { %3495 = vmatpush1.bf16.msra.mxu0 %v8563_v37  ;;  %6516 = vmatpush3.bf16.msra.mxu1 %v8592_v41 }
0x12fb   :  { %3586 = vmatprep.subr.bf16.mxu0 %v8516_v16  ;;  %6521 = vmatprep.subr.bf16.mxu1 %v9424_v1 }
0x13b0   :  { %v3408_v55 = vpop.f32.mrb[120].mxu0  ;;  %v3449_v63 = vpop.f32.mrb[96].mxu1 }
0x13b1   :  { %v3455_v0 = vadd.f32 %v3408_v55, %v8616_v52  ;;  %v3410_v4 = vpop.f32.mrb[121].mxu0  ;;  %v6499_v7 = vpop.f32.mrb[97].mxu1 }
0x13b2   :  { %v3456_v62 = vadd.f32 %v3410_v4, %v8618_v59  ;;  %v3412_v18 = vpop.f32.mrb[122].mxu0  ;;  %v3452_v22 = vpop.f32.mrb[98].mxu1 }
0x13b3   :  { %v5640_v8 = vmul.f32 -1.442695, %v3455_v0  ;;  %v3413_v29 = vpop.f32.mrb[123].mxu0  ;;  %v6500_v12 = vpop.f32.mrb[99].mxu1 }
0x13b4   :  { %v5641_v43 = vmul.f32 -1.442695, %v3456_v62 }
0x13b5   :  { %7232 = vpow2.f32 %v5640_v8 }
0x13b6   :  { %7234 = vpow2.f32 %v5641_v43 }
0x13bf   :  { %v7233_v34 = vpop.eup %7232 }
0x13c0   :  { %v3463_v26 = vadd.f32 1.0, %v7233_v34  ;;  %v7235_v60 = vpop.eup %7234 }
0x13c1   :  { %v3464_v54 = vadd.f32 1.0, %v7235_v60 }
0x13c2   :  { %7236 = vrcp.f32 %v3463_v26 }
0x13cc   :  { %v7237_v30 = vpop.eup %7236 }
0x13cd   :  { %v3469_v19 = vmul.f32 %v7237_v30, %v3449_v63 }
0x13cf   :  { %v3470_v52 = vadd.f32 %v8602_v21, %v3469_v19 }
0x13d1   :  { %7238 = vtanh.f32 %v3470_v52 }
0x13d2   :  { %7240 = vrcp.f32 %v3464_v54 }
0x13db   :  { %v7239_v59 = vpop.eup %7238 }
0x13dc   :  { %v3472_v53 = vsub.f32 %v8736_v56, %v7239_v59  ;;  %v7241_v61 = vpop.eup %7240 }
0x13de   :  { %v3473_v28 = vmul.f32 %v7241_v61, %v3472_v53 }
0x13e0   :  { %v8779_v44 = vadd.f32 %v7239_v59, %v3473_v28 }
0x13e2   :  { %v3479_v55 = vpack.c.bf16 %v8779_v44, %v8779_v44 }
0x13e4   :  { %3513 = vmatmul.mubr.bf16.vlgmr.msra.gmra.mrb[124].mxu0 %v3479_v55  ;;  %6518 = vmatmul.mubr.bf16.vlgmr.msra.gmra.mrb[100].mxu1 %v3479_v55 }
0x13e5   :  { %3587 = vmatpush1.bf16.msra.mxu0 %v8518_v10  ;;  %6522 = vmatpush3.bf16.msra.mxu1 %v8556_v3 }
0x13e6   :  { %3588 = vmatprep.subr.bf16.mxu0 %v8522_v45  ;;  %6523 = vmatprep.subr.bf16.mxu1 %v9424_v1 }
0x13e7   :  { %3618 = vmatprep.mubr.bf16.mxu0 %v9425_v17  ;;  %6537 = vmatprep.mubr.msk.bf16.mxu1 %vm7492_vm2, %v9424_v1 }
0x13e9   :  { %3589 = vmatpush1.bf16.msra.mxu0 %v8524_v23  ;;  %6524 = vmatpush3.bf16.msra.mxu1 %v8565_v38 }
0x13ea   :  { %3590 = vmatprep.subr.bf16.mxu0 %v8528_v36  ;;  %6525 = vmatprep.subr.bf16.mxu1 %v9424_v1 }
0x13ed   :  { %3591 = vmatpush1.bf16.msra.mxu0 %v8530_v2  ;;  %6526 = vmatpush3.bf16.msra.mxu1 %v8573_v27 }
0x13ee   :  { %3592 = vmatprep.subr.bf16.mxu0 %v8534_v47  ;;  %6527 = vmatprep.subr.bf16.mxu1 %v9424_v1 }
0x13f1   :  { %3593 = vmatpush1.bf16.msra.mxu0 %v8536_v51  ;;  %6528 = vmatpush3.bf16.msra.mxu1 %v8576_v6 }
0x13f2   :  { %3594 = vmatprep.subr.bf16.mxu0 %v8540_v20  ;;  %6529 = vmatprep.subr.bf16.mxu1 %v9424_v1 }
0x13f5   :  { %3595 = vmatpush1.bf16.msra.mxu0 %v8542_v33  ;;  %6530 = vmatpush3.bf16.msra.mxu1 %v8580_v13 }
0x13f6   :  { %3596 = vmatprep.subr.bf16.mxu0 %v8546_v42  ;;  %6531 = vmatprep.subr.bf16.mxu1 %v9424_v1 }
0x13f9   :  { %3597 = vmatpush1.bf16.msra.mxu0 %v8548_v25  ;;  %6532 = vmatpush3.bf16.msra.mxu1 %v8584_v9 }
0x13fa   :  { %3598 = vmatprep.subr.bf16.mxu0 %v8552_v57  ;;  %6533 = vmatprep.subr.bf16.mxu1 %v9424_v1 }
0x13fd   :  { %3599 = vmatpush1.bf16.msra.mxu0 %v8554_v24  ;;  %6534 = vmatpush3.bf16.msra.mxu1 %v8588_v31 }
0x13fe   :  { %3600 = vmatprep.subr.bf16.mxu0 %v8558_v5  ;;  %6535 = vmatprep.subr.bf16.mxu1 %v9424_v1 }
0x1401   :  { %3601 = vmatpush1.bf16.msra.mxu0 %v8563_v37  ;;  %6536 = vmatpush3.bf16.msra.mxu1 %v8592_v41 }
0x1402   :  { %3692 = vmatprep.subr.bf16.mxu0 %v8516_v16  ;;  %6541 = vmatprep.subr.bf16.mxu1 %v9424_v1 }
0x14b7   :  { %v3514_v21 = vpop.f32.mrb[124].mxu0  ;;  %v3555_v63 = vpop.f32.mrb[100].mxu1 }
0x14b8   :  { %v3561_v0 = vadd.f32 %v3514_v21, %v8620_v39  ;;  %v3516_v4 = vpop.f32.mrb[125].mxu0  ;;  %v6519_v7 = vpop.f32.mrb[101].mxu1 }
0x14b9   :  { %v3562_v62 = vadd.f32 %v3516_v4, %v8622_v35  ;;  %v3518_v18 = vpop.f32.mrb[126].mxu0  ;;  %v3558_v22 = vpop.f32.mrb[102].mxu1 }
0x14ba   :  { %v5642_v8 = vmul.f32 -1.442695, %v3561_v0  ;;  %v3519_v29 = vpop.f32.mrb[127].mxu0  ;;  %v6520_v12 = vpop.f32.mrb[103].mxu1 }
0x14bb   :  { %v5643_v43 = vmul.f32 -1.442695, %v3562_v62 }
0x14bc   :  { %7242 = vpow2.f32 %v5642_v8 }
0x14bd   :  { %7244 = vpow2.f32 %v5643_v43 }
0x14c6   :  { %v7243_v34 = vpop.eup %7242 }
0x14c7   :  { %v3569_v26 = vadd.f32 1.0, %v7243_v34  ;;  %v7245_v60 = vpop.eup %7244 }
0x14c8   :  { %v3570_v52 = vadd.f32 1.0, %v7245_v60 }
0x14c9   :  { %7246 = vrcp.f32 %v3569_v26 }
0x14d3   :  { %v7247_v30 = vpop.eup %7246 }
0x14d4   :  { %v3575_v19 = vmul.f32 %v7247_v30, %v3555_v63 }
0x14d6   :  { %v3576_v39 = vadd.f32 %v8610_v58, %v3575_v19 }
0x14d8   :  { %7248 = vtanh.f32 %v3576_v39 }
0x14d9   :  { %7250 = vrcp.f32 %v3570_v52 }
0x14e2   :  { %v7249_v35 = vpop.eup %7248 }
0x14e3   :  { %v3578_v54 = vsub.f32 %v8779_v44, %v7249_v35  ;;  %v7251_v59 = vpop.eup %7250 }
0x14e5   :  { %v3579_v53 = vmul.f32 %v7251_v59, %v3578_v54 }
0x14e7   :  { %v8822_v61 = vadd.f32 %v7249_v35, %v3579_v53 }
0x14e9   :  { %v3585_v28 = vpack.c.bf16 %v8822_v61, %v8822_v61 }
0x14eb   :  { %3619 = vmatmul.mubr.bf16.vlgmr.msra.gmra.mrb[128].mxu0 %v3585_v28  ;;  %6538 = vmatmul.mubr.bf16.vlgmr.msra.gmra.mrb[104].mxu1 %v3585_v28 }
0x14ec   :  { %3693 = vmatpush1.bf16.msra.mxu0 %v8518_v10  ;;  %6542 = vmatpush3.bf16.msra.mxu1 %v8556_v3 }
0x14ed   :  { %3694 = vmatprep.subr.bf16.mxu0 %v8522_v45  ;;  %6543 = vmatprep.subr.bf16.mxu1 %v9424_v1 }
0x14ee   :  { %3724 = vmatprep.mubr.bf16.mxu0 %v9425_v17  ;;  %6557 = vmatprep.mubr.msk.bf16.mxu1 %vm7492_vm2, %v9424_v1 }
0x14f0   :  { %3695 = vmatpush1.bf16.msra.mxu0 %v8524_v23  ;;  %6544 = vmatpush3.bf16.msra.mxu1 %v8565_v38 }
0x14f1   :  { %3696 = vmatprep.subr.bf16.mxu0 %v8528_v36  ;;  %6545 = vmatprep.subr.bf16.mxu1 %v9424_v1 }
0x14f4   :  { %3697 = vmatpush1.bf16.msra.mxu0 %v8530_v2  ;;  %6546 = vmatpush3.bf16.msra.mxu1 %v8573_v27 }
0x14f5   :  { %3698 = vmatprep.subr.bf16.mxu0 %v8534_v47  ;;  %6547 = vmatprep.subr.bf16.mxu1 %v9424_v1 }
0x14f8   :  { %3699 = vmatpush1.bf16.msra.mxu0 %v8536_v51  ;;  %6548 = vmatpush3.bf16.msra.mxu1 %v8576_v6 }
0x14f9   :  { %3700 = vmatprep.subr.bf16.mxu0 %v8540_v20  ;;  %6549 = vmatprep.subr.bf16.mxu1 %v9424_v1 }
0x14fc   :  { %3701 = vmatpush1.bf16.msra.mxu0 %v8542_v33  ;;  %6550 = vmatpush3.bf16.msra.mxu1 %v8580_v13 }
0x14fd   :  { %3702 = vmatprep.subr.bf16.mxu0 %v8546_v42  ;;  %6551 = vmatprep.subr.bf16.mxu1 %v9424_v1 }
0x1500   :  { %3703 = vmatpush1.bf16.msra.mxu0 %v8548_v25  ;;  %6552 = vmatpush3.bf16.msra.mxu1 %v8584_v9 }
0x1501   :  { %3704 = vmatprep.subr.bf16.mxu0 %v8552_v57  ;;  %6553 = vmatprep.subr.bf16.mxu1 %v9424_v1 }
0x1504   :  { %3705 = vmatpush1.bf16.msra.mxu0 %v8554_v24  ;;  %6554 = vmatpush3.bf16.msra.mxu1 %v8588_v31 }
0x1505   :  { %3706 = vmatprep.subr.bf16.mxu0 %v8558_v5  ;;  %6555 = vmatprep.subr.bf16.mxu1 %v9424_v1 }
0x1508   :  { %3707 = vmatpush1.bf16.msra.mxu0 %v8563_v37  ;;  %6556 = vmatpush3.bf16.msra.mxu1 %v8592_v41 }
0x1509   :  { %3798 = vmatprep.subr.bf16.mxu0 %v8516_v16  ;;  %6561 = vmatprep.subr.bf16.mxu1 %v9424_v1 }
0x15be   :  { %v3620_v58 = vpop.f32.mrb[128].mxu0  ;;  %v3661_v55 = vpop.f32.mrb[104].mxu1 }
0x15bf   :  { %v3667_v21 = vadd.f32 %v3620_v58, %v8625_v11  ;;  %v3622_v63 = vpop.f32.mrb[129].mxu0  ;;  %v6539_v0 = vpop.f32.mrb[105].mxu1 }
0x15c0   :  { %v3668_v4 = vadd.f32 %v3622_v63, %v8627_v48  ;;  %v3624_v7 = vpop.f32.mrb[130].mxu0  ;;  %v3664_v62 = vpop.f32.mrb[106].mxu1  ;;  %v7410_v0 = vld [vmem:[#allocation7 + $0x180] ss:$12 sps:$4 sm:$0xff]  }
0x15c1   :  { %v5644_v18 = vmul.f32 -1.442695, %v3667_v21  ;;  %v3625_v22 = vpop.f32.mrb[131].mxu0  ;;  %v6540_v8 = vpop.f32.mrb[107].mxu1  ;;  %v7413_v7 = vld [vmem:[#allocation7 + $0x1b0] ss:$12 sps:$4 sm:$0xff]  }
0x15c2   :  { %v5645_v29 = vmul.f32 -1.442695, %v3668_v4  ;;  %v7412_v4 = vld [vmem:[#allocation7 + $0x1b4] ss:$12 sps:$4 sm:$0xff]   ;;  %v7416_v62 = vld [vmem:[#allocation7 + $0x1e4] ss:$12 sps:$4 sm:$0xff]  }
0x15c3   :  { %7252 = vpow2.f32 %v5644_v18  ;;  %v7418_v18 = vld [vmem:[#allocation7 + $0x1fc] ss:$12 sps:$4 sm:$0xff]   ;;  %v7420_v22 = vld [vmem:[#allocation7 + $0x214] ss:$12 sps:$4 sm:$0xff]   ;;  %v7422_v8 = vld [vmem:[#allocation7 + $0x22c] ss:$12 sps:$4 sm:$0xff]  }
0x15c4   :  { %7254 = vpow2.f32 %v5645_v29  ;;  %v6982_v29 = vld [vmem:[#allocation5 + $0x184] ss:$12 sps:$4 sm:$0xff]  }
0x15cd   :  { %v7253_v12 = vpop.eup %7252 }
0x15ce   :  { %v3675_v43 = vadd.f32 1.0, %v7253_v12  ;;  %v7255_v34 = vpop.eup %7254  ;;  %v6983_v12 = vld [vmem:[#allocation5 + $0x188] ss:$12 sps:$4 sm:$0xff]  }
0x15cf   :  { %v3676_v30 = vadd.f32 1.0, %v7255_v34 }
0x15d0   :  { %7256 = vrcp.f32 %v3675_v43 }
0x15da   :  { %v7257_v26 = vpop.eup %7256 }
0x15db   :  { %v3681_v60 = vmul.f32 %v7257_v26, %v3661_v55 }
0x15dd   :  { %v3682_v11 = vadd.f32 %v3681_v60, %v8680_v50 }
0x15df   :  { %7258 = vtanh.f32 %v3682_v11 }
0x15e0   :  { %7260 = vrcp.f32 %v3676_v30 }
0x15e9   :  { %v7259_v48 = vpop.eup %7258 }
0x15ea   :  { %v3684_v19 = vsub.f32 %v8822_v61, %v7259_v48  ;;  %v7261_v39 = vpop.eup %7260 }
0x15ec   :  { %v3685_v52 = vmul.f32 %v7261_v39, %v3684_v19 }
0x15ee   :  { %v8865_v35 = vadd.f32 %v7259_v48, %v3685_v52 }
0x15f0   :  { %v3691_v54 = vpack.c.bf16 %v8865_v35, %v8865_v35 }
0x15f2   :  { %3725 = vmatmul.mubr.bf16.vlgmr.msra.gmra.mrb[132].mxu0 %v3691_v54  ;;  %6558 = vmatmul.mubr.bf16.vlgmr.msra.gmra.mrb[108].mxu1 %v3691_v54 }
0x15f3   :  { %3799 = vmatpush1.bf16.msra.mxu0 %v8518_v10  ;;  %6562 = vmatpush3.bf16.msra.mxu1 %v8556_v3 }
0x15f4   :  { %3800 = vmatprep.subr.bf16.mxu0 %v8522_v45  ;;  %6563 = vmatprep.subr.bf16.mxu1 %v9424_v1 }
0x15f5   :  { %3830 = vmatprep.mubr.bf16.mxu0 %v9425_v17  ;;  %6577 = vmatprep.mubr.msk.bf16.mxu1 %vm7492_vm2, %v9424_v1 }
0x15f7   :  { %3801 = vmatpush1.bf16.msra.mxu0 %v8524_v23  ;;  %6564 = vmatpush3.bf16.msra.mxu1 %v8565_v38 }
0x15f8   :  { %3802 = vmatprep.subr.bf16.mxu0 %v8528_v36  ;;  %6565 = vmatprep.subr.bf16.mxu1 %v9424_v1 }
0x15fb   :  { %3803 = vmatpush1.bf16.msra.mxu0 %v8530_v2  ;;  %6566 = vmatpush3.bf16.msra.mxu1 %v8573_v27 }
0x15fc   :  { %3804 = vmatprep.subr.bf16.mxu0 %v8534_v47  ;;  %6567 = vmatprep.subr.bf16.mxu1 %v9424_v1 }
0x15ff   :  { %3805 = vmatpush1.bf16.msra.mxu0 %v8536_v51  ;;  %6568 = vmatpush3.bf16.msra.mxu1 %v8576_v6 }
0x1600   :  { %3806 = vmatprep.subr.bf16.mxu0 %v8540_v20  ;;  %6569 = vmatprep.subr.bf16.mxu1 %v9424_v1 }
0x1603   :  { %3807 = vmatpush1.bf16.msra.mxu0 %v8542_v33  ;;  %6570 = vmatpush3.bf16.msra.mxu1 %v8580_v13 }
0x1604   :  { %3808 = vmatprep.subr.bf16.mxu0 %v8546_v42  ;;  %6571 = vmatprep.subr.bf16.mxu1 %v9424_v1 }
0x1607   :  { %3809 = vmatpush1.bf16.msra.mxu0 %v8548_v25  ;;  %6572 = vmatpush3.bf16.msra.mxu1 %v8584_v9 }
0x1608   :  { %3810 = vmatprep.subr.bf16.mxu0 %v8552_v57  ;;  %6573 = vmatprep.subr.bf16.mxu1 %v9424_v1 }
0x160b   :  { %3811 = vmatpush1.bf16.msra.mxu0 %v8554_v24  ;;  %6574 = vmatpush3.bf16.msra.mxu1 %v8588_v31 }
0x160c   :  { %3812 = vmatprep.subr.bf16.mxu0 %v8558_v5  ;;  %6575 = vmatprep.subr.bf16.mxu1 %v9424_v1 }
0x160f   :  { %3813 = vmatpush1.bf16.msra.mxu0 %v8563_v37  ;;  %6576 = vmatpush3.bf16.msra.mxu1 %v8592_v41 }
0x1610   :  { %3904 = vmatprep.subr.bf16.mxu0 %v8516_v16  ;;  %6581 = vmatprep.subr.bf16.mxu1 %v9424_v1 }
0x16c5   :  { %v3726_v10 = vpop.f32.mrb[132].mxu0  ;;  %v3767_v23 = vpop.f32.mrb[108].mxu1 }
0x16c6   :  { %v3773_v36 = vadd.f32 %v3726_v10, %v8629_v14  ;;  %v3728_v2 = vpop.f32.mrb[133].mxu0  ;;  %v6559_v47 = vpop.f32.mrb[109].mxu1 }
0x16c7   :  { %v3774_v51 = vadd.f32 %v3728_v2, %v8632_v49  ;;  %v3730_v20 = vpop.f32.mrb[134].mxu0  ;;  %v3770_v33 = vpop.f32.mrb[110].mxu1  ;;  %v9440_v2 = vld [vmem:[#allocation12_spill] sm:$0xff] }
0x16c8   :  { %v5646_v42 = vmul.f32 -1.442695, %v3773_v36  ;;  %v3731_v25 = vpop.f32.mrb[135].mxu0  ;;  %v6560_v57 = vpop.f32.mrb[111].mxu1 }
0x16c9   :  { %v5647_v24 = vmul.f32 -1.442695, %v3774_v51  ;;  %v6980_v25 = vld [vmem:[#allocation5 + $0x180] ss:$12 sps:$4 sm:$0xff]  }
0x16ca   :  { %7262 = vpow2.f32 %v5646_v42 }
0x16cb   :  { %7264 = vpow2.f32 %v5647_v24  ;;  %v6986_v24 = vld [vmem:[#allocation5 + $0x19c] ss:$12 sps:$4 sm:$0xff]  }
0x16d4   :  { %v7263_v5 = vpop.eup %7262 }
0x16d5   :  { %v3781_v37 = vadd.f32 1.0, %v7263_v5  ;;  %v7265_v16 = vpop.eup %7264  ;;  %v6987_v5 = vld [vmem:[#allocation5 + $0x1a0] ss:$12 sps:$4 sm:$0xff]  }
0x16d6   :  { %v3782_v53 = vadd.f32 1.0, %v7265_v16  ;;  %v6984_v16 = vld [vmem:[#allocation5 + $0x198] ss:$12 sps:$4 sm:$0xff]  }
0x16d7   :  { %7266 = vrcp.f32 %v3781_v37  ;;  %v4014_v37 = vpack.c.bf16 %v8736_v56, %v8693_v32  ;;  %v6992_v32 = vld [vmem:[#allocation5 + $0x1c8] ss:$12 sps:$4 sm:$0xff]   ;;  %v6998_v56 = vld [vmem:[#allocation5 + $0x1e4] ss:$12 sps:$4 sm:$0xff]  }
0x16e1   :  { %v7267_v50 = vpop.eup %7266 }
0x16e2   :  { %v3787_v59 = vmul.f32 %v7267_v50, %v3767_v23  ;;  %v6990_v50 = vld [vmem:[#allocation5 + $0x1b4] ss:$12 sps:$4 sm:$0xff]  }
0x16e4   :  { %v3788_v14 = vadd.f32 %v3787_v59, %v8688_v46  ;;  %v7411_v46 = vld [vmem:[#allocation7 + $0x198] ss:$12 sps:$4 sm:$0xff]  }
0x16e5   :  { %v6991_v59 = vld [vmem:[#allocation5 + $0x1b8] ss:$12 sps:$4 sm:$0xff]  }
0x16e6   :  { %7268 = vtanh.f32 %v3788_v14  ;;  %v6988_v14 = vld [vmem:[#allocation5 + $0x1b0] ss:$12 sps:$4 sm:$0xff]  }
0x16e7   :  { %7270 = vrcp.f32 %v3782_v53  ;;  %v6994_v53 = vld [vmem:[#allocation5 + $0x1cc] ss:$12 sps:$4 sm:$0xff]  }
0x16f0   :  { %v7269_v49 = vpop.eup %7268 }
0x16f1   :  { %v3790_v28 = vsub.f32 %v8865_v35, %v7269_v49  ;;  %v7271_v58 = vpop.eup %7270 }
0x16f3   :  { %v3791_v55 = vmul.f32 %v7271_v58, %v3790_v28  ;;  %v6999_v28 = vld [vmem:[#allocation5 + $0x1e8] ss:$12 sps:$4 sm:$0xff]   ;;  %v6996_v58 = vld [vmem:[#allocation5 + $0x1e0] ss:$12 sps:$4 sm:$0xff]  }
0x16f5   :  { %v8908_v21 = vadd.f32 %v7269_v49, %v3791_v55  ;;  %v6995_v49 = vld [vmem:[#allocation5 + $0x1d0] ss:$12 sps:$4 sm:$0xff]  }
0x16f6   :  { %v7002_v55 = vld [vmem:[#allocation5 + $0x1fc] ss:$12 sps:$4 sm:$0xff]  }
0x16f7   :  { %v3797_v63 = vpack.c.bf16 %v8908_v21, %v8908_v21 }
0x16f9   :  { %3831 = vmatmul.mubr.bf16.vlgmr.msra.gmra.mrb[136].mxu0 %v3797_v63  ;;  %6578 = vmatmul.mubr.bf16.vlgmr.msra.gmra.mrb[112].mxu1 %v3797_v63  ;;  %v7003_v63 = vld [vmem:[#allocation5 + $0x200] ss:$12 sps:$4 sm:$0xff]  }
0x16fa   :  { %3905 = vmatpush1.bf16.msra.mxu0 %v7410_v0  ;;  %6582 = vmatpush3.bf16.msra.mxu1 %v8556_v3  ;;  %v7415_v3 = vld [vmem:[#allocation7 + $0x1c8] ss:$12 sps:$4 sm:$0xff]   ;;  %v7000_v0 = vld [vmem:[#allocation5 + $0x1f8] ss:$12 sps:$4 sm:$0xff]  }
0x16fb   :  { %3906 = vmatprep.subr.bf16.mxu0 %v8522_v45  ;;  %6583 = vmatprep.subr.bf16.mxu1 %v9424_v1  ;;  %v7414_v45 = vld [vmem:[#allocation7 + $0x1cc] ss:$12 sps:$4 sm:$0xff]  }
0x16fc   :  { %3936 = vmatprep.mubr.bf16.mxu0 %v9425_v17  ;;  %6597 = vmatprep.mubr.msk.bf16.mxu1 %vm7492_vm2, %v9424_v1 }
0x16fe   :  { %3907 = vmatpush1.bf16.msra.mxu0 %v7411_v46  ;;  %6584 = vmatpush3.bf16.msra.mxu1 %v8565_v38  ;;  %v7417_v38 = vld [vmem:[#allocation7 + $0x1e0] ss:$12 sps:$4 sm:$0xff]  }
0x16ff   :  { %3908 = vmatprep.subr.bf16.mxu0 %v7412_v4  ;;  %6585 = vmatprep.subr.bf16.mxu1 %v9424_v1  ;;  %v7006_v46 = vld [vmem:[#allocation5 + $0x214] ss:$12 sps:$4 sm:$0xff]   ;;  %v7007_v4 = vld [vmem:[#allocation5 + $0x218] ss:$12 sps:$4 sm:$0xff]  }
0x1702   :  { %3909 = vmatpush1.bf16.msra.mxu0 %v7413_v7  ;;  %6586 = vmatpush3.bf16.msra.mxu1 %v8573_v27  ;;  %v7419_v27 = vld [vmem:[#allocation7 + $0x1f8] ss:$12 sps:$4 sm:$0xff]   ;;  %v7004_v7 = vld [vmem:[#allocation5 + $0x210] ss:$12 sps:$4 sm:$0xff]  }
0x1703   :  { %3910 = vmatprep.subr.bf16.mxu0 %v7414_v45  ;;  %6587 = vmatprep.subr.bf16.mxu1 %v9424_v1  ;;  %v7010_v45 = vld [vmem:[#allocation5 + $0x22c] ss:$12 sps:$4 sm:$0xff]  }
0x1706   :  { %3911 = vmatpush1.bf16.msra.mxu0 %v7415_v3  ;;  %6588 = vmatpush3.bf16.msra.mxu1 %v8576_v6  ;;  %v7421_v6 = vld [vmem:[#allocation7 + $0x210] ss:$12 sps:$4 sm:$0xff]  }
0x1707   :  { %3912 = vmatprep.subr.bf16.mxu0 %v7416_v62  ;;  %6589 = vmatprep.subr.bf16.mxu1 %v9424_v1  ;;  %v7011_v3 = vld [vmem:[#allocation5 + $0x230] ss:$12 sps:$4 sm:$0xff]   ;;  %v7008_v62 = vld [vmem:[#allocation5 + $0x228] ss:$12 sps:$4 sm:$0xff]  }
0x170a   :  { %3913 = vmatpush1.bf16.msra.mxu0 %v7417_v38  ;;  %6590 = vmatpush3.bf16.msra.mxu1 %v8580_v13  ;;  %v7423_v13 = vld [vmem:[#allocation7 + $0x228] ss:$12 sps:$4 sm:$0xff]   ;;  %v4015_v38 = vpack.c.bf16 %v8822_v61, %v8779_v44  ;;  %v8958_v61 = vld [vmem:[#allocation7 + $0x258] ss:$12 sps:$4 sm:$0xff]  }
0x170b   :  { %3914 = vmatprep.subr.bf16.mxu0 %v7418_v18  ;;  %6591 = vmatprep.subr.bf16.mxu1 %v9424_v1  ;;  %v4016_v18 = vpack.c.bf16 %v8908_v21, %v8865_v35  ;;  %v8956_v44 = vld [vmem:[#allocation7 + $0x25c] ss:$12 sps:$4 sm:$0xff]   ;;  %v8962_v35 = vld [vmem:[#allocation7 + $0x274] ss:$12 sps:$4 sm:$0xff]  }
0x170e   :  { %3915 = vmatpush1.bf16.msra.mxu0 %v7419_v27  ;;  %6592 = vmatpush3.bf16.msra.mxu1 %v8584_v9  ;;  %v8950_v27 = vld [vmem:[#allocation7 + $0x244] ss:$12 sps:$4 sm:$0xff]  }
0x170f   :  { %3916 = vmatprep.subr.bf16.mxu0 %v7420_v22  ;;  %6593 = vmatprep.subr.bf16.mxu1 %v9424_v1  ;;  %v8952_v22 = vld [vmem:[#allocation7 + $0x240] ss:$12 sps:$4 sm:$0xff]  }
0x1712   :  { %3917 = vmatpush1.bf16.msra.mxu0 %v7421_v6  ;;  %6594 = vmatpush3.bf16.msra.mxu1 %v8588_v31  ;;  %v8968_v6 = vld [vmem:[#allocation7 + $0x28c] ss:$12 sps:$4 sm:$0xff]  }
0x1713   :  { %3918 = vmatprep.subr.bf16.mxu0 %v7422_v8  ;;  %6595 = vmatprep.subr.bf16.mxu1 %v9424_v1  ;;  %v8970_v8 = vld [vmem:[#allocation7 + $0x288] ss:$12 sps:$4 sm:$0xff]  }
0x1716   :  { %3919 = vmatpush1.bf16.msra.mxu0 %v7423_v13  ;;  %6596 = vmatpush3.bf16.msra.mxu1 %v8592_v41  ;;  %v8974_v13 = vld [vmem:[#allocation7 + $0x2a4] ss:$12 sps:$4 sm:$0xff]  }
0x1717   :  { %4179 = vmatprep.subr.bf16.mxu0 %v6982_v29  ;;  %6601 = vmatprep.subr.bf16.mxu1 %v6983_v12  ;;  %v8976_v29 = vld [vmem:[#allocation7 + $0x2a0] ss:$12 sps:$4 sm:$0xff]  }
0x17cc   :  { %v3832_v9 = vpop.f32.mrb[136].mxu0  ;;  %v3873_v43 = vpop.f32.mrb[112].mxu1 }
0x17cd   :  { %v3879_v34 = vadd.f32 %v3832_v9, %v8674_v40  ;;  %v3834_v26 = vpop.f32.mrb[137].mxu0  ;;  %v6579_v60 = vpop.f32.mrb[113].mxu1  ;;  %v8982_v9 = vld [vmem:[#allocation7 + $0x2b8] ss:$12 sps:$4 sm:$0xff]  }
0x17ce   :  { %v3880_v31 = vadd.f32 %v3834_v26, %v8678_v15  ;;  %v3836_v11 = vpop.f32.mrb[138].mxu0  ;;  %v3876_v30 = vpop.f32.mrb[114].mxu1  ;;  %v8990_v26 = vld [vmem:[#allocation7 + $0x248] ss:$12 sps:$4 sm:$0xff]   ;;  %v8992_v60 = vld [vmem:[#allocation7 + $0x2ec] ss:$12 sps:$4 sm:$0xff]  }
0x17cf   :  { %v5648_v48 = vmul.f32 -1.442695, %v3879_v34  ;;  %v3837_v19 = vpop.f32.mrb[139].mxu0  ;;  %v6580_v39 = vpop.f32.mrb[115].mxu1  ;;  %v8988_v34 = vld [vmem:[#allocation7 + $0x2d0] ss:$12 sps:$4 sm:$0xff]  }
0x17d0   :  { %v5649_v52 = vmul.f32 -1.442695, %v3880_v31  ;;  %v8997_v31 = vld [vmem:[#allocation7 + $0x2e8] ss:$12 sps:$4 sm:$0xff]   ;;  %v8999_v11 = vld [vmem:[#allocation7 + $0x260] ss:$12 sps:$4 sm:$0xff]  }
0x17d1   :  { %7272 = vpow2.f32 %v5648_v48  ;;  %v9007_v30 = vld [vmem:[#allocation7 + $0x278] ss:$12 sps:$4 sm:$0xff]   ;;  %v9010_v48 = vld [vmem:[#allocation7 + $0x290] ss:$12 sps:$4 sm:$0xff]   ;;  %v9014_v19 = vld [vmem:[#allocation7 + $0x2a8] ss:$12 sps:$4 sm:$0xff]  }
0x17d2   :  { %7274 = vpow2.f32 %v5649_v52  ;;  %v9018_v39 = vld [vmem:[#allocation7 + $0x2c0] ss:$12 sps:$4 sm:$0xff]   ;;  %v9022_v52 = vld [vmem:[#allocation7 + $0x2d8] ss:$12 sps:$4 sm:$0xff]  }
0x17db   :  { %v7273_v41 = vpop.eup %7272 }
0x17dc   :  { %v3887_v54 = vadd.f32 1.0, %v7273_v41  ;;  %v7275_v10 = vpop.eup %7274  ;;  %v9026_v41 = vld [vmem:[#allocation7 + $0x2f0] ss:$12 sps:$4 sm:$0xff]  }
0x17dd   :  { %v3888_v47 = vadd.f32 1.0, %v7275_v10 }
0x17de   :  { %7276 = vrcp.f32 %v3887_v54 }
0x17e8   :  { %v7277_v23 = vpop.eup %7276 }
0x17e9   :  { %v3893_v36 = vmul.f32 %v7277_v23, %v3873_v43  ;;  %v8986_v43 = vld [vmem:[#allocation7 + $0x2d4] ss:$12 sps:$4 sm:$0xff]  }
0x17ea   :  { %v9441_v23 = vld [vmem:[#allocation11_spill] sm:$0xff] }
0x17eb   :  { %v3894_v40 = vadd.f32 %v9440_v2, %v3893_v36 }
0x17ed   :  { %7278 = vtanh.f32 %v3894_v40 }
0x17ee   :  { %7280 = vrcp.f32 %v3888_v47  ;;  %v9442_v47 = vld [vmem:[#allocation13_spill] sm:$0xff] }
0x17f7   :  { %v7279_v15 = vpop.eup %7278 }
0x17f8   :  { %v3896_v51 = vsub.f32 %v8908_v21, %v7279_v15  ;;  %v7281_v20 = vpop.eup %7280  ;;  %v8964_v21 = vld [vmem:[#allocation7 + $0x270] ss:$12 sps:$4 sm:$0xff]  }
0x17fa   :  { %v3897_v33 = vmul.f32 %v7281_v20, %v3896_v51 }
0x17fc   :  { %v8935_v42 = vadd.f32 %v7279_v15, %v3897_v33 }
0x17fe   :  { %v3903_v57 = vpack.c.bf16 %v8935_v42, %v8935_v42 }
0x1800   :  { %3937 = vmatmul.mubr.bf16.vlgmr.msra.gmra.mrb[140].mxu0 %v3903_v57  ;;  %6598 = vmatmul.mubr.bf16.vlgmr.msra.gmra.mrb[116].mxu1 %v3903_v57 }
0x1801   :  { %4180 = vmatpush1.bf16.msra.mxu0 %v6980_v25  ;;  %6602 = vmatpush3.bf16.msra.mxu1 %v6983_v12  ;;  %v8980_v12 = vld [vmem:[#allocation7 + $0x2bc] ss:$12 sps:$4 sm:$0xff]  }
0x1802   :  { %6617 = vmatprep.mubr.bf16.mxu1 %v4014_v37  ;;  %4181 = vmatprep.subr.bf16.mxu0 %v6986_v24 }
0x1803   :  { %6603 = vmatprep.subr.bf16.mxu1 %v6987_v5  ;;  %4211 = vmatprep.mubr.bf16.mxu0 %v9425_v17 }
0x1805   :  { %4182 = vmatpush1.bf16.msra.mxu0 %v6984_v16  ;;  %6604 = vmatpush3.bf16.msra.mxu1 %v6987_v5 }
0x1806   :  { %4183 = vmatprep.subr.bf16.mxu0 %v6990_v50  ;;  %6605 = vmatprep.subr.bf16.mxu1 %v6991_v59 }
0x1809   :  { %4184 = vmatpush1.bf16.msra.mxu0 %v6988_v14  ;;  %6606 = vmatpush3.bf16.msra.mxu1 %v6991_v59  ;;  %v9443_v14 = vld [vmem:[#allocation14_spill] sm:$0xff] }
0x180a   :  { %4185 = vmatprep.subr.bf16.mxu0 %v6994_v53  ;;  %6607 = vmatprep.subr.bf16.mxu1 %v6995_v49 }
0x180d   :  { %4186 = vmatpush1.bf16.msra.mxu0 %v6992_v32  ;;  %6608 = vmatpush3.bf16.msra.mxu1 %v6995_v49 }
0x180e   :  { %4187 = vmatprep.subr.bf16.mxu0 %v6998_v56  ;;  %6609 = vmatprep.subr.bf16.mxu1 %v6999_v28 }
0x1811   :  { %4188 = vmatpush1.bf16.msra.mxu0 %v6996_v58  ;;  %6610 = vmatpush3.bf16.msra.mxu1 %v6999_v28 }
0x1812   :  { %4189 = vmatprep.subr.bf16.mxu0 %v7002_v55  ;;  %6611 = vmatprep.subr.bf16.mxu1 %v7003_v63 }
0x1815   :  { %4190 = vmatpush1.bf16.msra.mxu0 %v7000_v0  ;;  %6612 = vmatpush3.bf16.msra.mxu1 %v7003_v63 }
0x1816   :  { %4191 = vmatprep.subr.bf16.mxu0 %v7006_v46  ;;  %6613 = vmatprep.subr.bf16.mxu1 %v7007_v4 }
0x1819   :  { %4192 = vmatpush1.bf16.msra.mxu0 %v7004_v7  ;;  %6614 = vmatpush3.bf16.msra.mxu1 %v7007_v4 }
0x181a   :  { %4193 = vmatprep.subr.bf16.mxu0 %v7010_v45  ;;  %6615 = vmatprep.subr.bf16.mxu1 %v7011_v3 }
0x181d   :  { %4194 = vmatpush1.bf16.msra.mxu0 %v7008_v62  ;;  %6616 = vmatpush3.bf16.msra.mxu1 %v7011_v3 }
0x181e   :  { %6625 = vmatprep.subr.bf16.mxu1 %v9424_v1  ;;  %4505 = vmatprep.subr.bf16.mxu0 %v8950_v27 }
0x1820   :  { %4212 = vmatmul.mubr.bf16.vlgmr.msra.gmra.mrb[144].mxu0 %v4014_v37  ;;  %6618 = vmatmul.mubr.bf16.vlgmr.msra.gmra.mrb[120].mxu1 %v4015_v38 }
0x1821   :  { %6621 = vmatprep.mubr.bf16.mxu1 %v4016_v18  ;;  %4221 = vmatprep.mubr.bf16.mxu0 %v9425_v17 }
0x1822   :  { %4506 = vmatpush1.bf16.msra.mxu0 %v8952_v22  ;;  %6626 = vmatpush3.bf16.msra.mxu1 %v8990_v26 }
0x1823   :  { %4507 = vmatprep.subr.bf16.mxu0 %v8956_v44  ;;  %6627 = vmatprep.subr.bf16.mxu1 %v9424_v1 }
0x1826   :  { %4508 = vmatpush1.bf16.msra.mxu0 %v8958_v61  ;;  %6628 = vmatpush3.bf16.msra.mxu1 %v8999_v11 }
0x1827   :  { %4509 = vmatprep.subr.bf16.mxu0 %v8962_v35  ;;  %6629 = vmatprep.subr.bf16.mxu1 %v9424_v1 }
0x1828   :  { %4222 = vmatmul.mubr.bf16.gmra.mrb[148].mxu0 %v4015_v38 }
0x1829   :  { %4231 = vmatprep.mubr.bf16.mxu0 %v9425_v17 }
0x182a   :  { %4510 = vmatpush1.bf16.msra.mxu0 %v8964_v21  ;;  %6630 = vmatpush3.bf16.msra.mxu1 %v9007_v30 }
0x182b   :  { %4511 = vmatprep.subr.bf16.mxu0 %v8968_v6  ;;  %6631 = vmatprep.subr.bf16.mxu1 %v9424_v1 }
0x182e   :  { %4512 = vmatpush1.bf16.msra.mxu0 %v8970_v8  ;;  %6632 = vmatpush3.bf16.msra.mxu1 %v9010_v48 }
0x182f   :  { %4513 = vmatprep.subr.bf16.mxu0 %v8974_v13  ;;  %6633 = vmatprep.subr.bf16.mxu1 %v9424_v1 }
0x1830   :  { %4232 = vmatmul.mubr.bf16.gmra.mrb[152].mxu0 %v4016_v18 }
0x1831   :  { %4241 = vmatprep.mubr.bf16.mxu0 %v9425_v17 }
0x1832   :  { %4514 = vmatpush1.bf16.msra.mxu0 %v8976_v29  ;;  %6634 = vmatpush3.bf16.msra.mxu1 %v9014_v19 }
0x1833   :  { %4515 = vmatprep.subr.bf16.mxu0 %v8980_v12  ;;  %6635 = vmatprep.subr.bf16.mxu1 %v9424_v1 }
0x1836   :  { %4516 = vmatpush1.bf16.msra.mxu0 %v8982_v9  ;;  %6636 = vmatpush3.bf16.msra.mxu1 %v9018_v39 }
0x1837   :  { %4517 = vmatprep.subr.bf16.mxu0 %v8986_v43  ;;  %6637 = vmatprep.subr.bf16.mxu1 %v9424_v1 }
0x183a   :  { %4518 = vmatpush1.bf16.msra.mxu0 %v8988_v34  ;;  %6638 = vmatpush3.bf16.msra.mxu1 %v9022_v52 }
0x183b   :  { %4519 = vmatprep.subr.bf16.mxu0 %v8992_v60  ;;  %6639 = vmatprep.subr.bf16.mxu1 %v9424_v1 }
0x183e   :  { %4520 = vmatpush1.bf16.msra.mxu0 %v8997_v31  ;;  %6640 = vmatpush3.bf16.msra.mxu1 %v9026_v41 }
0x183f   :  { %4610 = vmatprep.subr.bf16.mxu0 %v8950_v27  ;;  %6645 = vmatprep.subr.bf16.mxu1 %v9424_v1 }
0x18d3   :  { %v3938_v54 = vpop.f32.mrb[140].mxu0  ;;  %v3979_v10 = vpop.f32.mrb[116].mxu1 }
0x18d4   :  { %v3985_v36 = vadd.f32 %v3938_v54, %v9441_v23  ;;  %v3940_v2 = vpop.f32.mrb[141].mxu0  ;;  %v6599_v40 = vpop.f32.mrb[117].mxu1 }
0x18d5   :  { %v3986_v15 = vadd.f32 %v3940_v2, %v9442_v47  ;;  %v3942_v51 = vpop.f32.mrb[142].mxu0  ;;  %v3982_v20 = vpop.f32.mrb[118].mxu1 }
0x18d6   :  { %v5650_v33 = vmul.f32 -1.442695, %v3985_v36  ;;  %v3943_v25 = vpop.f32.mrb[143].mxu0  ;;  %v6600_v57 = vpop.f32.mrb[119].mxu1 }
0x18d7   :  { %v5651_v24 = vmul.f32 -1.442695, %v3986_v15 }
0x18d8   :  { %7282 = vpow2.f32 %v5650_v33 }
0x18d9   :  { %7284 = vpow2.f32 %v5651_v24 }
0x18e2   :  { %v7283_v5 = vpop.eup %7282 }
0x18e3   :  { %v3993_v37 = vadd.f32 1.0, %v7283_v5  ;;  %v7285_v16 = vpop.eup %7284 }
0x18e4   :  { %v3994_v49 = vadd.f32 1.0, %v7285_v16 }
0x18e5   :  { %7286 = vrcp.f32 %v3993_v37 }
0x18ef   :  { %v7287_v50 = vpop.eup %7286 }
0x18f0   :  { %v3999_v59 = vmul.f32 %v7287_v50, %v3979_v10 }
0x18f2   :  { %v4000_v53 = vadd.f32 %v9443_v14, %v3999_v59 }
0x18f3   :  { %v9034_v32 = vpop.f32.mrb[144].mxu0  ;;  %v9036_v56 = vpop.f32.mrb[120].mxu1 }
0x18f4   :  { %7288 = vtanh.f32 %v4000_v53  ;;  %v9038_v28 = vpop.f32.mrb[145].mxu0  ;;  %v9040_v58 = vpop.f32.mrb[121].mxu1 }
0x18f5   :  { %v9042_v55 = vpop.f32.mrb[146].mxu0  ;;  %v9044_v63 = vpop.f32.mrb[122].mxu1  ;;  %7290 = vrcp.f32 %v3994_v49 }
0x18f6   :  { %v9046_v0 = vpop.f32.mrb[147].mxu0  ;;  %v9048_v46 = vpop.f32.mrb[123].mxu1 }
0x18fb   :  { %v9050_v4 = vpop.f32.mrb[148].mxu0 }
0x18fc   :  { %v9052_v7 = vpop.f32.mrb[149].mxu0 }
0x18fd   :  { %v9054_v45 = vpop.f32.mrb[150].mxu0 }
0x18fe   :  { %v7289_v3 = vpop.eup %7288  ;;  %v9056_v62 = vpop.f32.mrb[151].mxu0 }
0x18ff   :  { %v4002_v38 = vsub.f32 %v8935_v42, %v7289_v3  ;;  %v7291_v18 = vpop.eup %7290 }
0x1901   :  { %v4003_v54 = vmul.f32 %v7291_v18, %v4002_v38 }
0x1903   :  { %v9059_v10 = vpop.f32.mrb[152].mxu0  ;;  %v4004_v23 = vadd.f32 %v7289_v3, %v4003_v54 }
0x1904   :  { %v9061_v36 = vpop.f32.mrb[153].mxu0 }
0x1905   :  { %v9063_v2 = vpop.f32.mrb[154].mxu0  ;;  %v4017_v40 = vpack.c.bf16 %v4004_v23, %v8935_v42 }
0x1906   :  { %v9066_v47 = vpop.f32.mrb[155].mxu0 }
0x1907   :  { %4242 = vmatmul.mubr.bf16.gmra.mrb[156].mxu0 %v4017_v40  ;;  %6622 = vmatmul.mubr.bf16.gmra.mrb[124].mxu1 %v4017_v40 }
0x1908   :  { %4537 = vmatprep.mubr.bf16.mxu0 %v9425_v17  ;;  %6641 = vmatprep.mubr.msk.bf16.mxu1 %vm7492_vm2, %v9424_v1 }
0x190f   :  { %4538 = vmatmul.mubr.bf16.vlgmr.msra.gmra.mrb[160].mxu0 %v9425_v17  ;;  %6642 = vmatmul.mubr.bf16.vlgmr.msra.gmra.mrb[128].mxu1 %v9425_v17 }
0x1910   :  { %4611 = vmatpush1.bf16.msra.mxu0 %v8952_v22  ;;  %6646 = vmatpush3.bf16.msra.mxu1 %v8990_v26 }
0x1911   :  { %4612 = vmatprep.subr.bf16.mxu0 %v8956_v44  ;;  %6647 = vmatprep.subr.bf16.mxu1 %v9424_v1 }
0x1912   :  { %4642 = vmatprep.mubr.bf16.mxu0 %v9425_v17  ;;  %6661 = vmatprep.mubr.msk.bf16.mxu1 %vm7492_vm2, %v9424_v1 }
0x1914   :  { %4613 = vmatpush1.bf16.msra.mxu0 %v8958_v61  ;;  %6648 = vmatpush3.bf16.msra.mxu1 %v8999_v11 }
0x1915   :  { %4614 = vmatprep.subr.bf16.mxu0 %v8962_v35  ;;  %6649 = vmatprep.subr.bf16.mxu1 %v9424_v1 }
0x1918   :  { %4615 = vmatpush1.bf16.msra.mxu0 %v8964_v21  ;;  %6650 = vmatpush3.bf16.msra.mxu1 %v9007_v30 }
0x1919   :  { %4616 = vmatprep.subr.bf16.mxu0 %v8968_v6  ;;  %6651 = vmatprep.subr.bf16.mxu1 %v9424_v1 }
0x191c   :  { %4617 = vmatpush1.bf16.msra.mxu0 %v8970_v8  ;;  %6652 = vmatpush3.bf16.msra.mxu1 %v9010_v48 }
0x191d   :  { %4618 = vmatprep.subr.bf16.mxu0 %v8974_v13  ;;  %6653 = vmatprep.subr.bf16.mxu1 %v9424_v1 }
0x1920   :  { %4619 = vmatpush1.bf16.msra.mxu0 %v8976_v29  ;;  %6654 = vmatpush3.bf16.msra.mxu1 %v9014_v19 }
0x1921   :  { %4620 = vmatprep.subr.bf16.mxu0 %v8980_v12  ;;  %6655 = vmatprep.subr.bf16.mxu1 %v9424_v1 }
0x1924   :  { %4621 = vmatpush1.bf16.msra.mxu0 %v8982_v9  ;;  %6656 = vmatpush3.bf16.msra.mxu1 %v9018_v39 }
0x1925   :  { %4622 = vmatprep.subr.bf16.mxu0 %v8986_v43  ;;  %6657 = vmatprep.subr.bf16.mxu1 %v9424_v1 }
0x1928   :  { %4623 = vmatpush1.bf16.msra.mxu0 %v8988_v34  ;;  %6658 = vmatpush3.bf16.msra.mxu1 %v9022_v52 }
0x1929   :  { %4624 = vmatprep.subr.bf16.mxu0 %v8992_v60  ;;  %6659 = vmatprep.subr.bf16.mxu1 %v9424_v1 }
0x192c   :  { %4625 = vmatpush1.bf16.msra.mxu0 %v8997_v31  ;;  %6660 = vmatpush3.bf16.msra.mxu1 %v9026_v41 }
0x192d   :  { %4715 = vmatprep.subr.bf16.mxu0 %v8950_v27  ;;  %6665 = vmatprep.subr.bf16.mxu1 %v9424_v1 }
0x19da   :  { %v9108_v42 = vpop.f32.mrb[156].mxu0  ;;  %v9110_v15 = vpop.f32.mrb[124].mxu1 }
0x19db   :  { %9444 = vst [vmem:[#allocation12_spill] sm:$0xff] %v9110_v15  ;;  %v9112_v51 = vpop.f32.mrb[157].mxu0  ;;  %v9114_v20 = vpop.f32.mrb[125].mxu1 }
0x19dc   :  { %v9116_v33 = vpop.f32.mrb[158].mxu0  ;;  %v9118_v25 = vpop.f32.mrb[126].mxu1 }
0x19dd   :  { %9445 = vst [vmem:[#allocation11_spill] sm:$0xff] %v9116_v33  ;;  %9446 = vst [vmem:[#allocation13_spill] sm:$0xff] %v9118_v25  ;;  %v9120_v57 = vpop.f32.mrb[159].mxu0  ;;  %v9122_v24 = vpop.f32.mrb[127].mxu1 }
0x19de   :  { %9447 = vst [vmem:[#allocation14_spill] sm:$0xff] %v9120_v57 }
0x19e2   :  { %v4539_v5 = vpop.f32.mrb[160].mxu0  ;;  %v4580_v37 = vpop.f32.mrb[128].mxu1 }
0x19e3   :  { %v4586_v16 = vadd.f32 %v4539_v5, %v9034_v32  ;;  %v4541_v50 = vpop.f32.mrb[161].mxu0  ;;  %v6643_v59 = vpop.f32.mrb[129].mxu1 }
0x19e4   :  { %v4587_v14 = vadd.f32 %v4541_v50, %v9038_v28  ;;  %v4543_v53 = vpop.f32.mrb[162].mxu0  ;;  %v4583_v49 = vpop.f32.mrb[130].mxu1 }
0x19e5   :  { %v5700_v3 = vmul.f32 -1.442695, %v4586_v16  ;;  %v4544_v38 = vpop.f32.mrb[163].mxu0  ;;  %v6644_v18 = vpop.f32.mrb[131].mxu1 }
0x19e6   :  { %v5701_v54 = vmul.f32 -1.442695, %v4587_v14 }
0x19e7   :  { %7292 = vpow2.f32 %v5700_v3 }
0x19e8   :  { %7294 = vpow2.f32 %v5701_v54 }
0x19f1   :  { %v7293_v23 = vpop.eup %7292 }
0x19f2   :  { %v4594_v40 = vadd.f32 1.0, %v7293_v23  ;;  %v7295_v25 = vpop.eup %7294 }
0x19f3   :  { %v4595_v15 = vadd.f32 1.0, %v7295_v25 }
0x19f4   :  { %7296 = vrcp.f32 %v4594_v40 }
0x19fe   :  { %v7297_v57 = vpop.eup %7296 }
0x19ff   :  { %v4600_v33 = vmul.f32 %v7297_v57, %v4580_v37 }
0x1a01   :  { %v4601_v32 = vadd.f32 %v4600_v33, %v9040_v58 }
0x1a03   :  { %7298 = vtanh.f32 %v4601_v32 }
0x1a04   :  { %7300 = vrcp.f32 %v4595_v15 }
0x1a0d   :  { %v7299_v28 = vpop.eup %7298 }
0x1a0e   :  { %v4603_v5 = vsub.f32 0.0, %v7299_v28  ;;  %v7301_v50 = vpop.eup %7300 }
0x1a10   :  { %v4604_v16 = vmul.f32 %v7301_v50, %v4603_v5 }
0x1a12   :  { %v9127_v59 = vadd.f32 %v7299_v28, %v4604_v16 }
0x1a14   :  { %v4609_v14 = vpack.c.bf16 %v9127_v59, %v9127_v59 }
0x1a16   :  { %4643 = vmatmul.mubr.bf16.vlgmr.msra.gmra.mrb[164].mxu0 %v4609_v14  ;;  %6662 = vmatmul.mubr.bf16.vlgmr.msra.gmra.mrb[132].mxu1 %v4609_v14 }
0x1a17   :  { %4716 = vmatpush1.bf16.msra.mxu0 %v8952_v22  ;;  %6666 = vmatpush3.bf16.msra.mxu1 %v8990_v26 }
0x1a18   :  { %4717 = vmatprep.subr.bf16.mxu0 %v8956_v44  ;;  %6667 = vmatprep.subr.bf16.mxu1 %v9424_v1 }
0x1a19   :  { %4747 = vmatprep.mubr.bf16.mxu0 %v9425_v17  ;;  %6681 = vmatprep.mubr.msk.bf16.mxu1 %vm7492_vm2, %v9424_v1 }
0x1a1b   :  { %4718 = vmatpush1.bf16.msra.mxu0 %v8958_v61  ;;  %6668 = vmatpush3.bf16.msra.mxu1 %v8999_v11 }
0x1a1c   :  { %4719 = vmatprep.subr.bf16.mxu0 %v8962_v35  ;;  %6669 = vmatprep.subr.bf16.mxu1 %v9424_v1 }
0x1a1f   :  { %4720 = vmatpush1.bf16.msra.mxu0 %v8964_v21  ;;  %6670 = vmatpush3.bf16.msra.mxu1 %v9007_v30 }
0x1a20   :  { %4721 = vmatprep.subr.bf16.mxu0 %v8968_v6  ;;  %6671 = vmatprep.subr.bf16.mxu1 %v9424_v1 }
0x1a23   :  { %4722 = vmatpush1.bf16.msra.mxu0 %v8970_v8  ;;  %6672 = vmatpush3.bf16.msra.mxu1 %v9010_v48 }
0x1a24   :  { %4723 = vmatprep.subr.bf16.mxu0 %v8974_v13  ;;  %6673 = vmatprep.subr.bf16.mxu1 %v9424_v1 }
0x1a27   :  { %4724 = vmatpush1.bf16.msra.mxu0 %v8976_v29  ;;  %6674 = vmatpush3.bf16.msra.mxu1 %v9014_v19 }
0x1a28   :  { %4725 = vmatprep.subr.bf16.mxu0 %v8980_v12  ;;  %6675 = vmatprep.subr.bf16.mxu1 %v9424_v1 }
0x1a2b   :  { %4726 = vmatpush1.bf16.msra.mxu0 %v8982_v9  ;;  %6676 = vmatpush3.bf16.msra.mxu1 %v9018_v39 }
0x1a2c   :  { %4727 = vmatprep.subr.bf16.mxu0 %v8986_v43  ;;  %6677 = vmatprep.subr.bf16.mxu1 %v9424_v1 }
0x1a2f   :  { %4728 = vmatpush1.bf16.msra.mxu0 %v8988_v34  ;;  %6678 = vmatpush3.bf16.msra.mxu1 %v9022_v52 }
0x1a30   :  { %4729 = vmatprep.subr.bf16.mxu0 %v8992_v60  ;;  %6679 = vmatprep.subr.bf16.mxu1 %v9424_v1 }
0x1a33   :  { %4730 = vmatpush1.bf16.msra.mxu0 %v8997_v31  ;;  %6680 = vmatpush3.bf16.msra.mxu1 %v9026_v41 }
0x1a34   :  { %4820 = vmatprep.subr.bf16.mxu0 %v8950_v27  ;;  %6685 = vmatprep.subr.bf16.mxu1 %v9424_v1 }
0x1ae9   :  { %v4644_v58 = vpop.f32.mrb[164].mxu0  ;;  %v4685_v15 = vpop.f32.mrb[132].mxu1 }
0x1aea   :  { %v4691_v33 = vadd.f32 %v4644_v58, %v9042_v55  ;;  %v4646_v25 = vpop.f32.mrb[165].mxu0  ;;  %v6663_v57 = vpop.f32.mrb[133].mxu1 }
0x1aeb   :  { %v4692_v37 = vadd.f32 %v4646_v25, %v9046_v0  ;;  %v4648_v53 = vpop.f32.mrb[166].mxu0  ;;  %v4688_v49 = vpop.f32.mrb[134].mxu1 }
0x1aec   :  { %v5702_v3 = vmul.f32 -1.442695, %v4691_v33  ;;  %v4649_v38 = vpop.f32.mrb[167].mxu0  ;;  %v6664_v18 = vpop.f32.mrb[135].mxu1 }
0x1aed   :  { %v5703_v54 = vmul.f32 -1.442695, %v4692_v37 }
0x1aee   :  { %7302 = vpow2.f32 %v5702_v3 }
0x1aef   :  { %7304 = vpow2.f32 %v5703_v54 }
0x1af8   :  { %v7303_v23 = vpop.eup %7302 }
0x1af9   :  { %v4699_v40 = vadd.f32 1.0, %v7303_v23  ;;  %v7305_v32 = vpop.eup %7304 }
0x1afa   :  { %v4700_v50 = vadd.f32 1.0, %v7305_v32 }
0x1afb   :  { %7306 = vrcp.f32 %v4699_v40 }
0x1b05   :  { %v7307_v28 = vpop.eup %7306 }
0x1b06   :  { %v4705_v5 = vmul.f32 %v7307_v28, %v4685_v15 }
0x1b08   :  { %v4706_v55 = vadd.f32 %v4705_v5, %v9048_v46 }
0x1b0a   :  { %7308 = vtanh.f32 %v4706_v55 }
0x1b0b   :  { %7310 = vrcp.f32 %v4700_v50 }
0x1b14   :  { %v7309_v0 = vpop.eup %7308 }
0x1b15   :  { %v4708_v16 = vsub.f32 %v9127_v59, %v7309_v0  ;;  %v7311_v14 = vpop.eup %7310 }
0x1b17   :  { %v4709_v58 = vmul.f32 %v7311_v14, %v4708_v16 }
0x1b19   :  { %v9170_v33 = vadd.f32 %v7309_v0, %v4709_v58 }
0x1b1b   :  { %v4714_v25 = vpack.c.bf16 %v9170_v33, %v9170_v33 }
0x1b1d   :  { %4748 = vmatmul.mubr.bf16.vlgmr.msra.gmra.mrb[168].mxu0 %v4714_v25  ;;  %6682 = vmatmul.mubr.bf16.vlgmr.msra.gmra.mrb[136].mxu1 %v4714_v25 }
0x1b1e   :  { %4821 = vmatpush1.bf16.msra.mxu0 %v8952_v22  ;;  %6686 = vmatpush3.bf16.msra.mxu1 %v8990_v26 }
0x1b1f   :  { %4822 = vmatprep.subr.bf16.mxu0 %v8956_v44  ;;  %6687 = vmatprep.subr.bf16.mxu1 %v9424_v1 }
0x1b20   :  { %4852 = vmatprep.mubr.bf16.mxu0 %v9425_v17  ;;  %6701 = vmatprep.mubr.msk.bf16.mxu1 %vm7492_vm2, %v9424_v1 }
0x1b22   :  { %4823 = vmatpush1.bf16.msra.mxu0 %v8958_v61  ;;  %6688 = vmatpush3.bf16.msra.mxu1 %v8999_v11 }
0x1b23   :  { %4824 = vmatprep.subr.bf16.mxu0 %v8962_v35  ;;  %6689 = vmatprep.subr.bf16.mxu1 %v9424_v1 }
0x1b26   :  { %4825 = vmatpush1.bf16.msra.mxu0 %v8964_v21  ;;  %6690 = vmatpush3.bf16.msra.mxu1 %v9007_v30 }
0x1b27   :  { %4826 = vmatprep.subr.bf16.mxu0 %v8968_v6  ;;  %6691 = vmatprep.subr.bf16.mxu1 %v9424_v1 }
0x1b2a   :  { %4827 = vmatpush1.bf16.msra.mxu0 %v8970_v8  ;;  %6692 = vmatpush3.bf16.msra.mxu1 %v9010_v48 }
0x1b2b   :  { %4828 = vmatprep.subr.bf16.mxu0 %v8974_v13  ;;  %6693 = vmatprep.subr.bf16.mxu1 %v9424_v1 }
0x1b2e   :  { %4829 = vmatpush1.bf16.msra.mxu0 %v8976_v29  ;;  %6694 = vmatpush3.bf16.msra.mxu1 %v9014_v19 }
0x1b2f   :  { %4830 = vmatprep.subr.bf16.mxu0 %v8980_v12  ;;  %6695 = vmatprep.subr.bf16.mxu1 %v9424_v1 }
0x1b32   :  { %4831 = vmatpush1.bf16.msra.mxu0 %v8982_v9  ;;  %6696 = vmatpush3.bf16.msra.mxu1 %v9018_v39 }
0x1b33   :  { %4832 = vmatprep.subr.bf16.mxu0 %v8986_v43  ;;  %6697 = vmatprep.subr.bf16.mxu1 %v9424_v1 }
0x1b36   :  { %4833 = vmatpush1.bf16.msra.mxu0 %v8988_v34  ;;  %6698 = vmatpush3.bf16.msra.mxu1 %v9022_v52 }
0x1b37   :  { %4834 = vmatprep.subr.bf16.mxu0 %v8992_v60  ;;  %6699 = vmatprep.subr.bf16.mxu1 %v9424_v1 }
0x1b3a   :  { %4835 = vmatpush1.bf16.msra.mxu0 %v8997_v31  ;;  %6700 = vmatpush3.bf16.msra.mxu1 %v9026_v41 }
0x1b3b   :  { %4925 = vmatprep.subr.bf16.mxu0 %v8950_v27  ;;  %6705 = vmatprep.subr.bf16.mxu1 %v9424_v1 }
0x1bf0   :  { %v4749_v46 = vpop.f32.mrb[168].mxu0  ;;  %v4790_v59 = vpop.f32.mrb[136].mxu1 }
0x1bf1   :  { %v4796_v15 = vadd.f32 %v4749_v46, %v9050_v4  ;;  %v4751_v57 = vpop.f32.mrb[169].mxu0  ;;  %v6683_v37 = vpop.f32.mrb[137].mxu1 }
0x1bf2   :  { %v4797_v53 = vadd.f32 %v4751_v57, %v9052_v7  ;;  %v4753_v49 = vpop.f32.mrb[170].mxu0  ;;  %v4793_v3 = vpop.f32.mrb[138].mxu1 }
0x1bf3   :  { %v5704_v38 = vmul.f32 -1.442695, %v4796_v15  ;;  %v4754_v18 = vpop.f32.mrb[171].mxu0  ;;  %v6684_v54 = vpop.f32.mrb[139].mxu1 }
0x1bf4   :  { %v5705_v23 = vmul.f32 -1.442695, %v4797_v53 }
0x1bf5   :  { %7312 = vpow2.f32 %v5704_v38 }
0x1bf6   :  { %7314 = vpow2.f32 %v5705_v23 }
0x1bff   :  { %v7313_v40 = vpop.eup %7312 }
0x1c00   :  { %v4804_v32 = vadd.f32 1.0, %v7313_v40  ;;  %v7315_v28 = vpop.eup %7314 }
0x1c01   :  { %v4805_v50 = vadd.f32 1.0, %v7315_v28 }
0x1c02   :  { %7316 = vrcp.f32 %v4804_v32 }
0x1c0c   :  { %v7317_v5 = vpop.eup %7316 }
0x1c0d   :  { %v4810_v55 = vmul.f32 %v7317_v5, %v4790_v59 }
0x1c0f   :  { %v4811_v4 = vadd.f32 %v9036_v56, %v4810_v55 }
0x1c11   :  { %7318 = vtanh.f32 %v4811_v4 }
0x1c12   :  { %7320 = vrcp.f32 %v4805_v50 }
0x1c1b   :  { %v7319_v7 = vpop.eup %7318 }
0x1c1c   :  { %v4813_v0 = vsub.f32 %v9170_v33, %v7319_v7  ;;  %v7321_v16 = vpop.eup %7320 }
0x1c1e   :  { %v4814_v14 = vmul.f32 %v7321_v16, %v4813_v0 }
0x1c20   :  { %v9213_v58 = vadd.f32 %v7319_v7, %v4814_v14 }
0x1c22   :  { %v4819_v25 = vpack.c.bf16 %v9213_v58, %v9213_v58 }
0x1c24   :  { %4853 = vmatmul.mubr.bf16.vlgmr.msra.gmra.mrb[172].mxu0 %v4819_v25  ;;  %6702 = vmatmul.mubr.bf16.vlgmr.msra.gmra.mrb[140].mxu1 %v4819_v25 }
0x1c25   :  { %4926 = vmatpush1.bf16.msra.mxu0 %v8952_v22  ;;  %6706 = vmatpush3.bf16.msra.mxu1 %v8990_v26 }
0x1c26   :  { %4927 = vmatprep.subr.bf16.mxu0 %v8956_v44  ;;  %6707 = vmatprep.subr.bf16.mxu1 %v9424_v1 }
0x1c27   :  { %4957 = vmatprep.mubr.bf16.mxu0 %v9425_v17  ;;  %6721 = vmatprep.mubr.msk.bf16.mxu1 %vm7492_vm2, %v9424_v1 }
0x1c29   :  { %4928 = vmatpush1.bf16.msra.mxu0 %v8958_v61  ;;  %6708 = vmatpush3.bf16.msra.mxu1 %v8999_v11 }
0x1c2a   :  { %4929 = vmatprep.subr.bf16.mxu0 %v8962_v35  ;;  %6709 = vmatprep.subr.bf16.mxu1 %v9424_v1 }
0x1c2d   :  { %4930 = vmatpush1.bf16.msra.mxu0 %v8964_v21  ;;  %6710 = vmatpush3.bf16.msra.mxu1 %v9007_v30 }
0x1c2e   :  { %4931 = vmatprep.subr.bf16.mxu0 %v8968_v6  ;;  %6711 = vmatprep.subr.bf16.mxu1 %v9424_v1 }
0x1c31   :  { %4932 = vmatpush1.bf16.msra.mxu0 %v8970_v8  ;;  %6712 = vmatpush3.bf16.msra.mxu1 %v9010_v48 }
0x1c32   :  { %4933 = vmatprep.subr.bf16.mxu0 %v8974_v13  ;;  %6713 = vmatprep.subr.bf16.mxu1 %v9424_v1 }
0x1c35   :  { %4934 = vmatpush1.bf16.msra.mxu0 %v8976_v29  ;;  %6714 = vmatpush3.bf16.msra.mxu1 %v9014_v19 }
0x1c36   :  { %4935 = vmatprep.subr.bf16.mxu0 %v8980_v12  ;;  %6715 = vmatprep.subr.bf16.mxu1 %v9424_v1 }
0x1c39   :  { %4936 = vmatpush1.bf16.msra.mxu0 %v8982_v9  ;;  %6716 = vmatpush3.bf16.msra.mxu1 %v9018_v39 }
0x1c3a   :  { %4937 = vmatprep.subr.bf16.mxu0 %v8986_v43  ;;  %6717 = vmatprep.subr.bf16.mxu1 %v9424_v1 }
0x1c3d   :  { %4938 = vmatpush1.bf16.msra.mxu0 %v8988_v34  ;;  %6718 = vmatpush3.bf16.msra.mxu1 %v9022_v52 }
0x1c3e   :  { %4939 = vmatprep.subr.bf16.mxu0 %v8992_v60  ;;  %6719 = vmatprep.subr.bf16.mxu1 %v9424_v1 }
0x1c41   :  { %4940 = vmatpush1.bf16.msra.mxu0 %v8997_v31  ;;  %6720 = vmatpush3.bf16.msra.mxu1 %v9026_v41 }
0x1c42   :  { %5030 = vmatprep.subr.bf16.mxu0 %v8950_v27  ;;  %6725 = vmatprep.subr.bf16.mxu1 %v9424_v1 }
0x1cf7   :  { %v4854_v56 = vpop.f32.mrb[172].mxu0  ;;  %v4895_v33 = vpop.f32.mrb[140].mxu1 }
0x1cf8   :  { %v4901_v46 = vadd.f32 %v4854_v56, %v9054_v45  ;;  %v4856_v59 = vpop.f32.mrb[173].mxu0  ;;  %v6703_v15 = vpop.f32.mrb[141].mxu1 }
0x1cf9   :  { %v4902_v57 = vadd.f32 %v4856_v59, %v9056_v62  ;;  %v4858_v37 = vpop.f32.mrb[174].mxu0  ;;  %v4898_v53 = vpop.f32.mrb[142].mxu1 }
0x1cfa   :  { %v5706_v49 = vmul.f32 -1.442695, %v4901_v46  ;;  %v4859_v3 = vpop.f32.mrb[175].mxu0  ;;  %v6704_v38 = vpop.f32.mrb[143].mxu1 }
0x1cfb   :  { %v5707_v18 = vmul.f32 -1.442695, %v4902_v57 }
0x1cfc   :  { %7322 = vpow2.f32 %v5706_v49 }
0x1cfd   :  { %7324 = vpow2.f32 %v5707_v18 }
0x1d06   :  { %v7323_v54 = vpop.eup %7322 }
0x1d07   :  { %v4909_v23 = vadd.f32 1.0, %v7323_v54  ;;  %v7325_v40 = vpop.eup %7324 }
0x1d08   :  { %v4910_v5 = vadd.f32 1.0, %v7325_v40 }
0x1d09   :  { %7326 = vrcp.f32 %v4909_v23 }
0x1d13   :  { %v7327_v32 = vpop.eup %7326 }
0x1d14   :  { %v4915_v28 = vmul.f32 %v7327_v32, %v4895_v33 }
0x1d16   :  { %v4916_v45 = vadd.f32 %v9044_v63, %v4915_v28 }
0x1d18   :  { %7328 = vtanh.f32 %v4916_v45 }
0x1d19   :  { %7330 = vrcp.f32 %v4910_v5 }
0x1d22   :  { %v7329_v62 = vpop.eup %7328 }
0x1d23   :  { %v4918_v55 = vsub.f32 %v9213_v58, %v7329_v62  ;;  %v7331_v4 = vpop.eup %7330 }
0x1d25   :  { %v4919_v50 = vmul.f32 %v7331_v4, %v4918_v55 }
0x1d27   :  { %v9256_v7 = vadd.f32 %v7329_v62, %v4919_v50 }
0x1d29   :  { %v4924_v0 = vpack.c.bf16 %v9256_v7, %v9256_v7 }
0x1d2b   :  { %4958 = vmatmul.mubr.bf16.vlgmr.msra.gmra.mrb[176].mxu0 %v4924_v0  ;;  %6722 = vmatmul.mubr.bf16.vlgmr.msra.gmra.mrb[144].mxu1 %v4924_v0 }
0x1d2c   :  { %5031 = vmatpush1.bf16.msra.mxu0 %v8952_v22  ;;  %6726 = vmatpush3.bf16.msra.mxu1 %v8990_v26 }
0x1d2d   :  { %5032 = vmatprep.subr.bf16.mxu0 %v8956_v44  ;;  %6727 = vmatprep.subr.bf16.mxu1 %v9424_v1 }
0x1d2e   :  { %5062 = vmatprep.mubr.bf16.mxu0 %v9425_v17  ;;  %6741 = vmatprep.mubr.msk.bf16.mxu1 %vm7492_vm2, %v9424_v1 }
0x1d30   :  { %5033 = vmatpush1.bf16.msra.mxu0 %v8958_v61  ;;  %6728 = vmatpush3.bf16.msra.mxu1 %v8999_v11 }
0x1d31   :  { %5034 = vmatprep.subr.bf16.mxu0 %v8962_v35  ;;  %6729 = vmatprep.subr.bf16.mxu1 %v9424_v1 }
0x1d34   :  { %5035 = vmatpush1.bf16.msra.mxu0 %v8964_v21  ;;  %6730 = vmatpush3.bf16.msra.mxu1 %v9007_v30 }
0x1d35   :  { %5036 = vmatprep.subr.bf16.mxu0 %v8968_v6  ;;  %6731 = vmatprep.subr.bf16.mxu1 %v9424_v1 }
0x1d38   :  { %5037 = vmatpush1.bf16.msra.mxu0 %v8970_v8  ;;  %6732 = vmatpush3.bf16.msra.mxu1 %v9010_v48 }
0x1d39   :  { %5038 = vmatprep.subr.bf16.mxu0 %v8974_v13  ;;  %6733 = vmatprep.subr.bf16.mxu1 %v9424_v1 }
0x1d3c   :  { %5039 = vmatpush1.bf16.msra.mxu0 %v8976_v29  ;;  %6734 = vmatpush3.bf16.msra.mxu1 %v9014_v19 }
0x1d3d   :  { %5040 = vmatprep.subr.bf16.mxu0 %v8980_v12  ;;  %6735 = vmatprep.subr.bf16.mxu1 %v9424_v1 }
0x1d40   :  { %5041 = vmatpush1.bf16.msra.mxu0 %v8982_v9  ;;  %6736 = vmatpush3.bf16.msra.mxu1 %v9018_v39 }
0x1d41   :  { %5042 = vmatprep.subr.bf16.mxu0 %v8986_v43  ;;  %6737 = vmatprep.subr.bf16.mxu1 %v9424_v1 }
0x1d44   :  { %5043 = vmatpush1.bf16.msra.mxu0 %v8988_v34  ;;  %6738 = vmatpush3.bf16.msra.mxu1 %v9022_v52 }
0x1d45   :  { %5044 = vmatprep.subr.bf16.mxu0 %v8992_v60  ;;  %6739 = vmatprep.subr.bf16.mxu1 %v9424_v1 }
0x1d48   :  { %5045 = vmatpush1.bf16.msra.mxu0 %v8997_v31  ;;  %6740 = vmatpush3.bf16.msra.mxu1 %v9026_v41 }
0x1d49   :  { %5135 = vmatprep.subr.bf16.mxu0 %v8950_v27  ;;  %6745 = vmatprep.subr.bf16.mxu1 %v9424_v1 }
0x1dfe   :  { %v4959_v63 = vpop.f32.mrb[176].mxu0  ;;  %v5000_v16 = vpop.f32.mrb[144].mxu1 }
0x1dff   :  { %v5006_v14 = vadd.f32 %v4959_v63, %v9059_v10  ;;  %v4961_v58 = vpop.f32.mrb[177].mxu0  ;;  %v6723_v25 = vpop.f32.mrb[145].mxu1  ;;  %v7424_v63 = vld [vmem:[#allocation7 + $0x240] ss:$12 sps:$4 sm:$0xff]  }
0x1e00   :  { %v5007_v56 = vadd.f32 %v4961_v58, %v9061_v36  ;;  %v4963_v33 = vpop.f32.mrb[178].mxu0  ;;  %v5003_v46 = vpop.f32.mrb[146].mxu1  ;;  %v7432_v58 = vld [vmem:[#allocation7 + $0x2bc] ss:$12 sps:$4 sm:$0xff]   ;;  %v7434_v25 = vld [vmem:[#allocation7 + $0x2d4] ss:$12 sps:$4 sm:$0xff]  }
0x1e01   :  { %v5708_v59 = vmul.f32 -1.442695, %v5006_v14  ;;  %v4964_v15 = vpop.f32.mrb[179].mxu0  ;;  %v6724_v57 = vpop.f32.mrb[147].mxu1  ;;  %v7427_v14 = vld [vmem:[#allocation7 + $0x270] ss:$12 sps:$4 sm:$0xff]  }
0x1e02   :  { %v5709_v37 = vmul.f32 -1.442695, %v5007_v56  ;;  %v7436_v56 = vld [vmem:[#allocation7 + $0x2ec] ss:$12 sps:$4 sm:$0xff]  }
0x1e03   :  { %7332 = vpow2.f32 %v5708_v59 }
0x1e04   :  { %7334 = vpow2.f32 %v5709_v37 }
0x1e0d   :  { %v7333_v53 = vpop.eup %7332 }
0x1e0e   :  { %v5014_v49 = vadd.f32 1.0, %v7333_v53  ;;  %v7335_v3 = vpop.eup %7334 }
0x1e0f   :  { %v5015_v54 = vadd.f32 1.0, %v7335_v3 }
0x1e10   :  { %7336 = vrcp.f32 %v5014_v49 }
0x1e1a   :  { %v7337_v38 = vpop.eup %7336 }
0x1e1b   :  { %v5020_v18 = vmul.f32 %v7337_v38, %v5000_v16  ;;  %v7426_v16 = vld [vmem:[#allocation7 + $0x274] ss:$12 sps:$4 sm:$0xff]  }
0x1e1d   :  { %v5021_v10 = vadd.f32 %v5020_v18, %v9114_v20 }
0x1e1f   :  { %7338 = vtanh.f32 %v5021_v10 }
0x1e20   :  { %7340 = vrcp.f32 %v5015_v54 }
0x1e29   :  { %v7339_v36 = vpop.eup %7338 }
0x1e2a   :  { %v5023_v23 = vsub.f32 %v9256_v7, %v7339_v36  ;;  %v7341_v40 = vpop.eup %7340 }
0x1e2c   :  { %v5024_v32 = vmul.f32 %v7341_v40, %v5023_v23  ;;  %v9448_v23 = vld [vmem:[#allocation12_spill] sm:$0xff] }
0x1e2e   :  { %v9299_v28 = vadd.f32 %v7339_v36, %v5024_v32 }
0x1e30   :  { %v5029_v45 = vpack.c.bf16 %v9299_v28, %v9299_v28 }
0x1e32   :  { %5063 = vmatmul.mubr.bf16.vlgmr.msra.gmra.mrb[180].mxu0 %v5029_v45  ;;  %6742 = vmatmul.mubr.bf16.vlgmr.msra.gmra.mrb[148].mxu1 %v5029_v45 }
0x1e33   :  { %5136 = vmatpush1.bf16.msra.mxu0 %v8952_v22  ;;  %6746 = vmatpush3.bf16.msra.mxu1 %v8990_v26 }
0x1e34   :  { %5137 = vmatprep.subr.bf16.mxu0 %v8956_v44  ;;  %6747 = vmatprep.subr.bf16.mxu1 %v9424_v1 }
0x1e35   :  { %5167 = vmatprep.mubr.bf16.mxu0 %v9425_v17  ;;  %6761 = vmatprep.mubr.msk.bf16.mxu1 %vm7492_vm2, %v9424_v1 }
0x1e37   :  { %5138 = vmatpush1.bf16.msra.mxu0 %v8958_v61  ;;  %6748 = vmatpush3.bf16.msra.mxu1 %v8999_v11 }
0x1e38   :  { %5139 = vmatprep.subr.bf16.mxu0 %v8962_v35  ;;  %6749 = vmatprep.subr.bf16.mxu1 %v9424_v1 }
0x1e3b   :  { %5140 = vmatpush1.bf16.msra.mxu0 %v8964_v21  ;;  %6750 = vmatpush3.bf16.msra.mxu1 %v9007_v30 }
0x1e3c   :  { %5141 = vmatprep.subr.bf16.mxu0 %v8968_v6  ;;  %6751 = vmatprep.subr.bf16.mxu1 %v9424_v1 }
0x1e3f   :  { %5142 = vmatpush1.bf16.msra.mxu0 %v8970_v8  ;;  %6752 = vmatpush3.bf16.msra.mxu1 %v9010_v48 }
0x1e40   :  { %5143 = vmatprep.subr.bf16.mxu0 %v8974_v13  ;;  %6753 = vmatprep.subr.bf16.mxu1 %v9424_v1 }
0x1e43   :  { %5144 = vmatpush1.bf16.msra.mxu0 %v8976_v29  ;;  %6754 = vmatpush3.bf16.msra.mxu1 %v9014_v19 }
0x1e44   :  { %5145 = vmatprep.subr.bf16.mxu0 %v8980_v12  ;;  %6755 = vmatprep.subr.bf16.mxu1 %v9424_v1 }
0x1e47   :  { %5146 = vmatpush1.bf16.msra.mxu0 %v8982_v9  ;;  %6756 = vmatpush3.bf16.msra.mxu1 %v9018_v39 }
0x1e48   :  { %5147 = vmatprep.subr.bf16.mxu0 %v8986_v43  ;;  %6757 = vmatprep.subr.bf16.mxu1 %v9424_v1 }
0x1e4b   :  { %5148 = vmatpush1.bf16.msra.mxu0 %v8988_v34  ;;  %6758 = vmatpush3.bf16.msra.mxu1 %v9022_v52 }
0x1e4c   :  { %5149 = vmatprep.subr.bf16.mxu0 %v8992_v60  ;;  %6759 = vmatprep.subr.bf16.mxu1 %v9424_v1 }
0x1e4f   :  { %5150 = vmatpush1.bf16.msra.mxu0 %v8997_v31  ;;  %6760 = vmatpush3.bf16.msra.mxu1 %v9026_v41 }
0x1e50   :  { %5240 = vmatprep.subr.bf16.mxu0 %v8950_v27  ;;  %6765 = vmatprep.subr.bf16.mxu1 %v9424_v1 }
0x1f05   :  { %v5064_v22 = vpop.f32.mrb[180].mxu0  ;;  %v5105_v61 = vpop.f32.mrb[148].mxu1 }
0x1f06   :  { %v5111_v35 = vadd.f32 %v5064_v22, %v9063_v2  ;;  %v5066_v21 = vpop.f32.mrb[181].mxu0  ;;  %v6743_v6 = vpop.f32.mrb[149].mxu1 }
0x1f07   :  { %v5112_v8 = vadd.f32 %v5066_v21, %v9066_v47  ;;  %v5068_v13 = vpop.f32.mrb[182].mxu0  ;;  %v5108_v29 = vpop.f32.mrb[150].mxu1  ;;  %v7045_v21 = vld [vmem:[%s9415_s6 + $0x8] sm:$0xff]   ;;  %v7046_v6 = vld [vmem:[%s9415_s6 + $0x10] sm:$0xff]  }
0x1f08   :  { %v5710_v12 = vmul.f32 -1.442695, %v5111_v35  ;;  %v5069_v9 = vpop.f32.mrb[183].mxu0  ;;  %v6744_v43 = vpop.f32.mrb[151].mxu1  ;;  %v7044_v35 = vld [vmem:[%s9415_s6] sm:$0xff]   ;;  %v7049_v29 = vld [vmem:[%s9415_s6 + $0x28] sm:$0xff]  }
0x1f09   :  { %v5711_v34 = vmul.f32 -1.442695, %v5112_v8  ;;  %v7047_v8 = vld [vmem:[%s9415_s6 + $0x18] sm:$0xff]   ;;  %v7048_v13 = vld [vmem:[%s9415_s6 + $0x20] sm:$0xff]  }
0x1f0a   :  { %7342 = vpow2.f32 %v5710_v12  ;;  %v7050_v12 = vld [vmem:[%s9415_s6 + $0x30] sm:$0xff]   ;;  %v7051_v9 = vld [vmem:[%s9415_s6 + $0x38] sm:$0xff]  }
0x1f0b   :  { %7344 = vpow2.f32 %v5711_v34 }
0x1f14   :  { %v7343_v60 = vpop.eup %7342 }
0x1f15   :  { %v5119_v31 = vadd.f32 1.0, %v7343_v60  ;;  %v7345_v27 = vpop.eup %7344  ;;  %v9449_v60 = vld [vmem:[#allocation11_spill] sm:$0xff] }
0x1f16   :  { %v5120_v62 = vadd.f32 1.0, %v7345_v27 }
0x1f17   :  { %7346 = vrcp.f32 %v5119_v31 }
0x1f21   :  { %v7347_v20 = vpop.eup %7346 }
0x1f22   :  { %v5125_v5 = vmul.f32 %v7347_v20, %v5105_v61 }
0x1f24   :  { %v5126_v2 = vadd.f32 %v5125_v5, %v9122_v24  ;;  %v7425_v24 = vld [vmem:[#allocation7 + $0x258] ss:$12 sps:$4 sm:$0xff]  }
0x1f25   :  { %v9450_v5 = vld [vmem:[#allocation14_spill] sm:$0xff] }
0x1f26   :  { %7348 = vtanh.f32 %v5126_v2 }
0x1f27   :  { %7350 = vrcp.f32 %v5120_v62 }
0x1f30   :  { %v7349_v47 = vpop.eup %7348 }
0x1f31   :  { %v5128_v55 = vsub.f32 %v9299_v28, %v7349_v47  ;;  %v7351_v4 = vpop.eup %7350 }
0x1f33   :  { %v5129_v50 = vmul.f32 %v7351_v4, %v5128_v55 }
0x1f35   :  { %v9342_v7 = vadd.f32 %v7349_v47, %v5129_v50 }
0x1f37   :  { %v5134_v0 = vpack.c.bf16 %v9342_v7, %v9342_v7 }
0x1f39   :  { %5168 = vmatmul.mubr.bf16.vlgmr.msra.gmra.mrb[184].mxu0 %v5134_v0  ;;  %6762 = vmatmul.mubr.bf16.vlgmr.msra.gmra.mrb[152].mxu1 %v5134_v0 }
0x1f3a   :  { %5241 = vmatpush1.bf16.msra.mxu0 %v7424_v63  ;;  %6766 = vmatpush3.bf16.msra.mxu1 %v8990_v26  ;;  %v7430_v26 = vld [vmem:[#allocation7 + $0x2a4] ss:$12 sps:$4 sm:$0xff]  }
0x1f3b   :  { %5242 = vmatprep.subr.bf16.mxu0 %v8956_v44  ;;  %6767 = vmatprep.subr.bf16.mxu1 %v9424_v1  ;;  %v7428_v44 = vld [vmem:[#allocation7 + $0x28c] ss:$12 sps:$4 sm:$0xff]  }
0x1f3c   :  { %5272 = vmatprep.mubr.bf16.mxu0 %v9425_v17  ;;  %6781 = vmatprep.mubr.msk.bf16.mxu1 %vm7492_vm2, %v9424_v1  ;;  %v7429_v17 = vld [vmem:[#allocation7 + $0x288] ss:$12 sps:$4 sm:$0xff]  }
0x1f3e   :  { %5243 = vmatpush1.bf16.msra.mxu0 %v7425_v24  ;;  %6768 = vmatpush3.bf16.msra.mxu1 %v8999_v11  ;;  %v7431_v11 = vld [vmem:[#allocation7 + $0x2a0] ss:$12 sps:$4 sm:$0xff]  }
0x1f3f   :  { %5244 = vmatprep.subr.bf16.mxu0 %v7426_v16  ;;  %6769 = vmatprep.subr.bf16.mxu1 %v9424_v1 }
0x1f42   :  { %5245 = vmatpush1.bf16.msra.mxu0 %v7427_v14  ;;  %6770 = vmatpush3.bf16.msra.mxu1 %v9007_v30  ;;  %v7433_v30 = vld [vmem:[#allocation7 + $0x2b8] ss:$12 sps:$4 sm:$0xff]   ;;  %v9451_v14 = vld [vmem:[#allocation13_spill] sm:$0xff] }
0x1f43   :  { %5246 = vmatprep.subr.bf16.mxu0 %v7428_v44  ;;  %6771 = vmatprep.subr.bf16.mxu1 %v9424_v1 }
0x1f46   :  { %5247 = vmatpush1.bf16.msra.mxu0 %v7429_v17  ;;  %6772 = vmatpush3.bf16.msra.mxu1 %v9010_v48  ;;  %v7435_v48 = vld [vmem:[#allocation7 + $0x2d0] ss:$12 sps:$4 sm:$0xff]  }
0x1f47   :  { %5248 = vmatprep.subr.bf16.mxu0 %v7430_v26  ;;  %6773 = vmatprep.subr.bf16.mxu1 %v9424_v1 }
0x1f4a   :  { %5249 = vmatpush1.bf16.msra.mxu0 %v7431_v11  ;;  %6774 = vmatpush3.bf16.msra.mxu1 %v9014_v19  ;;  %v7437_v19 = vld [vmem:[#allocation7 + $0x2e8] ss:$12 sps:$4 sm:$0xff]  }
0x1f4b   :  { %5250 = vmatprep.subr.bf16.mxu0 %v7432_v58  ;;  %6775 = vmatprep.subr.bf16.mxu1 %v9424_v1 }
0x1f4e   :  { %5251 = vmatpush1.bf16.msra.mxu0 %v7433_v30  ;;  %6776 = vmatpush3.bf16.msra.mxu1 %v9018_v39 }
0x1f4f   :  { %5252 = vmatprep.subr.bf16.mxu0 %v7434_v25  ;;  %6777 = vmatprep.subr.bf16.mxu1 %v9424_v1 }
0x1f52   :  { %5253 = vmatpush1.bf16.msra.mxu0 %v7435_v48  ;;  %6778 = vmatpush3.bf16.msra.mxu1 %v9022_v52 }
0x1f53   :  { %5254 = vmatprep.subr.bf16.mxu0 %v7436_v56  ;;  %6779 = vmatprep.subr.bf16.mxu1 %v9424_v1  ;;  %v5716_v56 = vld [vmem:[#allocation4] ss:$0 sm:$0xff] }
0x1f56   :  { %5255 = vmatpush1.bf16.msra.mxu0 %v7437_v19  ;;  %6780 = vmatpush3.bf16.msra.mxu1 %v9026_v41 }
0x1f57   :  { %6785 = vmatprep.subr.bf16.mxu0 %v9424_v1 }
0x200c   :  { %v5169_v33 = vpop.f32.mrb[184].mxu0  ;;  %v5210_v39 = vpop.f32.mrb[152].mxu1 }
0x200d   :  { %v5216_v46 = vadd.f32 %v5169_v33, %v9108_v42  ;;  %v5171_v59 = vpop.f32.mrb[185].mxu0  ;;  %v6763_v15 = vpop.f32.mrb[153].mxu1 }
0x200e   :  { %v5217_v57 = vadd.f32 %v5171_v59, %v9112_v51  ;;  %v5173_v37 = vpop.f32.mrb[186].mxu0  ;;  %v5213_v52 = vpop.f32.mrb[154].mxu1 }
0x200f   :  { %v5712_v53 = vmul.f32 -1.442695, %v5216_v46  ;;  %v5174_v49 = vpop.f32.mrb[187].mxu0  ;;  %v6764_v3 = vpop.f32.mrb[155].mxu1 }
0x2010   :  { %v5713_v38 = vmul.f32 -1.442695, %v5217_v57 }
0x2011   :  { %7352 = vpow2.f32 %v5712_v53 }
0x2012   :  { %7354 = vpow2.f32 %v5713_v38 }
0x201b   :  { %v7353_v18 = vpop.eup %7352 }
0x201c   :  { %v5224_v10 = vadd.f32 1.0, %v7353_v18  ;;  %v7355_v41 = vpop.eup %7354 }
0x201d   :  { %v5225_v40 = vadd.f32 1.0, %v7355_v41 }
0x201e   :  { %7356 = vrcp.f32 %v5224_v10 }
0x2028   :  { %v7357_v54 = vpop.eup %7356 }
0x2029   :  { %v5230_v36 = vmul.f32 %v7357_v54, %v5210_v39 }
0x202b   :  { %v5231_v42 = vadd.f32 %v9448_v23, %v5230_v36 }
0x202d   :  { %7358 = vtanh.f32 %v5231_v42 }
0x202e   :  { %7360 = vrcp.f32 %v5225_v40 }
0x2037   :  { %v7359_v51 = vpop.eup %7358 }
0x2038   :  { %v5233_v32 = vsub.f32 %v9342_v7, %v7359_v51  ;;  %v7361_v28 = vpop.eup %7360 }
0x203a   :  { %v5234_v45 = vmul.f32 %v7361_v28, %v5233_v32 }
0x203c   :  { %v5235_v22 = vadd.f32 %v7359_v51, %v5234_v45 }
0x203e   :  { %v5239_v61 = vpack.c.bf16 %v5235_v22, %v5235_v22 }
0x2040   :  { %5273 = vmatmul.mubr.bf16.vlgmr.msra.gmra.mrb[188].mxu0 %v5239_v61  ;;  %6782 = vmatmul.mubr.bf16.vlgmr.msra.gmra.mrb[156].mxu1 %v5239_v61 }
0x2041   :  { %6801 = vmatprep.mubr.msk.bf16.mxu0 %vm7492_vm2, %v9424_v1  ;;  %6786 = vmatpush3.bf16.msra.mxu0 %v7044_v35 }
0x2042   :  { %6787 = vmatprep.subr.bf16.mxu0 %v9424_v1 }
0x2045   :  { %6788 = vmatpush3.bf16.msra.mxu0 %v7045_v21 }
0x2046   :  { %6789 = vmatprep.subr.bf16.mxu0 %v9424_v1 }
0x2049   :  { %6790 = vmatpush3.bf16.msra.mxu0 %v7046_v6 }
0x204a   :  { %6791 = vmatprep.subr.bf16.mxu0 %v9424_v1 }
0x204d   :  { %6792 = vmatpush3.bf16.msra.mxu0 %v7047_v8 }
0x204e   :  { %6793 = vmatprep.subr.bf16.mxu0 %v9424_v1 }
0x2051   :  { %6794 = vmatpush3.bf16.msra.mxu0 %v7048_v13 }
0x2052   :  { %6795 = vmatprep.subr.bf16.mxu0 %v9424_v1 }
0x2055   :  { %6796 = vmatpush3.bf16.msra.mxu0 %v7049_v29 }
0x2056   :  { %6797 = vmatprep.subr.bf16.mxu0 %v9424_v1 }
0x2059   :  { %6798 = vmatpush3.bf16.msra.mxu0 %v7050_v12 }
0x205a   :  { %6799 = vmatprep.subr.bf16.mxu0 %v9424_v1 }
0x205d   :  { %6800 = vmatpush3.bf16.msra.mxu0 %v7051_v9 }
0x2113   :  { %v5274_v43 = vpop.f32.mrb[188].mxu0  ;;  %v5315_v34 = vpop.f32.mrb[156].mxu1 }
0x2114   :  { %v5321_v31 = vadd.f32 %v5274_v43, %v9449_v60  ;;  %v5276_v27 = vpop.f32.mrb[189].mxu0  ;;  %v6783_v20 = vpop.f32.mrb[157].mxu1 }
0x2115   :  { %v5322_v2 = vadd.f32 %v5276_v27, %v9450_v5  ;;  %v5278_v62 = vpop.f32.mrb[190].mxu0  ;;  %v5318_v47 = vpop.f32.mrb[158].mxu1 }
0x2116   :  { %v5714_v55 = vmul.f32 -1.442695, %v5321_v31  ;;  %v5279_v4 = vpop.f32.mrb[191].mxu0  ;;  %v6784_v50 = vpop.f32.mrb[159].mxu1 }
0x2117   :  { %v5715_v7 = vmul.f32 -1.442695, %v5322_v2 }
0x2118   :  { %7362 = vpow2.f32 %v5714_v55 }
0x2119   :  { %7364 = vpow2.f32 %v5715_v7 }
0x2122   :  { %v7363_v0 = vpop.eup %7362 }
0x2123   :  { %v5329_v63 = vadd.f32 1.0, %v7363_v0  ;;  %v7365_v1 = vpop.eup %7364 }
0x2124   :  { %v5330_v17 = vadd.f32 1.0, %v7365_v1 }
0x2125   :  { %7366 = vrcp.f32 %v5329_v63 }
0x212f   :  { %v7367_v24 = vpop.eup %7366 }
0x2130   :  { %v5335_v16 = vmul.f32 %v7367_v24, %v5315_v34 }
0x2132   :  { %v5336_v44 = vadd.f32 %v9451_v14, %v5335_v16 }
0x2134   :  { %7368 = vtanh.f32 %v5336_v44 }
0x2135   :  { %7370 = vrcp.f32 %v5330_v17 }
0x213e   :  { %v7369_v26 = vpop.eup %7368 }
0x213f   :  { %v5338_v11 = vsub.f32 %v5235_v22, %v7369_v26  ;;  %v7371_v58 = vpop.eup %7370 }
0x2141   :  { %v5339_v30 = vmul.f32 %v7371_v58, %v5338_v11 }
0x2143   :  { %v5340_v25 = vadd.f32 %v7369_v26, %v5339_v30 }
0x2145   :  { %v5341_v48 = vpack.c.bf16 %v5340_v25, %v5340_v25 }
0x2147   :  { %6802 = vmatmul.mubr.bf16.vlgmr.msra.gmra.mrb[192].mxu0 %v5341_v48 }
0x221a   :  { %v5447_v19 = vpop.f32.mrb[192].mxu0 }
0x221b   :  { %v5448_v33 = vadd.f32 %v5716_v56, %v5447_v19  ;;  %v6803_v39 = vpop.f32.mrb[193].mxu0 }
0x221c   :  { %v5450_v46 = vpop.f32.mrb[194].mxu0 }
0x221d   :  { %5454 = vst.msk [vmem:[%s9417_s8] sm:$0xff] %vm5453_vm3, %v5448_v33  ;;  %v6804_v59 = vpop.f32.mrb[195].mxu0 }
0x221e   :  { %5459 = vsyncpa [#allocation6], 1 }
0x221f   :  { %5460 = vsyncpa [#allocation8], 1 }

</bundles_post_ra>
